<compile_context>
chip_gen: v7x
topology: tpu7x:2x2x1
jax: 0.10.0
libtpu: 0.0.40
codegen_flags: <defaults>
</compile_context>

<pallas_src>
import functools
import math

import jax
import jax.numpy as jnp
from jax.experimental import pallas as pl
from jax.experimental.pallas import tpu as pltpu

HP = 128            # lane-aligned block per gate on the gate OUTPUT axis
G = 3 * HP          # padded gate width (r|z|n)


def _cdiv(a, b):
    return -(-a // b)


def _rup(a, b):
    return _cdiv(a, b) * b


def _default_matmul_dtype():
    """bf16 MXU operands on v6e/v7x; f32 on v5e (no bf16 VPU/EUP) / unknown."""
    try:
        kind = jax.devices()[0].device_kind.lower()
    except Exception:
        return jnp.float32
    return jnp.bfloat16 if ("v6" in kind or "v7" in kind) else jnp.float32


def tra_kernel(tau, T, H8,
               hidden_ref, hist_ref, gumbel_ref,
               w_hid_ref, wih_ref, whh_fcr_ref, b_all_ref,
               pred_ref, choice_ref, prob_ref):
    f32 = jnp.float32
    hidden = hidden_ref[...]                       # [Bt, D]      (f32 or bf16)
    hist2d = hist_ref[...]                         # [Bt*T, K]    (f32 or bf16)
    gumbel = gumbel_ref[...].astype(f32)           # [Bt, K]

    Bt = hidden.shape[0]
    K = gumbel.shape[1]

    b_all = b_all_ref[...]                         # [3, G] f32
    b_hid = b_all[0:1, 0:2 * HP]                   # [1, 2*HP]: preds@0, fc@HP
    bih = b_all[1:2, :]                            # [1, G]: b_ih (+ b_hr/b_hz folded)

    # ---- fused hidden-side matmul: preds block + fc(hidden) block ------------
    hid_out = jnp.dot(hidden, w_hid_ref[...],
                      preferred_element_type=f32) + b_hid          # [Bt, 2*HP]
    preds = hid_out[:, 0:K]                        # lane offset 0
    logits_h = hid_out[:, HP:HP + K]               # lane offset 128 (aligned)

    # ---- GRU input projection hoisted out of the recurrence ------------------
    gx2d = jnp.dot(hist2d, wih_ref[...],
                   preferred_element_type=f32) + bih               # [Bt*T, G]
    gx_all = gx2d.reshape(Bt, T, G)

    whh_fcr = whh_fcr_ref[...]                     # [H8, G + HP]
    whh = whh_fcr[:, 0:G]                          # [H8, G]  (8-row contraction)
    wfcr = whh_fcr[:, G:G + K]                     # [H8, K]  (lane-aligned start)
    mm_dtype = whh.dtype

    # b_hn stays inside the r*(...) term (torch GRU); broadcast hoisted.
    bhn = jnp.broadcast_to(b_all[2:3, 0:H8], (Bt, H8))

    # ---- unrolled single-layer GRU recurrence --------------------------------
    # h kept narrow [Bt, H8]; padded lanes provably stay 0 (zero pad weights).
    h = jnp.zeros((Bt, H8), f32)
    for t in range(T):
        gx_r = gx_all[:, t, 0:H8]
        gx_z = gx_all[:, t, HP:HP + H8]
        gx_n = gx_all[:, t, 2 * HP:2 * HP + H8]
        if t == 0:
            # h0 == 0  =>  h0 @ whh == 0 : skip the matmul on step 0
            r = jax.nn.sigmoid(gx_r)
            z = jax.nn.sigmoid(gx_z)
            n = jnp.tanh(gx_n + r * bhn)
            h = (1.0 - z) * n
        else:
            gh = jnp.dot(h.astype(mm_dtype), whh,
                         preferred_element_type=f32)               # [Bt, G]
            r = jax.nn.sigmoid(gx_r + gh[:, 0:H8])
            z = jax.nn.sigmoid(gx_z + gh[:, HP:HP + H8])
            n = jnp.tanh(gx_n + r * (gh[:, 2 * HP:2 * HP + H8] + bhn))
            h = (1.0 - z) * n + z * h

    # ---- fc: logits = fc([hidden, h_T]) --------------------------------------
    logits = logits_h + jnp.dot(h.astype(mm_dtype), wfcr,
                                preferred_element_type=f32)        # [Bt, K]

    # ---- hard gumbel-softmax: forward value = one-hot(argmax(logits + g)) ----
    # First-max tie-break via exact float compare (matches torch argmax).
    y = (logits + gumbel) * (1.0 / tau)
    iota = jax.lax.broadcasted_iota(jnp.int32, y.shape, 1)
    ymax = jnp.max(y, axis=-1, keepdims=True)
    idx = jnp.min(jnp.where(y == ymax, iota, K), axis=-1, keepdims=True)
    choice = (iota == idx).astype(f32)

    # ---- prob = softmax(logits / tau)  (no gumbel noise, as in the reference)
    s = logits * (1.0 / tau)
    s = s - jnp.max(s, axis=-1, keepdims=True)
    e = jnp.exp(s)
    prob = e / jnp.sum(e, axis=-1, keepdims=True)

    # ---- three lane-offset-0 stores (no rotates in the epilogue) -------------
    pred_ref[...] = preds.astype(pred_ref.dtype)
    choice_ref[...] = choice.astype(choice_ref.dtype)
    prob_ref[...] = prob.astype(prob_ref.dtype)


def tra_forward(params, hidden, hist_loss, gumbels, tau=1.0, matmul_dtype=None):
    """TRA forward for num_states > 1, src_info='LR_TPE', rnn_arch='GRU'."""
    f32 = jnp.float32
    B, D = hidden.shape
    K = params["w_pred"].shape[0]                 # num_states
    T = hist_loss.shape[1]
    H = params["w_hh"].shape[1]                   # router hidden size
    assert H <= HP, "router hidden_size must be <= 128 for this kernel"
    assert K <= HP, "num_states must be <= 128 for this kernel"
    H8 = _rup(H, 8)                               # sublane-granule contraction depth

    mm = matmul_dtype if matmul_dtype is not None else _default_matmul_dtype()

    # ---- weight packing (wrapper-side; weights are small/constant) -----------
    w_fc = params["w_fc"].astype(f32)                                  # [K, D+H]
    # fused hidden-side weight: preds block at lanes [0,K), fc block at [HP,HP+K)
    w_hid = jnp.zeros((D, 2 * HP), f32)
    w_hid = w_hid.at[:, 0:K].set(params["w_pred"].T.astype(f32))
    w_hid = w_hid.at[:, HP:HP + K].set(w_fc[:, :D].T)

    # GRU input weights: [K, G], gate g at output lanes [g*HP, g*HP+H)
    w_ih_t = params["w_ih"].T.astype(f32)                              # [K, 3H]
    wih_p = jnp.zeros((K, G), f32)
    for g in range(3):
        wih_p = wih_p.at[:, g * HP:g * HP + H].set(w_ih_t[:, g * H:(g + 1) * H])

    # GRU recurrent weights + fc hidden-part packed with an 8-row contraction:
    # [H8, G + HP]: whh at lanes [0,G), fc_recurrent at lanes [G, G+K)
    w_hh_t = params["w_hh"].T.astype(f32)                              # [H, 3H]
    whh_fcr = jnp.zeros((H8, G + HP), f32)
    for g in range(3):
        whh_fcr = whh_fcr.at[:H, g * HP:g * HP + H].set(w_hh_t[:, g * H:(g + 1) * H])
    whh_fcr = whh_fcr.at[:H, G:G + K].set(w_fc[:, D:].T)

    # biases: row0 = [b_pred@0 | b_fc@HP]; row1 = b_ih with b_hr/b_hz folded;
    # row2 = b_hn only (must stay inside the r*(...) term per torch GRU).
    b_ih = params["b_ih"].astype(f32)
    b_hh = params["b_hh"].astype(f32)
    b_all = jnp.zeros((3, G), f32)
    b_all = b_all.at[0, 0:K].set(params["b_pred"].astype(f32))
    b_all = b_all.at[0, HP:HP + K].set(params["b_fc"].astype(f32))
    for g in range(3):
        bg = b_ih[g * H:(g + 1) * H]
        if g < 2:
            bg = bg + b_hh[g * H:(g + 1) * H]
        b_all = b_all.at[1, g * HP:g * HP + H].set(bg)
    b_all = b_all.at[2, 0:H].set(b_hh[2 * H:3 * H])

    # ---- batch tiling: tiles <= 256 rows, even #grid-steps when B > 8 --------
    # ("parallel" batch axis -> both v7x TCs; VMEM stays well under 32 MiB)
    if B <= 8:
        B_tile = _rup(B, 8)
    else:
        nb_target = max(2, 2 * _cdiv(B, 512))        # even, keeps tiles <= ~256
        B_tile = min(256, _rup(_cdiv(B, nb_target), 8))
    nb = _cdiv(B, B_tile)
    B_pad = nb * B_tile

    if B_pad != B:
        pad = B_pad - B
        hidden = jnp.pad(hidden, ((0, pad), (0, 0)))
        hist_loss = jnp.pad(hist_loss, ((0, pad), (0, 0), (0, 0)))
        gumbels = jnp.pad(gumbels, ((0, pad), (0, 0)))

    hidden_in = hidden.astype(mm)
    hist_in = hist_loss.astype(mm).reshape(B_pad * T, K)   # sublane-dense [B*T, K]
    gumbels_in = gumbels.astype(f32)
    w_hid_in = w_hid.astype(mm)
    wih_in = wih_p.astype(mm)
    whh_in = whh_fcr.astype(mm)

    in_specs = [
        pl.BlockSpec((B_tile, D), lambda i: (i, 0)),          # hidden
        pl.BlockSpec((B_tile * T, K), lambda i: (i, 0)),      # hist_loss (flat)
        pl.BlockSpec((B_tile, K), lambda i: (i, 0)),          # gumbel noise
        pl.BlockSpec(w_hid_in.shape, lambda i: (0, 0)),       # resident weights
        pl.BlockSpec(wih_in.shape, lambda i: (0, 0)),
        pl.BlockSpec(whh_in.shape, lambda i: (0, 0)),
        pl.BlockSpec(b_all.shape, lambda i: (0, 0)),
    ]
    out_specs = (
        pl.BlockSpec((B_tile, K), lambda i: (i, 0)),
        pl.BlockSpec((B_tile, K), lambda i: (i, 0)),
        pl.BlockSpec((B_tile, K), lambda i: (i, 0)),
    )
    out_shape = (
        jax.ShapeDtypeStruct((B_pad, K), f32),
        jax.ShapeDtypeStruct((B_pad, K), f32),
        jax.ShapeDtypeStruct((B_pad, K), f32),
    )

    kernel = functools.partial(tra_kernel, float(tau), T, H8)
    preds, choice, prob = pl.pallas_call(
        kernel,
        out_shape=out_shape,
        grid=(nb,),
        in_specs=in_specs,
        out_specs=out_specs,
        compiler_params=pltpu.CompilerParams(
            dimension_semantics=("parallel",),
            vmem_limit_bytes=32 * 1024 * 1024),
    )(hidden_in, hist_in, gumbels_in, w_hid_in, wih_in, whh_in, b_all)

    if B_pad != B:
        preds, choice, prob = preds[:B], choice[:B], prob[:B]
    return preds, choice, prob


def tra_reference(params, hidden, hist_loss, gumbels, tau=1.0):
    """Pure-JAX forward mirroring the PyTorch module (for verification)."""
    f32 = jnp.float32
    hidden = hidden.astype(f32)
    hist = hist_loss.astype(f32)
    K = params["w_pred"].shape[0]
    H = params["w_hh"].shape[1]
    preds = hidden @ params["w_pred"].T.astype(f32) + params["b_pred"]
    w_ih, w_hh = params["w_ih"].astype(f32), params["w_hh"].astype(f32)
    b_ih, b_hh = params["b_ih"].astype(f32), params["b_hh"].astype(f32)
    B, T, _ = hist.shape
    h = jnp.zeros((B, H), f32)
    for t in range(T):
        x = hist[:, t, :]
        gx = x @ w_ih.T + b_ih
        gh = h @ w_hh.T + b_hh
        r = jax.nn.sigmoid(gx[:, :H] + gh[:, :H])
        z = jax.nn.sigmoid(gx[:, H:2 * H] + gh[:, H:2 * H])
        n = jnp.tanh(gx[:, 2 * H:] + r * gh[:, 2 * H:])
        h = (1.0 - z) * n + z * h
    out = jnp.concatenate([hidden, h], axis=-1) @ params["w_fc"].T.astype(f32) \
        + params["b_fc"]
    y = (out + gumbels) / tau
    choice = jax.nn.one_hot(jnp.argmax(y, axis=-1), K, dtype=f32)
    prob = jax.nn.softmax(out / tau, axis=-1)
    return preds, choice, prob


def init_params(key, input_size, num_states, hidden_size):
    """Deterministic init mimicking PyTorch default uniform(-1/sqrt(fan), 1/sqrt(fan))."""
    ks = jax.random.split(key, 8)

    def u(k, shape, bound):
        return jax.random.uniform(k, shape, jnp.float32, -bound, bound)

    kp = 1.0 / math.sqrt(input_size)
    kr = 1.0 / math.sqrt(hidden_size)
    kf = 1.0 / math.sqrt(hidden_size + input_size)
    return dict(
        w_pred=u(ks[0], (num_states, input_size), kp),       # predictors.weight
        b_pred=u(ks[1], (num_states,), kp),                  # predictors.bias
        w_ih=u(ks[2], (3 * hidden_size, num_states), kr),    # router.weight_ih_l0 (r,z,n)
        w_hh=u(ks[3], (3 * hidden_size, hidden_size), kr),   # router.weight_hh_l0
        b_ih=u(ks[4], (3 * hidden_size,), kr),
        b_hh=u(ks[5], (3 * hidden_size,), kr),
        w_fc=u(ks[6], (num_states, input_size + hidden_size), kf),  # fc.weight
        b_fc=u(ks[7], (num_states,), kf),                           # fc.bias
    )


if __name__ == "__main__":
    # small shapes consistent with TRA: input_size=32, num_states=4,
    # router hidden_size=8, batch=8, hist_loss seq len=8
    B, D, K, H, T = 8, 32, 4, 8, 8
    tau = 1.0

    key = jax.random.PRNGKey(0)
    k_par, k_hid, k_hist, k_gum = jax.random.split(key, 4)
    params = init_params(k_par, D, K, H)
    hidden = jax.random.normal(k_hid, (B, D), jnp.float32)
    hist_loss = jax.random.normal(k_hist, (B, T, K), jnp.float32)
    # TODO(synk): gumbel noise for F.gumbel_softmax is sampled outside the
    # kernel (deterministically) and added inside.
    gumbels = jax.random.gumbel(k_gum, (B, K), jnp.float32)

    # 1) f32-matmul path, checked against the pure-JAX reference.
    fwd_f32 = jax.jit(functools.partial(tra_forward, tau=tau,
                                        matmul_dtype=jnp.float32))
    preds, choice, prob = fwd_f32(params, hidden, hist_loss, gumbels)
    jax.block_until_ready((preds, choice, prob))
    r_preds, r_choice, r_prob = tra_reference(params, hidden, hist_loss, gumbels, tau)

    assert preds.shape == (B, K) and choice.shape == (B, K) and prob.shape == (B, K)
    assert bool(jnp.allclose(preds, r_preds, atol=1e-4))
    assert bool(jnp.allclose(prob, r_prob, atol=1e-4))
    assert bool(jnp.allclose(choice, r_choice))
    assert bool(jnp.allclose(jnp.sum(prob, axis=-1), 1.0, atol=1e-5))
    assert bool(jnp.allclose(jnp.sum(choice, axis=-1), 1.0))

    # 2) default path (bf16 MXU operands on v6e/v7x, f32 elsewhere).
    fwd = jax.jit(functools.partial(tra_forward, tau=tau))
    preds2, choice2, prob2 = fwd(params, hidden, hist_loss, gumbels)
    jax.block_until_ready((preds2, choice2, prob2))
    assert bool(jnp.allclose(jnp.sum(prob2, axis=-1), 1.0, atol=1e-4))
    assert bool(jnp.allclose(jnp.sum(choice2, axis=-1), 1.0))

    print("KERNEL_OK")
</pallas_src>

<mosaic_0001>
module attributes {stable_mosaic.version = 11 : i64} {
  func.func @tra_kernel(%arg0: i32, %arg1: memref<8x32xf32, #tpu.memory_space<vmem>>, %arg2: memref<64x4xf32, #tpu.memory_space<vmem>>, %arg3: memref<8x4xf32, #tpu.memory_space<vmem>>, %arg4: memref<32x256xf32, #tpu.memory_space<vmem>>, %arg5: memref<4x384xf32, #tpu.memory_space<vmem>>, %arg6: memref<8x512xf32, #tpu.memory_space<vmem>>, %arg7: memref<3x384xf32, #tpu.memory_space<vmem>>, %arg8: memref<8x4xf32, #tpu.memory_space<vmem>>, %arg9: memref<8x4xf32, #tpu.memory_space<vmem>>, %arg10: memref<8x4xf32, #tpu.memory_space<vmem>>) attributes {dimension_semantics = [#tpu.dimension_semantics<parallel>], iteration_bounds = array<i64: 1>, scalar_prefetch = 0 : i64, scratch_operands = 0 : i64, tpu.core_type = #tpu.core_type<tc>, window_params = [{transform_indices = @transform_0, window_bounds = array<i64: 8, 32>}, {transform_indices = @transform_1, window_bounds = array<i64: 64, 4>}, {transform_indices = @transform_2, window_bounds = array<i64: 8, 4>}, {pipeline_mode = #tpu.pipeline_mode<synchronous>, transform_indices = @transform_3, window_bounds = array<i64: 32, 256>}, {pipeline_mode = #tpu.pipeline_mode<synchronous>, transform_indices = @transform_4, window_bounds = array<i64: 4, 384>}, {pipeline_mode = #tpu.pipeline_mode<synchronous>, transform_indices = @transform_5, window_bounds = array<i64: 8, 512>}, {pipeline_mode = #tpu.pipeline_mode<synchronous>, transform_indices = @transform_6, window_bounds = array<i64: 3, 384>}, {transform_indices = @transform_7, window_bounds = array<i64: 8, 4>}, {transform_indices = @transform_8, window_bounds = array<i64: 8, 4>}, {transform_indices = @transform_9, window_bounds = array<i64: 8, 4>}]} {
    %c0 = arith.constant 0 : index
    %c0_0 = arith.constant 0 : index
    %0 = vector.load %arg1[%c0, %c0_0] : memref<8x32xf32, #tpu.memory_space<vmem>>, vector<8x32xf32>
    %c0_1 = arith.constant 0 : index
    %c0_2 = arith.constant 0 : index
    %1 = vector.load %arg2[%c0_1, %c0_2] : memref<64x4xf32, #tpu.memory_space<vmem>>, vector<64x4xf32>
    %c0_3 = arith.constant 0 : index
    %c0_4 = arith.constant 0 : index
    %2 = vector.load %arg3[%c0_3, %c0_4] : memref<8x4xf32, #tpu.memory_space<vmem>>, vector<8x4xf32>
    %c0_5 = arith.constant 0 : index
    %c0_6 = arith.constant 0 : index
    %3 = vector.load %arg7[%c0_5, %c0_6] : memref<3x384xf32, #tpu.memory_space<vmem>>, vector<3x384xf32>
    %4 = vector.extract_strided_slice %3 {offsets = [0, 0], sizes = [1, 256], strides = [1, 1]} : vector<3x384xf32> to vector<1x256xf32>
    %5 = vector.extract_strided_slice %3 {offsets = [1, 0], sizes = [1, 384], strides = [1, 1]} : vector<3x384xf32> to vector<1x384xf32>
    %c0_7 = arith.constant 0 : index
    %c0_8 = arith.constant 0 : index
    %6 = vector.load %arg4[%c0_7, %c0_8] : memref<32x256xf32, #tpu.memory_space<vmem>>, vector<32x256xf32>
    %cst = arith.constant dense<0.000000e+00> : vector<8x256xf32>
    %7 = tpu.matmul %0, %6, %cst {dimension_numbers = #tpu.dot_dimension_numbers<[1], [0], [0], [1], [0, 0, 1, 1], [], []>} : vector<8x32xf32>, vector<32x256xf32>, vector<8x256xf32> -> vector<8x256xf32>
    %8 = vector.broadcast %4 : vector<1x256xf32> to vector<8x256xf32>
    %9 = arith.addf %7, %8 : vector<8x256xf32>
    %10 = vector.extract_strided_slice %9 {offsets = [0, 0], sizes = [8, 4], strides = [1, 1]} : vector<8x256xf32> to vector<8x4xf32>
    %11 = vector.extract_strided_slice %9 {offsets = [0, 128], sizes = [8, 4], strides = [1, 1]} : vector<8x256xf32> to vector<8x4xf32>
    %c0_9 = arith.constant 0 : index
    %c0_10 = arith.constant 0 : index
    %12 = vector.load %arg5[%c0_9, %c0_10] : memref<4x384xf32, #tpu.memory_space<vmem>>, vector<4x384xf32>
    %cst_11 = arith.constant dense<0.000000e+00> : vector<64x384xf32>
    %13 = tpu.matmul %1, %12, %cst_11 {dimension_numbers = #tpu.dot_dimension_numbers<[1], [0], [0], [1], [0, 0, 1, 1], [], []>} : vector<64x4xf32>, vector<4x384xf32>, vector<64x384xf32> -> vector<64x384xf32>
    %14 = vector.broadcast %5 : vector<1x384xf32> to vector<64x384xf32>
    %15 = arith.addf %13, %14 : vector<64x384xf32>
    %16 = vector.shape_cast %15 : vector<64x384xf32> to vector<8x8x384xf32>
    %c0_12 = arith.constant 0 : index
    %c0_13 = arith.constant 0 : index
    %17 = vector.load %arg6[%c0_12, %c0_13] : memref<8x512xf32, #tpu.memory_space<vmem>>, vector<8x512xf32>
    %18 = vector.extract_strided_slice %17 {offsets = [0, 0], sizes = [8, 384], strides = [1, 1]} : vector<8x512xf32> to vector<8x384xf32>
    %19 = vector.extract_strided_slice %17 {offsets = [0, 384], sizes = [8, 4], strides = [1, 1]} : vector<8x512xf32> to vector<8x4xf32>
    %20 = vector.extract_strided_slice %3 {offsets = [2, 0], sizes = [1, 8], strides = [1, 1]} : vector<3x384xf32> to vector<1x8xf32>
    %21 = vector.shape_cast %20 : vector<1x8xf32> to vector<1x8xf32>
    %22 = vector.broadcast %21 : vector<1x8xf32> to vector<8x8xf32>
    %23 = vector.extract_strided_slice %16 {offsets = [0, 0, 0], sizes = [8, 1, 8], strides = [1, 1, 1]} : vector<8x8x384xf32> to vector<8x1x8xf32>
    %24 = vector.shape_cast %23 : vector<8x1x8xf32> to vector<8x8xf32>
    %25 = vector.extract_strided_slice %16 {offsets = [0, 0, 128], sizes = [8, 1, 8], strides = [1, 1, 1]} : vector<8x8x384xf32> to vector<8x1x8xf32>
    %26 = vector.shape_cast %25 : vector<8x1x8xf32> to vector<8x8xf32>
    %27 = vector.extract_strided_slice %16 {offsets = [0, 0, 256], sizes = [8, 1, 8], strides = [1, 1, 1]} : vector<8x8x384xf32> to vector<8x1x8xf32>
    %28 = vector.shape_cast %27 : vector<8x1x8xf32> to vector<8x8xf32>
    %29 = arith.negf %24 : vector<8x8xf32>
    %30 = math.exp %29 : vector<8x8xf32>
    %cst_14 = arith.constant 1.000000e+00 : f32
    %31 = vector.broadcast %cst_14 : f32 to vector<8x8xf32>
    %32 = arith.addf %31, %30 : vector<8x8xf32>
    %33 = arith.divf %31, %32 : vector<8x8xf32>
    %34 = arith.negf %26 : vector<8x8xf32>
    %35 = math.exp %34 : vector<8x8xf32>
    %cst_15 = arith.constant 1.000000e+00 : f32
    %36 = vector.broadcast %cst_15 : f32 to vector<8x8xf32>
    %37 = arith.addf %36, %35 : vector<8x8xf32>
    %38 = arith.divf %36, %37 : vector<8x8xf32>
    %39 = arith.mulf %33, %22 : vector<8x8xf32>
    %40 = arith.addf %28, %39 : vector<8x8xf32>
    %41 = math.tanh %40 : vector<8x8xf32>
    %cst_16 = arith.constant 1.000000e+00 : f32
    %42 = vector.broadcast %cst_16 : f32 to vector<8x8xf32>
    %43 = arith.subf %42, %38 : vector<8x8xf32>
    %44 = arith.mulf %43, %41 : vector<8x8xf32>
    %45 = vector.extract_strided_slice %16 {offsets = [0, 1, 0], sizes = [8, 1, 8], strides = [1, 1, 1]} : vector<8x8x384xf32> to vector<8x1x8xf32>
    %46 = vector.shape_cast %45 : vector<8x1x8xf32> to vector<8x8xf32>
    %47 = vector.extract_strided_slice %16 {offsets = [0, 1, 128], sizes = [8, 1, 8], strides = [1, 1, 1]} : vector<8x8x384xf32> to vector<8x1x8xf32>
    %48 = vector.shape_cast %47 : vector<8x1x8xf32> to vector<8x8xf32>
    %49 = vector.extract_strided_slice %16 {offsets = [0, 1, 256], sizes = [8, 1, 8], strides = [1, 1, 1]} : vector<8x8x384xf32> to vector<8x1x8xf32>
    %50 = vector.shape_cast %49 : vector<8x1x8xf32> to vector<8x8xf32>
    %cst_17 = arith.constant dense<0.000000e+00> : vector<8x384xf32>
    %51 = tpu.matmul %44, %18, %cst_17 {dimension_numbers = #tpu.dot_dimension_numbers<[1], [0], [0], [1], [0, 0, 1, 1], [], []>} : vector<8x8xf32>, vector<8x384xf32>, vector<8x384xf32> -> vector<8x384xf32>
    %52 = vector.extract_strided_slice %51 {offsets = [0, 0], sizes = [8, 8], strides = [1, 1]} : vector<8x384xf32> to vector<8x8xf32>
    %53 = arith.addf %46, %52 : vector<8x8xf32>
    %54 = arith.negf %53 : vector<8x8xf32>
    %55 = math.exp %54 : vector<8x8xf32>
    %cst_18 = arith.constant 1.000000e+00 : f32
    %56 = vector.broadcast %cst_18 : f32 to vector<8x8xf32>
    %57 = arith.addf %56, %55 : vector<8x8xf32>
    %58 = arith.divf %56, %57 : vector<8x8xf32>
    %59 = vector.extract_strided_slice %51 {offsets = [0, 128], sizes = [8, 8], strides = [1, 1]} : vector<8x384xf32> to vector<8x8xf32>
    %60 = arith.addf %48, %59 : vector<8x8xf32>
    %61 = arith.negf %60 : vector<8x8xf32>
    %62 = math.exp %61 : vector<8x8xf32>
    %cst_19 = arith.constant 1.000000e+00 : f32
    %63 = vector.broadcast %cst_19 : f32 to vector<8x8xf32>
    %64 = arith.addf %63, %62 : vector<8x8xf32>
    %65 = arith.divf %63, %64 : vector<8x8xf32>
    %66 = vector.extract_strided_slice %51 {offsets = [0, 256], sizes = [8, 8], strides = [1, 1]} : vector<8x384xf32> to vector<8x8xf32>
    %67 = arith.addf %66, %22 : vector<8x8xf32>
    %68 = arith.mulf %58, %67 : vector<8x8xf32>
    %69 = arith.addf %50, %68 : vector<8x8xf32>
    %70 = math.tanh %69 : vector<8x8xf32>
    %cst_20 = arith.constant 1.000000e+00 : f32
    %71 = vector.broadcast %cst_20 : f32 to vector<8x8xf32>
    %72 = arith.subf %71, %65 : vector<8x8xf32>
    %73 = arith.mulf %72, %70 : vector<8x8xf32>
    %74 = arith.mulf %65, %44 : vector<8x8xf32>
    %75 = arith.addf %73, %74 : vector<8x8xf32>
    %76 = vector.extract_strided_slice %16 {offsets = [0, 2, 0], sizes = [8, 1, 8], strides = [1, 1, 1]} : vector<8x8x384xf32> to vector<8x1x8xf32>
    %77 = vector.shape_cast %76 : vector<8x1x8xf32> to vector<8x8xf32>
    %78 = vector.extract_strided_slice %16 {offsets = [0, 2, 128], sizes = [8, 1, 8], strides = [1, 1, 1]} : vector<8x8x384xf32> to vector<8x1x8xf32>
    %79 = vector.shape_cast %78 : vector<8x1x8xf32> to vector<8x8xf32>
    %80 = vector.extract_strided_slice %16 {offsets = [0, 2, 256], sizes = [8, 1, 8], strides = [1, 1, 1]} : vector<8x8x384xf32> to vector<8x1x8xf32>
    %81 = vector.shape_cast %80 : vector<8x1x8xf32> to vector<8x8xf32>
    %cst_21 = arith.constant dense<0.000000e+00> : vector<8x384xf32>
    %82 = tpu.matmul %75, %18, %cst_21 {dimension_numbers = #tpu.dot_dimension_numbers<[1], [0], [0], [1], [0, 0, 1, 1], [], []>} : vector<8x8xf32>, vector<8x384xf32>, vector<8x384xf32> -> vector<8x384xf32>
    %83 = vector.extract_strided_slice %82 {offsets = [0, 0], sizes = [8, 8], strides = [1, 1]} : vector<8x384xf32> to vector<8x8xf32>
    %84 = arith.addf %77, %83 : vector<8x8xf32>
    %85 = arith.negf %84 : vector<8x8xf32>
    %86 = math.exp %85 : vector<8x8xf32>
    %cst_22 = arith.constant 1.000000e+00 : f32
    %87 = vector.broadcast %cst_22 : f32 to vector<8x8xf32>
    %88 = arith.addf %87, %86 : vector<8x8xf32>
    %89 = arith.divf %87, %88 : vector<8x8xf32>
    %90 = vector.extract_strided_slice %82 {offsets = [0, 128], sizes = [8, 8], strides = [1, 1]} : vector<8x384xf32> to vector<8x8xf32>
    %91 = arith.addf %79, %90 : vector<8x8xf32>
    %92 = arith.negf %91 : vector<8x8xf32>
    %93 = math.exp %92 : vector<8x8xf32>
    %cst_23 = arith.constant 1.000000e+00 : f32
    %94 = vector.broadcast %cst_23 : f32 to vector<8x8xf32>
    %95 = arith.addf %94, %93 : vector<8x8xf32>
    %96 = arith.divf %94, %95 : vector<8x8xf32>
    %97 = vector.extract_strided_slice %82 {offsets = [0, 256], sizes = [8, 8], strides = [1, 1]} : vector<8x384xf32> to vector<8x8xf32>
    %98 = arith.addf %97, %22 : vector<8x8xf32>
    %99 = arith.mulf %89, %98 : vector<8x8xf32>
    %100 = arith.addf %81, %99 : vector<8x8xf32>
    %101 = math.tanh %100 : vector<8x8xf32>
    %cst_24 = arith.constant 1.000000e+00 : f32
    %102 = vector.broadcast %cst_24 : f32 to vector<8x8xf32>
    %103 = arith.subf %102, %96 : vector<8x8xf32>
    %104 = arith.mulf %103, %101 : vector<8x8xf32>
    %105 = arith.mulf %96, %75 : vector<8x8xf32>
    %106 = arith.addf %104, %105 : vector<8x8xf32>
    %107 = vector.extract_strided_slice %16 {offsets = [0, 3, 0], sizes = [8, 1, 8], strides = [1, 1, 1]} : vector<8x8x384xf32> to vector<8x1x8xf32>
    %108 = vector.shape_cast %107 : vector<8x1x8xf32> to vector<8x8xf32>
    %109 = vector.extract_strided_slice %16 {offsets = [0, 3, 128], sizes = [8, 1, 8], strides = [1, 1, 1]} : vector<8x8x384xf32> to vector<8x1x8xf32>
    %110 = vector.shape_cast %109 : vector<8x1x8xf32> to vector<8x8xf32>
    %111 = vector.extract_strided_slice %16 {offsets = [0, 3, 256], sizes = [8, 1, 8], strides = [1, 1, 1]} : vector<8x8x384xf32> to vector<8x1x8xf32>
    %112 = vector.shape_cast %111 : vector<8x1x8xf32> to vector<8x8xf32>
    %cst_25 = arith.constant dense<0.000000e+00> : vector<8x384xf32>
    %113 = tpu.matmul %106, %18, %cst_25 {dimension_numbers = #tpu.dot_dimension_numbers<[1], [0], [0], [1], [0, 0, 1, 1], [], []>} : vector<8x8xf32>, vector<8x384xf32>, vector<8x384xf32> -> vector<8x384xf32>
    %114 = vector.extract_strided_slice %113 {offsets = [0, 0], sizes = [8, 8], strides = [1, 1]} : vector<8x384xf32> to vector<8x8xf32>
    %115 = arith.addf %108, %114 : vector<8x8xf32>
    %116 = arith.negf %115 : vector<8x8xf32>
    %117 = math.exp %116 : vector<8x8xf32>
    %cst_26 = arith.constant 1.000000e+00 : f32
    %118 = vector.broadcast %cst_26 : f32 to vector<8x8xf32>
    %119 = arith.addf %118, %117 : vector<8x8xf32>
    %120 = arith.divf %118, %119 : vector<8x8xf32>
    %121 = vector.extract_strided_slice %113 {offsets = [0, 128], sizes = [8, 8], strides = [1, 1]} : vector<8x384xf32> to vector<8x8xf32>
    %122 = arith.addf %110, %121 : vector<8x8xf32>
    %123 = arith.negf %122 : vector<8x8xf32>
    %124 = math.exp %123 : vector<8x8xf32>
    %cst_27 = arith.constant 1.000000e+00 : f32
    %125 = vector.broadcast %cst_27 : f32 to vector<8x8xf32>
    %126 = arith.addf %125, %124 : vector<8x8xf32>
    %127 = arith.divf %125, %126 : vector<8x8xf32>
    %128 = vector.extract_strided_slice %113 {offsets = [0, 256], sizes = [8, 8], strides = [1, 1]} : vector<8x384xf32> to vector<8x8xf32>
    %129 = arith.addf %128, %22 : vector<8x8xf32>
    %130 = arith.mulf %120, %129 : vector<8x8xf32>
    %131 = arith.addf %112, %130 : vector<8x8xf32>
    %132 = math.tanh %131 : vector<8x8xf32>
    %cst_28 = arith.constant 1.000000e+00 : f32
    %133 = vector.broadcast %cst_28 : f32 to vector<8x8xf32>
    %134 = arith.subf %133, %127 : vector<8x8xf32>
    %135 = arith.mulf %134, %132 : vector<8x8xf32>
    %136 = arith.mulf %127, %106 : vector<8x8xf32>
    %137 = arith.addf %135, %136 : vector<8x8xf32>
    %138 = vector.extract_strided_slice %16 {offsets = [0, 4, 0], sizes = [8, 1, 8], strides = [1, 1, 1]} : vector<8x8x384xf32> to vector<8x1x8xf32>
    %139 = vector.shape_cast %138 : vector<8x1x8xf32> to vector<8x8xf32>
    %140 = vector.extract_strided_slice %16 {offsets = [0, 4, 128], sizes = [8, 1, 8], strides = [1, 1, 1]} : vector<8x8x384xf32> to vector<8x1x8xf32>
    %141 = vector.shape_cast %140 : vector<8x1x8xf32> to vector<8x8xf32>
    %142 = vector.extract_strided_slice %16 {offsets = [0, 4, 256], sizes = [8, 1, 8], strides = [1, 1, 1]} : vector<8x8x384xf32> to vector<8x1x8xf32>
    %143 = vector.shape_cast %142 : vector<8x1x8xf32> to vector<8x8xf32>
    %cst_29 = arith.constant dense<0.000000e+00> : vector<8x384xf32>
    %144 = tpu.matmul %137, %18, %cst_29 {dimension_numbers = #tpu.dot_dimension_numbers<[1], [0], [0], [1], [0, 0, 1, 1], [], []>} : vector<8x8xf32>, vector<8x384xf32>, vector<8x384xf32> -> vector<8x384xf32>
    %145 = vector.extract_strided_slice %144 {offsets = [0, 0], sizes = [8, 8], strides = [1, 1]} : vector<8x384xf32> to vector<8x8xf32>
    %146 = arith.addf %139, %145 : vector<8x8xf32>
    %147 = arith.negf %146 : vector<8x8xf32>
    %148 = math.exp %147 : vector<8x8xf32>
    %cst_30 = arith.constant 1.000000e+00 : f32
    %149 = vector.broadcast %cst_30 : f32 to vector<8x8xf32>
    %150 = arith.addf %149, %148 : vector<8x8xf32>
    %151 = arith.divf %149, %150 : vector<8x8xf32>
    %152 = vector.extract_strided_slice %144 {offsets = [0, 128], sizes = [8, 8], strides = [1, 1]} : vector<8x384xf32> to vector<8x8xf32>
    %153 = arith.addf %141, %152 : vector<8x8xf32>
    %154 = arith.negf %153 : vector<8x8xf32>
    %155 = math.exp %154 : vector<8x8xf32>
    %cst_31 = arith.constant 1.000000e+00 : f32
    %156 = vector.broadcast %cst_31 : f32 to vector<8x8xf32>
    %157 = arith.addf %156, %155 : vector<8x8xf32>
    %158 = arith.divf %156, %157 : vector<8x8xf32>
    %159 = vector.extract_strided_slice %144 {offsets = [0, 256], sizes = [8, 8], strides = [1, 1]} : vector<8x384xf32> to vector<8x8xf32>
    %160 = arith.addf %159, %22 : vector<8x8xf32>
    %161 = arith.mulf %151, %160 : vector<8x8xf32>
    %162 = arith.addf %143, %161 : vector<8x8xf32>
    %163 = math.tanh %162 : vector<8x8xf32>
    %cst_32 = arith.constant 1.000000e+00 : f32
    %164 = vector.broadcast %cst_32 : f32 to vector<8x8xf32>
    %165 = arith.subf %164, %158 : vector<8x8xf32>
    %166 = arith.mulf %165, %163 : vector<8x8xf32>
    %167 = arith.mulf %158, %137 : vector<8x8xf32>
    %168 = arith.addf %166, %167 : vector<8x8xf32>
    %169 = vector.extract_strided_slice %16 {offsets = [0, 5, 0], sizes = [8, 1, 8], strides = [1, 1, 1]} : vector<8x8x384xf32> to vector<8x1x8xf32>
    %170 = vector.shape_cast %169 : vector<8x1x8xf32> to vector<8x8xf32>
    %171 = vector.extract_strided_slice %16 {offsets = [0, 5, 128], sizes = [8, 1, 8], strides = [1, 1, 1]} : vector<8x8x384xf32> to vector<8x1x8xf32>
    %172 = vector.shape_cast %171 : vector<8x1x8xf32> to vector<8x8xf32>
    %173 = vector.extract_strided_slice %16 {offsets = [0, 5, 256], sizes = [8, 1, 8], strides = [1, 1, 1]} : vector<8x8x384xf32> to vector<8x1x8xf32>
    %174 = vector.shape_cast %173 : vector<8x1x8xf32> to vector<8x8xf32>
    %cst_33 = arith.constant dense<0.000000e+00> : vector<8x384xf32>
    %175 = tpu.matmul %168, %18, %cst_33 {dimension_numbers = #tpu.dot_dimension_numbers<[1], [0], [0], [1], [0, 0, 1, 1], [], []>} : vector<8x8xf32>, vector<8x384xf32>, vector<8x384xf32> -> vector<8x384xf32>
    %176 = vector.extract_strided_slice %175 {offsets = [0, 0], sizes = [8, 8], strides = [1, 1]} : vector<8x384xf32> to vector<8x8xf32>
    %177 = arith.addf %170, %176 : vector<8x8xf32>
    %178 = arith.negf %177 : vector<8x8xf32>
    %179 = math.exp %178 : vector<8x8xf32>
    %cst_34 = arith.constant 1.000000e+00 : f32
    %180 = vector.broadcast %cst_34 : f32 to vector<8x8xf32>
    %181 = arith.addf %180, %179 : vector<8x8xf32>
    %182 = arith.divf %180, %181 : vector<8x8xf32>
    %183 = vector.extract_strided_slice %175 {offsets = [0, 128], sizes = [8, 8], strides = [1, 1]} : vector<8x384xf32> to vector<8x8xf32>
    %184 = arith.addf %172, %183 : vector<8x8xf32>
    %185 = arith.negf %184 : vector<8x8xf32>
    %186 = math.exp %185 : vector<8x8xf32>
    %cst_35 = arith.constant 1.000000e+00 : f32
    %187 = vector.broadcast %cst_35 : f32 to vector<8x8xf32>
    %188 = arith.addf %187, %186 : vector<8x8xf32>
    %189 = arith.divf %187, %188 : vector<8x8xf32>
    %190 = vector.extract_strided_slice %175 {offsets = [0, 256], sizes = [8, 8], strides = [1, 1]} : vector<8x384xf32> to vector<8x8xf32>
    %191 = arith.addf %190, %22 : vector<8x8xf32>
    %192 = arith.mulf %182, %191 : vector<8x8xf32>
    %193 = arith.addf %174, %192 : vector<8x8xf32>
    %194 = math.tanh %193 : vector<8x8xf32>
    %cst_36 = arith.constant 1.000000e+00 : f32
    %195 = vector.broadcast %cst_36 : f32 to vector<8x8xf32>
    %196 = arith.subf %195, %189 : vector<8x8xf32>
    %197 = arith.mulf %196, %194 : vector<8x8xf32>
    %198 = arith.mulf %189, %168 : vector<8x8xf32>
    %199 = arith.addf %197, %198 : vector<8x8xf32>
    %200 = vector.extract_strided_slice %16 {offsets = [0, 6, 0], sizes = [8, 1, 8], strides = [1, 1, 1]} : vector<8x8x384xf32> to vector<8x1x8xf32>
    %201 = vector.shape_cast %200 : vector<8x1x8xf32> to vector<8x8xf32>
    %202 = vector.extract_strided_slice %16 {offsets = [0, 6, 128], sizes = [8, 1, 8], strides = [1, 1, 1]} : vector<8x8x384xf32> to vector<8x1x8xf32>
    %203 = vector.shape_cast %202 : vector<8x1x8xf32> to vector<8x8xf32>
    %204 = vector.extract_strided_slice %16 {offsets = [0, 6, 256], sizes = [8, 1, 8], strides = [1, 1, 1]} : vector<8x8x384xf32> to vector<8x1x8xf32>
    %205 = vector.shape_cast %204 : vector<8x1x8xf32> to vector<8x8xf32>
    %cst_37 = arith.constant dense<0.000000e+00> : vector<8x384xf32>
    %206 = tpu.matmul %199, %18, %cst_37 {dimension_numbers = #tpu.dot_dimension_numbers<[1], [0], [0], [1], [0, 0, 1, 1], [], []>} : vector<8x8xf32>, vector<8x384xf32>, vector<8x384xf32> -> vector<8x384xf32>
    %207 = vector.extract_strided_slice %206 {offsets = [0, 0], sizes = [8, 8], strides = [1, 1]} : vector<8x384xf32> to vector<8x8xf32>
    %208 = arith.addf %201, %207 : vector<8x8xf32>
    %209 = arith.negf %208 : vector<8x8xf32>
    %210 = math.exp %209 : vector<8x8xf32>
    %cst_38 = arith.constant 1.000000e+00 : f32
    %211 = vector.broadcast %cst_38 : f32 to vector<8x8xf32>
    %212 = arith.addf %211, %210 : vector<8x8xf32>
    %213 = arith.divf %211, %212 : vector<8x8xf32>
    %214 = vector.extract_strided_slice %206 {offsets = [0, 128], sizes = [8, 8], strides = [1, 1]} : vector<8x384xf32> to vector<8x8xf32>
    %215 = arith.addf %203, %214 : vector<8x8xf32>
    %216 = arith.negf %215 : vector<8x8xf32>
    %217 = math.exp %216 : vector<8x8xf32>
    %cst_39 = arith.constant 1.000000e+00 : f32
    %218 = vector.broadcast %cst_39 : f32 to vector<8x8xf32>
    %219 = arith.addf %218, %217 : vector<8x8xf32>
    %220 = arith.divf %218, %219 : vector<8x8xf32>
    %221 = vector.extract_strided_slice %206 {offsets = [0, 256], sizes = [8, 8], strides = [1, 1]} : vector<8x384xf32> to vector<8x8xf32>
    %222 = arith.addf %221, %22 : vector<8x8xf32>
    %223 = arith.mulf %213, %222 : vector<8x8xf32>
    %224 = arith.addf %205, %223 : vector<8x8xf32>
    %225 = math.tanh %224 : vector<8x8xf32>
    %cst_40 = arith.constant 1.000000e+00 : f32
    %226 = vector.broadcast %cst_40 : f32 to vector<8x8xf32>
    %227 = arith.subf %226, %220 : vector<8x8xf32>
    %228 = arith.mulf %227, %225 : vector<8x8xf32>
    %229 = arith.mulf %220, %199 : vector<8x8xf32>
    %230 = arith.addf %228, %229 : vector<8x8xf32>
    %231 = vector.extract_strided_slice %16 {offsets = [0, 7, 0], sizes = [8, 1, 8], strides = [1, 1, 1]} : vector<8x8x384xf32> to vector<8x1x8xf32>
    %232 = vector.shape_cast %231 : vector<8x1x8xf32> to vector<8x8xf32>
    %233 = vector.extract_strided_slice %16 {offsets = [0, 7, 128], sizes = [8, 1, 8], strides = [1, 1, 1]} : vector<8x8x384xf32> to vector<8x1x8xf32>
    %234 = vector.shape_cast %233 : vector<8x1x8xf32> to vector<8x8xf32>
    %235 = vector.extract_strided_slice %16 {offsets = [0, 7, 256], sizes = [8, 1, 8], strides = [1, 1, 1]} : vector<8x8x384xf32> to vector<8x1x8xf32>
    %236 = vector.shape_cast %235 : vector<8x1x8xf32> to vector<8x8xf32>
    %cst_41 = arith.constant dense<0.000000e+00> : vector<8x384xf32>
    %237 = tpu.matmul %230, %18, %cst_41 {dimension_numbers = #tpu.dot_dimension_numbers<[1], [0], [0], [1], [0, 0, 1, 1], [], []>} : vector<8x8xf32>, vector<8x384xf32>, vector<8x384xf32> -> vector<8x384xf32>
    %238 = vector.extract_strided_slice %237 {offsets = [0, 0], sizes = [8, 8], strides = [1, 1]} : vector<8x384xf32> to vector<8x8xf32>
    %239 = arith.addf %232, %238 : vector<8x8xf32>
    %240 = arith.negf %239 : vector<8x8xf32>
    %241 = math.exp %240 : vector<8x8xf32>
    %cst_42 = arith.constant 1.000000e+00 : f32
    %242 = vector.broadcast %cst_42 : f32 to vector<8x8xf32>
    %243 = arith.addf %242, %241 : vector<8x8xf32>
    %244 = arith.divf %242, %243 : vector<8x8xf32>
    %245 = vector.extract_strided_slice %237 {offsets = [0, 128], sizes = [8, 8], strides = [1, 1]} : vector<8x384xf32> to vector<8x8xf32>
    %246 = arith.addf %234, %245 : vector<8x8xf32>
    %247 = arith.negf %246 : vector<8x8xf32>
    %248 = math.exp %247 : vector<8x8xf32>
    %cst_43 = arith.constant 1.000000e+00 : f32
    %249 = vector.broadcast %cst_43 : f32 to vector<8x8xf32>
    %250 = arith.addf %249, %248 : vector<8x8xf32>
    %251 = arith.divf %249, %250 : vector<8x8xf32>
    %252 = vector.extract_strided_slice %237 {offsets = [0, 256], sizes = [8, 8], strides = [1, 1]} : vector<8x384xf32> to vector<8x8xf32>
    %253 = arith.addf %252, %22 : vector<8x8xf32>
    %254 = arith.mulf %244, %253 : vector<8x8xf32>
    %255 = arith.addf %236, %254 : vector<8x8xf32>
    %256 = math.tanh %255 : vector<8x8xf32>
    %cst_44 = arith.constant 1.000000e+00 : f32
    %257 = vector.broadcast %cst_44 : f32 to vector<8x8xf32>
    %258 = arith.subf %257, %251 : vector<8x8xf32>
    %259 = arith.mulf %258, %256 : vector<8x8xf32>
    %260 = arith.mulf %251, %230 : vector<8x8xf32>
    %261 = arith.addf %259, %260 : vector<8x8xf32>
    %cst_45 = arith.constant dense<0.000000e+00> : vector<8x4xf32>
    %262 = tpu.matmul %261, %19, %cst_45 {dimension_numbers = #tpu.dot_dimension_numbers<[1], [0], [0], [1], [0, 0, 1, 1], [], []>} : vector<8x8xf32>, vector<8x4xf32>, vector<8x4xf32> -> vector<8x4xf32>
    %263 = arith.addf %11, %262 : vector<8x4xf32>
    %264 = arith.addf %263, %2 : vector<8x4xf32>
    %cst_46 = arith.constant 1.000000e+00 : f32
    %265 = vector.broadcast %cst_46 : f32 to vector<8x4xf32>
    %266 = arith.mulf %264, %265 : vector<8x4xf32>
    %267 = tpu.iota {dimensions = array<i32: 1>} : vector<8x4xi32>
    %cst_47 = arith.constant dense<0xFF800000> : vector<8xf32>
    %268 = vector.multi_reduction <maximumf>, %266, %cst_47 [1] : vector<8x4xf32> to vector<8xf32>
    %269 = vector.shape_cast %268 : vector<8xf32> to vector<8x1xf32>
    %270 = vector.broadcast %269 : vector<8x1xf32> to vector<8x4xf32>
    %271 = arith.cmpf oeq, %266, %270 : vector<8x4xf32>
    %c4_i32 = arith.constant 4 : i32
    %272 = vector.broadcast %c4_i32 : i32 to vector<8x4xi32>
    %273 = arith.select %271, %267, %272 : vector<8x4xi1>, vector<8x4xi32>
    %cst_48 = arith.constant dense<2147483647> : vector<8xi32>
    %274 = vector.multi_reduction <minsi>, %273, %cst_48 [1] : vector<8x4xi32> to vector<8xi32>
    %275 = vector.shape_cast %274 : vector<8xi32> to vector<8x1xi32>
    %276 = vector.broadcast %275 : vector<8x1xi32> to vector<8x4xi32>
    %277 = arith.cmpi eq, %267, %276 : vector<8x4xi32>
    %278 = arith.extui %277 : vector<8x4xi1> to vector<8x4xi32>
    %279 = arith.sitofp %278 : vector<8x4xi32> to vector<8x4xf32>
    %cst_49 = arith.constant 1.000000e+00 : f32
    %280 = vector.broadcast %cst_49 : f32 to vector<8x4xf32>
    %281 = arith.mulf %263, %280 : vector<8x4xf32>
    %cst_50 = arith.constant dense<0xFF800000> : vector<8xf32>
    %282 = vector.multi_reduction <maximumf>, %281, %cst_50 [1] : vector<8x4xf32> to vector<8xf32>
    %283 = vector.shape_cast %282 : vector<8xf32> to vector<8x1xf32>
    %284 = vector.broadcast %283 : vector<8x1xf32> to vector<8x4xf32>
    %285 = arith.subf %281, %284 : vector<8x4xf32>
    %286 = math.exp %285 : vector<8x4xf32>
    %cst_51 = arith.constant dense<0.000000e+00> : vector<8xf32>
    %287 = vector.multi_reduction <add>, %286, %cst_51 [1] : vector<8x4xf32> to vector<8xf32>
    %288 = vector.shape_cast %287 : vector<8xf32> to vector<8x1xf32>
    %289 = vector.broadcast %288 : vector<8x1xf32> to vector<8x4xf32>
    %290 = arith.divf %286, %289 : vector<8x4xf32>
    %c0_52 = arith.constant 0 : index
    %c0_53 = arith.constant 0 : index
    %291 = vector.load %arg8[%c0_52, %c0_53] : memref<8x4xf32, #tpu.memory_space<vmem>>, vector<8x4xf32>
    tpu.vector_store %arg8[%c0_52, %c0_53], %10 {strides = array<i32>} : memref<8x4xf32, #tpu.memory_space<vmem>>, vector<8x4xf32>,
    %c0_54 = arith.constant 0 : index
    %c0_55 = arith.constant 0 : index
    %292 = vector.load %arg9[%c0_54, %c0_55] : memref<8x4xf32, #tpu.memory_space<vmem>>, vector<8x4xf32>
    tpu.vector_store %arg9[%c0_54, %c0_55], %279 {strides = array<i32>} : memref<8x4xf32, #tpu.memory_space<vmem>>, vector<8x4xf32>,
    %c0_56 = arith.constant 0 : index
    %c0_57 = arith.constant 0 : index
    %293 = vector.load %arg10[%c0_56, %c0_57] : memref<8x4xf32, #tpu.memory_space<vmem>>, vector<8x4xf32>
    tpu.vector_store %arg10[%c0_56, %c0_57], %290 {strides = array<i32>} : memref<8x4xf32, #tpu.memory_space<vmem>>, vector<8x4xf32>,
    return
  }
  func.func @transform_0(%arg0: i32) -> (i32, i32) {
    %c0_i32 = arith.constant 0 : i32
    %c0_i32_0 = arith.constant 0 : i32
    return %arg0, %c0_i32 : i32, i32
  }
  func.func @transform_1(%arg0: i32) -> (i32, i32) {
    %c0_i32 = arith.constant 0 : i32
    %c0_i32_0 = arith.constant 0 : i32
    return %arg0, %c0_i32 : i32, i32
  }
  func.func @transform_2(%arg0: i32) -> (i32, i32) {
    %c0_i32 = arith.constant 0 : i32
    %c0_i32_0 = arith.constant 0 : i32
    return %arg0, %c0_i32 : i32, i32
  }
  func.func @transform_3(%arg0: i32) -> (i32, i32) {
    %c0_i32 = arith.constant 0 : i32
    %c0_i32_0 = arith.constant 0 : i32
    %c0_i32_1 = arith.constant 0 : i32
    return %c0_i32, %c0_i32_0 : i32, i32
  }
  func.func @transform_4(%arg0: i32) -> (i32, i32) {
    %c0_i32 = arith.constant 0 : i32
    %c0_i32_0 = arith.constant 0 : i32
    %c0_i32_1 = arith.constant 0 : i32
    return %c0_i32, %c0_i32_0 : i32, i32
  }
  func.func @transform_5(%arg0: i32) -> (i32, i32) {
    %c0_i32 = arith.constant 0 : i32
    %c0_i32_0 = arith.constant 0 : i32
    %c0_i32_1 = arith.constant 0 : i32
    return %c0_i32, %c0_i32_0 : i32, i32
  }
  func.func @transform_6(%arg0: i32) -> (i32, i32) {
    %c0_i32 = arith.constant 0 : i32
    %c0_i32_0 = arith.constant 0 : i32
    %c0_i32_1 = arith.constant 0 : i32
    return %c0_i32, %c0_i32_0 : i32, i32
  }
  func.func @transform_7(%arg0: i32) -> (i32, i32) {
    %c0_i32 = arith.constant 0 : i32
    %c0_i32_0 = arith.constant 0 : i32
    return %arg0, %c0_i32 : i32, i32
  }
  func.func @transform_8(%arg0: i32) -> (i32, i32) {
    %c0_i32 = arith.constant 0 : i32
    %c0_i32_0 = arith.constant 0 : i32
    return %arg0, %c0_i32 : i32, i32
  }
  func.func @transform_9(%arg0: i32) -> (i32, i32) {
    %c0_i32 = arith.constant 0 : i32
    %c0_i32_0 = arith.constant 0 : i32
    return %arg0, %c0_i32 : i32, i32
  }
}

</mosaic_0001>

<bundles_post_ra>
// kernel: tra_forward.1
= control target key start
LH: loop header
LB: loop body
LE: loop exit
PB: predicated region body
PF: predicated region fallthrough
CT: control target
= control target key end

     0   :  { %vm201_vm0 = vcmask 1043456   ;;  %v4406_v1 = vmov 0.0   ;;  %vm176_vm1 = vcmask 31744   ;;  %vm68_vm2 = vcmask 261120   ;;  %s5401_s4 = inlined_call_operand.vmem [shape: f32[4,384], index: 4, kind: input, shape index: {}]   ;;  %s5402_s1 = inlined_call_operand.vmem [shape: f32[64,4], index: 1, kind: input, shape index: {}]   ;;  %s5403_s3 = inlined_call_operand.vmem [shape: f32[32,256], index: 3, kind: input, shape index: {}]   ;;  %s5404_s0 = inlined_call_operand.vmem [shape: f32[8,32], index: 0, kind: input, shape index: {}]   ;;  %s5405_s5 = inlined_call_operand.vmem [shape: f32[8,512], index: 5, kind: input, shape index: {}]   ;;  %s5406_s6 = inlined_call_operand.vmem [shape: f32[3,384], index: 6, kind: input, shape index: {}]   ;;  %s5407_s7 = inlined_call_operand.vmem [shape: f32[8,4], index: 7, kind: output, shape index: {0}]   ;;  %s5408_s2 = inlined_call_operand.vmem [shape: f32[8,4], index: 2, kind: input, shape index: {}]   ;;  %s5409_s9 = inlined_call_operand.vmem [shape: f32[8,4], index: 9, kind: output, shape index: {2}]   ;;  %s5410_s8 = inlined_call_operand.vmem [shape: f32[8,4], index: 8, kind: output, shape index: {1}]  }
   0x1   :  { %v143_v0 = vld [vmem:[%s5401_s4] sm:$0xff]  ;;  %272 = vmatprep.mubr.f32.mxu1 %v4406_v1  ;;  %136 = vmatprep.mubr.f32.mxu0 %v4406_v1  ;;  %v42_v4 = vld [vmem:[%s5403_s3 + $0x8] sm:$0xff]  ;;  %v44_v5 = vld [vmem:[%s5403_s3 + $0x18] sm:$0xff]  ;;  %v5411_v27 = vlaneseq  ;;  %vm579_vm3 = vcmask 1041409   ;;  %vm582_vm4 = vcmask 1042434   ;;  %vm585_vm5 = vcmask 1043459  }
   0x2   :  { %v175_v2 = vcombine.high %v143_v0, %v143_v0  ;;  %v30_v3 = vld [vmem:[%s5402_s1] sm:$0xff]  ;;  %v43_v7 = vld [vmem:[%s5403_s3 + $0x10] sm:$0xff]  ;;  %v3747_v8 = vpack.c.bf16 %v44_v5, %v42_v4  ;;  %v46_v10 = vld [vmem:[%s5403_s3 + $0x28] sm:$0xff]  ;;  %vm588_vm6 = vcmask 1044484   ;;  %vm591_vm7 = vcmask 1045509  }
   0x3   :  { %v41_v6 = vld [vmem:[%s5403_s3] sm:$0xff]  ;;  %v48_v11 = vld [vmem:[%s5403_s3 + $0x38] sm:$0xff]  ;;  %v47_v14 = vld [vmem:[%s5403_s3 + $0x30] sm:$0xff]  ;;  %v4563_v28 = vshrl.u32 %v5411_v27, 7  ;;  %vm594_vm8 = vcmask 1046534   ;;  %vm597_vm9 = vcmask 1047559  }
   0x4   :  { %3505 = vmatprep.subr.msk.mxu1 %vm201_vm0, %v175_v2  ;;  %v3749_v9 = vpack.c.bf16 %v43_v7, %v41_v6  ;;  %v3751_v12 = vpack.c.bf16 %v48_v11, %v46_v10  ;;  %v45_v13 = vld [vmem:[%s5403_s3 + $0x20] sm:$0xff]  ;;  %3748 = vmatprep.subr.bf16.mxu0 %v3747_v8  ;;  %v31_v15 = vld [vmem:[%s5402_s1 + $0x8] sm:$0xff]  ;;  %v32_v18 = vld [vmem:[%s5402_s1 + $0x10] sm:$0xff]  ;;  %vm599_vm10 = vcmask 64512   ;;  %vm4407_vm11 = vmmov 0  }
   0x5   :  { %3506 = vmatpush1.msk.msra.mxu1 %vm201_vm0, %v143_v0  ;;  %v3753_v16 = vpack.c.bf16 %v47_v14, %v45_v13  ;;  %v144_v17 = vld [vmem:[%s5401_s4 + $0x8] sm:$0xf]  ;;  %v29_v19 = vld [vmem:[%s5404_s0] sm:$0xff]  ;;  %v33_v20 = vld [vmem:[%s5402_s1 + $0x18] sm:$0xff]  ;;  %v4566_v29 = vsub.s32 1, %v4563_v28  ;;  %v52_v33 = vsub.s32 0, %v4563_v28 }
   0x6   :  { %3507 = vmatmul.mubr.msk.f32.vlgmr.msra.gmra.mrb[0].mxu1 %vm176_vm1, %v30_v3  ;;  %3750 = vmatpush1.bf16.msra.mxu0 %v3749_v9  ;;  %v34_v21 = vld [vmem:[%s5402_s1 + $0x20] sm:$0xff]  ;;  %v35_v22 = vld [vmem:[%s5402_s1 + $0x28] sm:$0xff]  ;;  %v36_v23 = vld [vmem:[%s5402_s1 + $0x30] sm:$0xff]  ;;  %v56_v34 = vsub.s32 4, %v4563_v28  ;;  %v152_v35 = vsub.s32 5, %v4563_v28 }
   0x7   :  { %278 = vmatprep.mubr.f32.mxu1 %v4406_v1  ;;  %3752 = vmatprep.subr.bf16.mxu0 %v3751_v12  ;;  %v37_v24 = vld [vmem:[%s5402_s1 + $0x38] sm:$0xff]  ;;  %v4549_v25 = vld [vmem:[%s5405_s5 + $0x8] sm:$0xff]  ;;  %v4554_v26 = vld [vmem:[%s5405_s5] sm:$0xff] }
   0x8   :  { %999 = vmatprep.subr.mxu1 %v4549_v25  ;;  %v4571_v30 = vld [vmem:[%s5406_s6] sm:$0x77] }
   0x9   :  { %1000 = vmatpush1.msra.mxu1 %v4554_v26  ;;  %v149_v31 = vrot.slane %v4571_v30, %v4566_v29  ;;  %v53_v39 = vrot.slane %v4571_v30, %v52_v33  ;;  %v57_v40 = vrot.slane %v4571_v30, %v56_v34  ;;  %v153_v42 = vrot.slane %v4571_v30, %v152_v35 }
   0xa   :  { %3508 = vmatmul.mubr.msk.f32.gmra.mrb[2].mxu1 %vm176_vm1, %v31_v15  ;;  %3754 = vmatpush1.bf16.msra.mxu0 %v3753_v16 }
   0xb   :  { %284 = vmatprep.mubr.f32.mxu1 %v4406_v1  ;;  %3693 = vmatprep.subr.msk.mxu0 %vm201_vm0, %v144_v17  ;;  %v4576_v32 = vrot.slane %v149_v31, %v4566_v29  ;;  %v63_v46 = vrot.slane %v53_v39, %v52_v33  ;;  %v67_v47 = vrot.slane %v57_v40, %v52_v33 }
   0xc   :  { %1396 = vmatprep.subr.mxu1 %v4549_v25  ;;  %v4592_v48 = vrot.slane %v153_v42, %v4566_v29 }
   0xd   :  { %3504 = vmatmul.mubr.msk.f32.vlgmr.msra.gmra.mrb[0].mxu0 %vm68_vm2, %v29_v19 }
   0xe   :  { %3509 = vmatmul.mubr.msk.f32.gmra.mrb[4].mxu1 %vm176_vm1, %v32_v18  ;;  %3694 = vmatpush3.msk.msra.mxu0 %vm201_vm0, %v144_v17 }
   0xf   :  { %290 = vmatprep.mubr.f32.mxu1 %v4406_v1  ;;  %3695 = vmatprep.mubr.msk.f32.mxu0 %vm176_vm1, %v30_v3 }
  0x10   :  { %602 = vmatprep.subr.mxu0 %v4549_v25 }
  0x11   :  { %3696 = vmatmul.mubr.msk.f32.vlgmr.msra.gmra.mrb[2].mxu0 %vm176_vm1, %v31_v15 }
  0x12   :  { %3510 = vmatmul.mubr.msk.f32.gmra.mrb[6].mxu1 %vm176_vm1, %v33_v20  ;;  %3698 = vmatprep.mubr.msk.f32.mxu0 %vm176_vm1, %v32_v18 }
  0x13   :  { %296 = vmatprep.mubr.f32.mxu1 %v4406_v1  ;;  %603 = vmatpush1.msra.mxu0 %v4554_v26 }
  0x14   :  { %3707 = vmatprep.subr.mxu0 %v4406_v1 }
  0x15   :  { %3699 = vmatmul.mubr.msk.f32.gmra.mrb[4].mxu0 %vm176_vm1, %v33_v20 }
  0x16   :  { %3511 = vmatmul.mubr.msk.f32.gmra.mrb[8].mxu1 %vm176_vm1, %v34_v21  ;;  %3701 = vmatprep.mubr.msk.f32.mxu0 %vm176_vm1, %v34_v21 }
  0x17   :  { %302 = vmatprep.mubr.f32.mxu1 %v4406_v1 }
  0x19   :  { %3702 = vmatmul.mubr.msk.f32.gmra.mrb[6].mxu0 %vm176_vm1, %v35_v22 }
  0x1a   :  { %3512 = vmatmul.mubr.msk.f32.gmra.mrb[10].mxu1 %vm176_vm1, %v35_v22  ;;  %3704 = vmatprep.mubr.msk.f32.mxu0 %vm176_vm1, %v36_v23 }
  0x1b   :  { %308 = vmatprep.mubr.f32.mxu1 %v4406_v1 }
  0x1d   :  { %3705 = vmatmul.mubr.msk.f32.gmra.mrb[8].mxu0 %vm176_vm1, %v37_v24 }
  0x1e   :  { %3513 = vmatmul.mubr.msk.f32.gmra.mrb[12].mxu1 %vm176_vm1, %v36_v23  ;;  %666 = vmatprep.mubr.f32.mxu0 %v4406_v1 }
  0x1f   :  { %314 = vmatprep.mubr.f32.mxu1 %v4406_v1 }
  0x22   :  { %3514 = vmatmul.mubr.msk.f32.gmra.mrb[14].mxu1 %vm176_vm1, %v37_v24 }
  0x23   :  { %1063 = vmatprep.mubr.f32.mxu1 %v4406_v1 }
  0xd9   :  { %v274_v36 = vpop.f32.mrb[0].mxu1 }
  0xda   :  { %v4582_v37 = vadd.f32 %v274_v36, %v4576_v32  ;;  %v276_v38 = vpop.f32.mrb[1].mxu1 }
  0xdb   :  { %v4601_v57 = vadd.f32 %v276_v38, %v4592_v48 }
  0xdc   :  { %v3524_v41 = vmul.f32 -1.442695, %v4582_v37 }
  0xdd   :  { %v280_v43 = vpop.f32.mrb[2].mxu1  ;;  %v3532_v3 = vmul.f32 -1.442695, %v4601_v57 }
  0xde   :  { %v4589_v44 = vadd.f32 %v280_v43, %v4576_v32  ;;  %v282_v45 = vpop.f32.mrb[3].mxu1  ;;  %3758 = vpow2.f32 %v3524_v41 }
  0xdf   :  { %v4609_v59 = vadd.f32 %v282_v45, %v4592_v48 }
  0xe0   :  { %v3525_v49 = vmul.f32 -1.442695, %v4589_v44  ;;  %v138_v51 = vpop.f32.mrb[0].mxu0 }
  0xe1   :  { %v286_v50 = vpop.f32.mrb[4].mxu1  ;;  %v139_v54 = vadd.f32 %v138_v51, %v63_v46  ;;  %v140_v55 = vpop.f32.mrb[1].mxu0  ;;  %v3533_v6 = vmul.f32 -1.442695, %v4609_v59 }
  0xe2   :  { %3760 = vpow2.f32 %v3525_v49  ;;  %v4596_v52 = vadd.f32 %v286_v50, %v4576_v32  ;;  %v288_v53 = vpop.f32.mrb[5].mxu1  ;;  %v4598_v56 = vadd.f32 %v140_v55, %v67_v47  ;;  %v40_v50 = vld [vmem:[%s5406_s6 + $0x8] sm:$0x7] }
  0xe3   :  { %3489 = vst.msk [vmem:[%s5407_s7] sm:$0xff] %vm176_vm1, %v139_v54  ;;  %v4619_v2 = vadd.f32 %v288_v53, %v4592_v48 }
  0xe4   :  { %v3526_v58 = vmul.f32 -1.442695, %v4596_v52  ;;  %v4611_v61 = vpop.f32.mrb[2].mxu0 }
  0xe5   :  { %v292_v60 = vpop.f32.mrb[6].mxu1  ;;  %v4616_v0 = vpop.f32.mrb[3].mxu0  ;;  %v3534_v12 = vmul.f32 -1.442695, %v4619_v2 }
  0xe6   :  { %3762 = vpow2.f32 %v3526_v58  ;;  %v4614_v62 = vadd.f32 %v292_v60, %v4576_v32  ;;  %v294_v63 = vpop.f32.mrb[7].mxu1 }
  0xe7   :  { %v4633_v13 = vadd.f32 %v294_v63, %v4592_v48  ;;  %v432_v63 = vsub.s32 2, %v4563_v28 }
  0xe8   :  { %v3527_v4 = vmul.f32 -1.442695, %v4614_v62  ;;  %v3759_v5 = vpop.eup %3758  ;;  %v4624_v8 = vpop.f32.mrb[4].mxu0 }
  0xe9   :  { %v298_v7 = vpop.f32.mrb[8].mxu1  ;;  %v4629_v11 = vpop.f32.mrb[5].mxu0  ;;  %v458_v15 = vadd.f32 1.0, %v3759_v5  ;;  %v3535_v24 = vmul.f32 -1.442695, %v4633_v13  ;;  %v4678_v28 = vrot.slane %v4571_v30, %v432_v63 }
  0xea   :  { %3764 = vpow2.f32 %v3527_v4  ;;  %v4627_v9 = vadd.f32 %v298_v7, %v4576_v32  ;;  %v300_v10 = vpop.f32.mrb[9].mxu1  ;;  %v157_v4 = vrot.slane %v40_v50, %v4566_v29 }
  0xeb   :  { %3766 = vpow2.f32 %v3532_v3  ;;  %v4637_v17 = vadd.f32 %v300_v10, %v4592_v48 }
  0xec   :  { %v3761_v14 = vpop.eup %3760  ;;  %v3528_v16 = vmul.f32 -1.442695, %v4627_v9  ;;  %3768 = vpow2.f32 %v3533_v6  ;;  %v4639_v20 = vpop.f32.mrb[6].mxu0 }
  0xed   :  { %v459_v18 = vadd.f32 1.0, %v3761_v14  ;;  %v304_v19 = vpop.f32.mrb[10].mxu1  ;;  %v4644_v23 = vpop.f32.mrb[7].mxu0  ;;  %v3536_v35 = vmul.f32 -1.442695, %v4637_v17 }
  0xee   :  { %3770 = vpow2.f32 %v3528_v16  ;;  %v4642_v21 = vadd.f32 %v304_v19, %v4576_v32  ;;  %v306_v22 = vpop.f32.mrb[11].mxu1 }
  0xef   :  { %3772 = vpow2.f32 %v3534_v12  ;;  %v4649_v34 = vadd.f32 %v306_v22, %v4592_v48 }
  0xf0   :  { %v3763_v31 = vpop.eup %3762  ;;  %3774 = vrcp.f32 %v458_v15  ;;  %v3529_v33 = vmul.f32 -1.442695, %v4642_v21  ;;  %v4652_v39 = vpop.f32.mrb[8].mxu0  ;;  %v4681_v15 = vrot.slane %v157_v4, %v4566_v29 }
  0xf1   :  { %3776 = vrcp.f32 %v459_v18  ;;  %v460_v36 = vadd.f32 1.0, %v3763_v31  ;;  %v310_v38 = vpop.f32.mrb[12].mxu1  ;;  %v4657_v42 = vpop.f32.mrb[9].mxu0  ;;  %v3537_v47 = vmul.f32 -1.442695, %v4649_v34 }
  0xf2   :  { %3778 = vpow2.f32 %v3529_v33  ;;  %v4655_v40 = vadd.f32 %v310_v38, %v4576_v32  ;;  %v312_v41 = vpop.f32.mrb[13].mxu1 }
  0xf3   :  { %v4660_v43 = vadd.f32 %v312_v41, %v4592_v48  ;;  %3780 = vpow2.f32 %v3535_v24  ;;  %v4686_v24 = vadd.f32 %v4611_v61, %v4681_v15 }
  0xf4   :  { %v3765_v45 = vpop.eup %3764  ;;  %v3530_v46 = vmul.f32 -1.442695, %v4655_v40  ;;  %3782 = vpow2.f32 %v3536_v35 }
  0xf5   :  { %3784 = vrcp.f32 %v460_v36  ;;  %v461_v49 = vadd.f32 1.0, %v3765_v45  ;;  %v316_v51 = vpop.f32.mrb[14].mxu1  ;;  %v3538_v53 = vmul.f32 -1.442695, %v4660_v43  ;;  %v3767_v54 = vpop.eup %3766 }
  0xf6   :  { %3786 = vpow2.f32 %v3530_v46  ;;  %v4669_v55 = vadd.f32 %v316_v51, %v4576_v32  ;;  %v318_v58 = vpop.f32.mrb[15].mxu1  ;;  %v3769_v60 = vpop.eup %3768  ;;  %v506_v19 = vadd.f32 1.0, %v3767_v54  ;;  %v4697_v51 = vadd.f32 %v4624_v8, %v4681_v15 }
  0xf7   :  { %3788 = vrcp.f32 %v461_v49  ;;  %v4675_v6 = vadd.f32 %v318_v58, %v4592_v48  ;;  %v507_v33 = vadd.f32 1.0, %v3769_v60  ;;  %v4708_v8 = vadd.f32 %v4616_v0, %v4681_v15 }
  0xf8   :  { %v3771_v3 = vpop.eup %3770  ;;  %v3531_v5 = vmul.f32 -1.442695, %v4669_v55  ;;  %3790 = vpow2.f32 %v3537_v47  ;;  %v4692_v47 = vadd.f32 %v4629_v11, %v4681_v15  ;;  %v4702_v11 = vadd.f32 %v4644_v23, %v4681_v15 }
  0xf9   :  { %v3773_v7 = vpop.eup %3772  ;;  %v462_v10 = vadd.f32 1.0, %v3771_v3  ;;  %3792 = vpow2.f32 %v3538_v53  ;;  %v3539_v16 = vmul.f32 -1.442695, %v4675_v6  ;;  %v4714_v23 = vadd.f32 %v4639_v20, %v4681_v15 }
  0xfa   :  { %v3775_v12 = vpop.eup %3774  ;;  %3794 = vpow2.f32 %v3531_v5  ;;  %v508_v36 = vadd.f32 1.0, %v3773_v7 }
  0xfb   :  { %v3777_v32 = vpop.eup %3776  ;;  %3796 = vrcp.f32 %v462_v10  ;;  %v530_v7 = vmul.f32 %v3775_v12, %v4678_v28 }
  0xfc   :  { %v3779_v14 = vpop.eup %3778  ;;  %v531_v31 = vmul.f32 %v3777_v32, %v4678_v28 }
  0xfd   :  { %v3781_v18 = vpop.eup %3780  ;;  %v463_v48 = vadd.f32 1.0, %v3779_v14  ;;  %v538_v12 = vadd.f32 %v530_v7, %v4708_v8 }
  0xfe   :  { %v3783_v22 = vpop.eup %3782  ;;  %v509_v41 = vadd.f32 1.0, %v3781_v18  ;;  %v539_v46 = vadd.f32 %v531_v31, %v4686_v24 }
  0xff   :  { %v3785_v35 = vpop.eup %3784  ;;  %3798 = vrcp.f32 %v463_v48  ;;  %v510_v54 = vadd.f32 1.0, %v3783_v22 }
 0x100   :  { %v3787_v30 = vpop.eup %3786  ;;  %3800 = vpow2.f32 %v3539_v16  ;;  %v532_v61 = vmul.f32 %v3785_v35, %v4678_v28 }
 0x101   :  { %v3789_v29 = vpop.eup %3788  ;;  %v464_v38 = vadd.f32 1.0, %v3787_v30  ;;  %3802 = vrcp.f32 %v506_v19  ;;  %v4721_v19 = vadd.f32 %v4657_v42, %v4681_v15  ;;  %v4728_v42 = vadd.f32 %v4652_v39, %v4681_v15 }
 0x102   :  { %v3791_v45 = vpop.eup %3790  ;;  %3804 = vrcp.f32 %v507_v33  ;;  %v533_v53 = vmul.f32 %v3789_v29, %v4678_v28  ;;  %v540_v3 = vadd.f32 %v532_v61, %v4692_v47 }
 0x103   :  { %v3793_v49 = vpop.eup %3792  ;;  %3806 = vrcp.f32 %v464_v38  ;;  %v511_v63 = vadd.f32 1.0, %v3791_v45 }
 0x104   :  { %v3795_v50 = vpop.eup %3794  ;;  %3808 = vrcp.f32 %v508_v36  ;;  %v512_v5 = vadd.f32 1.0, %v3793_v49  ;;  %v541_v10 = vadd.f32 %v533_v53, %v4697_v51 }
 0x105   :  { %v3797_v58 = vpop.eup %3796  ;;  %v465_v60 = vadd.f32 1.0, %v3795_v50  ;;  %3810 = vrcp.f32 %v509_v41 }
 0x106   :  { %3812 = vtanh.f32 %v539_v46  ;;  %v534_v4 = vmul.f32 %v3797_v58, %v4678_v28 }
 0x107   :  { %3814 = vrcp.f32 %v465_v60 }
 0x108   :  { %3816 = vrcp.f32 %v510_v54  ;;  %v542_v14 = vadd.f32 %v534_v4, %v4702_v11 }
 0x109   :  { %v3799_v32 = vpop.eup %3798  ;;  %3818 = vrcp.f32 %v511_v63 }
 0x10a   :  { %v3801_v16 = vpop.eup %3800  ;;  %3820 = vtanh.f32 %v540_v3  ;;  %v535_v18 = vmul.f32 %v3799_v32, %v4678_v28 }
 0x10b   :  { %v3803_v0 = vpop.eup %3802  ;;  %3822 = vrcp.f32 %v512_v5  ;;  %v513_v31 = vadd.f32 1.0, %v3801_v16 }
 0x10c   :  { %v3805_v48 = vpop.eup %3804  ;;  %3824 = vtanh.f32 %v541_v10  ;;  %v543_v20 = vadd.f32 %v535_v18, %v4714_v23  ;;  %v554_v16 = vsub.f32 1.0, %v3803_v0 }
 0x10d   :  { %v3807_v22 = vpop.eup %3806  ;;  %3826 = vtanh.f32 %v542_v14  ;;  %v555_v53 = vsub.f32 1.0, %v3805_v48 }
 0x10e   :  { %v3809_v33 = vpop.eup %3808  ;;  %v536_v35 = vmul.f32 %v3807_v22, %v4678_v28  ;;  %3828 = vtanh.f32 %v543_v20 }
 0x10f   :  { %v3811_v30 = vpop.eup %3810  ;;  %3830 = vtanh.f32 %v538_v12  ;;  %v556_v58 = vsub.f32 1.0, %v3809_v33 }
 0x110   :  { %v3813_v36 = vpop.eup %3812  ;;  %v544_v29 = vadd.f32 %v536_v35, %v4721_v19  ;;  %3832 = vrcp.f32 %v513_v31  ;;  %v557_v63 = vsub.f32 1.0, %v3811_v30 }
 0x111   :  { %v3815_v38 = vpop.eup %3814  ;;  %v4732_v3 = vmul.f32 %v3813_v36, %v555_v53 }
 0x112   :  { %v3817_v41 = vpop.eup %3816  ;;  %v537_v45 = vmul.f32 %v3815_v38, %v4678_v28  ;;  %3834 = vtanh.f32 %v544_v29 }
 0x113   :  { %v3819_v46 = vpop.eup %3818  ;;  %v558_v5 = vsub.f32 1.0, %v3817_v41  ;;  %v578_v12 = vrot.slane %v4732_v3, 7 }
 0x114   :  { %v3821_v61 = vpop.eup %3820  ;;  %v545_v49 = vadd.f32 %v537_v45, %v4728_v42  ;;  %v559_v15 = vsub.f32 1.0, %v3819_v46 }
 0x115   :  { %v3823_v50 = vpop.eup %3822  ;;  %v4734_v39 = vmul.f32 %v3821_v61, %v556_v58  ;;  %v4767_v58 = vld [vmem:[%s5405_s5 + $0x10] sm:$0xff] }
 0x116   :  { %v3825_v54 = vpop.eup %3824  ;;  %3836 = vtanh.f32 %v545_v49  ;;  %v560_v18 = vsub.f32 1.0, %v3823_v50 }
 0x117   :  { %v3827_v60 = vpop.eup %3826  ;;  %v4736_v7 = vmul.f32 %v3825_v54, %v557_v63  ;;  %v581_v22 = vrot.slane %v4734_v39, 6 }
 0x118   :  { %v3829_v4 = vpop.eup %3828  ;;  %v4738_v32 = vmul.f32 %v3827_v60, %v558_v5 }
 0x119   :  { %v3831_v10 = vpop.eup %3830  ;;  %v4740_v48 = vmul.f32 %v3829_v4, %v559_v15  ;;  %v584_v35 = vrot.slane %v4736_v7, 5 }
 0x11a   :  { %v3833_v14 = vpop.eup %3832  ;;  %v4744_v31 = vmul.f32 %v3831_v10, %v554_v16  ;;  %v587_v30 = vrot.slane %v4738_v32, 4 }
 0x11b   :  { %v561_v0 = vsub.f32 1.0, %v3833_v14  ;;  %v590_v29 = vrot.slane %v4740_v48, 3 }
 0x11c   :  { %v3835_v20 = vpop.eup %3834  ;;  %v580_v36 = vsel %vm579_vm3, %v578_v12, %v4744_v31 }
 0x11d   :  { %v4746_v33 = vmul.f32 %v3835_v20, %v560_v18  ;;  %v583_v41 = vsel %vm582_vm4, %v581_v22, %v580_v36 }
 0x11e   :  { %v586_v61 = vsel %vm585_vm5, %v584_v35, %v583_v41 }
 0x11f   :  { %v593_v45 = vrot.slane %v4746_v33, 2  ;;  %v589_v49 = vsel %vm588_vm6, %v587_v30, %v586_v61 }
 0x120   :  { %v3837_v38 = vpop.eup %3836  ;;  %v592_v50 = vsel %vm591_vm7, %v590_v29, %v589_v49 }
 0x121   :  { %v4757_v46 = vmul.f32 %v3837_v38, %v561_v0  ;;  %v595_v54 = vsel %vm594_vm8, %v593_v45, %v592_v50 }
 0x123   :  { %v596_v53 = vrot.slane %v4757_v46, 1 }
 0x125   :  { %v598_v60 = vsel %vm597_vm9, %v596_v53, %v595_v54 }
 0x126   :  { %3540 = vmatmul.mubr.msk.f32.vlgmr.msra.gmra.mrb[10].mxu0 %vm599_vm10, %v598_v60 }
 0x127   :  { %3708 = vmatpush3.msra.mxu0 %v4767_v58  ;;  %3709 = vmatprep.mubr.msk.f32.mxu0 %vm4407_vm11, %v4406_v1 }
 0x128   :  { %3712 = vmatprep.subr.mxu0 %v4406_v1 }
 0x12a   :  { %3710 = vmatmul.mubr.msk.f32.vlgmr.msra.gmra.mrb[12].mxu0 %vm599_vm10, %v598_v60 }
 0x12b   :  { %3713 = vmatpush3.msra.mxu0 %v4767_v58  ;;  %3714 = vmatprep.mubr.msk.f32.mxu0 %vm4407_vm11, %v4406_v1 }
 0x12c   :  { %3717 = vmatprep.subr.mxu0 %v4406_v1 }
 0x1f9   :  { %v668_v63 = vpop.f32.mrb[10].mxu0 }
 0x1fa   :  { %v744_v4 = vrot.slane %v668_v63, 7  ;;  %v745_v5 = vrot.slane %v668_v63, 1  ;;  %v746_v15 = vrot.slane %v668_v63, 2  ;;  %v747_v10 = vrot.slane %v668_v63, 3  ;;  %v4780_v14 = vpop.f32.mrb[11].mxu0 }
 0x1fb   :  { %v748_v16 = vrot.slane %v668_v63, 4  ;;  %v749_v18 = vrot.slane %v668_v63, 5  ;;  %v750_v20 = vrot.slane %v668_v63, 6  ;;  %v760_v22 = vadd.f32 %v668_v63, %v4589_v44 }
 0x1fc   :  { %v759_v35 = vadd.f32 %v744_v4, %v4582_v37  ;;  %v761_v30 = vadd.f32 %v745_v5, %v4596_v52  ;;  %v762_v0 = vadd.f32 %v746_v15, %v4614_v62  ;;  %v763_v36 = vadd.f32 %v747_v10, %v4627_v9 }
 0x1fd   :  { %v764_v29 = vadd.f32 %v748_v16, %v4642_v21  ;;  %v765_v38 = vadd.f32 %v749_v18, %v4655_v40  ;;  %v3543_v41 = vmul.f32 -1.442695, %v760_v22  ;;  %v4789_v45 = vpop.f32.mrb[12].mxu0  ;;  %v766_v61 = vadd.f32 %v750_v20, %v4669_v55 }
 0x1fe   :  { %v3542_v49 = vmul.f32 -1.442695, %v759_v35  ;;  %v3544_v50 = vmul.f32 -1.442695, %v761_v30  ;;  %v3545_v53 = vmul.f32 -1.442695, %v762_v0  ;;  %v832_v60 = vadd.f32 %v4780_v14, %v4609_v59 }
 0x1ff   :  { %3838 = vpow2.f32 %v3543_v41  ;;  %v3546_v54 = vmul.f32 -1.442695, %v763_v36  ;;  %v3547_v63 = vmul.f32 -1.442695, %v764_v29  ;;  %v816_v4 = vrot.slane %v4780_v14, 7  ;;  %v3711_v15 = vpop.f32.mrb[13].mxu0 }
 0x200   :  { %3840 = vpow2.f32 %v3542_v49  ;;  %v817_v5 = vrot.slane %v4780_v14, 1  ;;  %v3548_v10 = vmul.f32 -1.442695, %v765_v38  ;;  %v818_v16 = vrot.slane %v4780_v14, 2 }
 0x201   :  { %3842 = vpow2.f32 %v3544_v50  ;;  %v819_v18 = vrot.slane %v4780_v14, 3  ;;  %v3549_v20 = vmul.f32 -1.442695, %v766_v61  ;;  %v831_v22 = vadd.f32 %v816_v4, %v4601_v57 }
 0x202   :  { %3844 = vpow2.f32 %v3545_v53  ;;  %v833_v35 = vadd.f32 %v817_v5, %v4619_v2  ;;  %v834_v30 = vadd.f32 %v818_v16, %v4633_v13  ;;  %v3551_v29 = vmul.f32 -1.442695, %v832_v60 }
 0x203   :  { %3846 = vpow2.f32 %v3546_v54  ;;  %v835_v0 = vadd.f32 %v819_v18, %v4637_v17  ;;  %v3550_v36 = vmul.f32 -1.442695, %v831_v22  ;;  %v820_v61 = vrot.slane %v4780_v14, 4 }
 0x204   :  { %3848 = vpow2.f32 %v3547_v63  ;;  %v3552_v38 = vmul.f32 -1.442695, %v833_v35  ;;  %v3553_v41 = vmul.f32 -1.442695, %v834_v30  ;;  %v821_v53 = vrot.slane %v4780_v14, 5 }
 0x205   :  { %3850 = vpow2.f32 %v3548_v10  ;;  %v3554_v49 = vmul.f32 -1.442695, %v835_v0  ;;  %v822_v5 = vrot.slane %v4780_v14, 6  ;;  %v836_v16 = vadd.f32 %v820_v61, %v4649_v34 }
 0x206   :  { %3852 = vpow2.f32 %v3549_v20  ;;  %v837_v22 = vadd.f32 %v821_v53, %v4660_v43  ;;  %v887_v53 = vadd.f32 %v4789_v45, %v4678_v28 }
 0x207   :  { %3854 = vpow2.f32 %v3550_v36  ;;  %v838_v0 = vadd.f32 %v822_v5, %v4675_v6 }
 0x208   :  { %3856 = vpow2.f32 %v3551_v29  ;;  %v3556_v61 = vmul.f32 -1.442695, %v837_v22  ;;  %v891_v45 = vrot.slane %v887_v53, 2 }
 0x209   :  { %v3839_v50 = vpop.eup %3838  ;;  %3858 = vpow2.f32 %v3552_v38 }
 0x20a   :  { %v3841_v54 = vpop.eup %3840  ;;  %v792_v4 = vadd.f32 1.0, %v3839_v50  ;;  %3860 = vpow2.f32 %v3553_v41  ;;  %v3555_v41 = vmul.f32 -1.442695, %v836_v16 }
 0x20b   :  { %v3843_v63 = vpop.eup %3842  ;;  %v791_v15 = vadd.f32 1.0, %v3841_v54  ;;  %3862 = vpow2.f32 %v3554_v49 }
 0x20c   :  { %v3845_v60 = vpop.eup %3844  ;;  %v793_v10 = vadd.f32 1.0, %v3843_v63  ;;  %3864 = vrcp.f32 %v792_v4  ;;  %v3557_v4 = vmul.f32 -1.442695, %v838_v0  ;;  %v890_v0 = vrot.slane %v887_v53, 1 }
 0x20d   :  { %v3847_v18 = vpop.eup %3846  ;;  %v794_v20 = vadd.f32 1.0, %v3845_v60  ;;  %3866 = vrcp.f32 %v791_v15 }
 0x20e   :  { %v3849_v35 = vpop.eup %3848  ;;  %v795_v30 = vadd.f32 1.0, %v3847_v18  ;;  %3868 = vrcp.f32 %v793_v10 }
 0x20f   :  { %v3851_v14 = vpop.eup %3850  ;;  %v796_v36 = vadd.f32 1.0, %v3849_v35  ;;  %3870 = vrcp.f32 %v794_v20  ;;  %v889_v35 = vrot.slane %v887_v53, 7 }
 0x210   :  { %v3853_v29 = vpop.eup %3852  ;;  %v797_v38 = vadd.f32 1.0, %v3851_v14  ;;  %3872 = vrcp.f32 %v795_v30 }
 0x211   :  { %v3855_v49 = vpop.eup %3854  ;;  %v798_v50 = vadd.f32 1.0, %v3853_v29  ;;  %3874 = vrcp.f32 %v796_v36 }
 0x212   :  { %v3857_v54 = vpop.eup %3856  ;;  %3876 = vrcp.f32 %v797_v38  ;;  %v863_v5 = vadd.f32 1.0, %v3855_v49 }
 0x213   :  { %v3859_v63 = vpop.eup %3858  ;;  %3878 = vrcp.f32 %v798_v50  ;;  %v864_v60 = vadd.f32 1.0, %v3857_v54  ;;  %v893_v54 = vrot.slane %v887_v53, 4 }
 0x214   :  { %v3861_v15 = vpop.eup %3860  ;;  %3880 = vpow2.f32 %v3555_v41  ;;  %v865_v18 = vadd.f32 1.0, %v3859_v63  ;;  %v892_v41 = vrot.slane %v887_v53, 3 }
 0x215   :  { %v3863_v10 = vpop.eup %3862  ;;  %3882 = vpow2.f32 %v3556_v61  ;;  %v866_v20 = vadd.f32 1.0, %v3861_v15 }
 0x216   :  { %v3865_v16 = vpop.eup %3864  ;;  %3884 = vpow2.f32 %v3557_v4  ;;  %v867_v30 = vadd.f32 1.0, %v3863_v10 }
 0x217   :  { %v3867_v22 = vpop.eup %3866  ;;  %3886 = vrcp.f32 %v863_v5  ;;  %v905_v14 = vmul.f32 %v3865_v16, %v887_v53  ;;  %v894_v5 = vrot.slane %v887_v53, 5 }
 0x218   :  { %v3869_v36 = vpop.eup %3868  ;;  %3888 = vrcp.f32 %v864_v60  ;;  %v904_v29 = vmul.f32 %v3867_v22, %v889_v35  ;;  %v895_v22 = vrot.slane %v887_v53, 6 }
 0x219   :  { %v3871_v38 = vpop.eup %3870  ;;  %3890 = vrcp.f32 %v865_v18  ;;  %v906_v49 = vmul.f32 %v3869_v36, %v890_v0  ;;  %v913_v50 = vadd.f32 %v905_v14, %v4686_v24 }
 0x21a   :  { %v3873_v61 = vpop.eup %3872  ;;  %3892 = vrcp.f32 %v866_v20  ;;  %v907_v4 = vmul.f32 %v3871_v38, %v891_v45  ;;  %v912_v63 = vadd.f32 %v904_v29, %v4708_v8 }
 0x21b   :  { %v3875_v15 = vpop.eup %3874  ;;  %3894 = vrcp.f32 %v867_v30  ;;  %v908_v10 = vmul.f32 %v3873_v61, %v892_v41  ;;  %v914_v60 = vadd.f32 %v906_v49, %v4692_v47  ;;  %v944_v41 = vrot.slane %v4744_v31, 7 }
 0x21c   :  { %v3877_v16 = vpop.eup %3876  ;;  %v909_v35 = vmul.f32 %v3875_v15, %v893_v54  ;;  %v915_v18 = vadd.f32 %v907_v4, %v4697_v51  ;;  %3896 = vtanh.f32 %v912_v63  ;;  %v945_v63 = vrot.slane %v4734_v39, 7 }
 0x21d   :  { %v3879_v0 = vpop.eup %3878  ;;  %3898 = vtanh.f32 %v913_v50  ;;  %v910_v14 = vmul.f32 %v3877_v16, %v894_v5  ;;  %v916_v20 = vadd.f32 %v908_v10, %v4702_v11  ;;  %v947_v16 = vrot.slane %v4738_v32, 7 }
 0x21e   :  { %v3881_v36 = vpop.eup %3880  ;;  %3900 = vtanh.f32 %v914_v60  ;;  %v911_v45 = vmul.f32 %v3879_v0, %v895_v22  ;;  %v917_v61 = vadd.f32 %v909_v35, %v4714_v23  ;;  %v946_v60 = vrot.slane %v4736_v7, 7 }
 0x21f   :  { %v3883_v29 = vpop.eup %3882  ;;  %v868_v30 = vadd.f32 1.0, %v3881_v36  ;;  %3902 = vtanh.f32 %v915_v18  ;;  %v918_v50 = vadd.f32 %v910_v14, %v4721_v19 }
 0x220   :  { %v3885_v38 = vpop.eup %3884  ;;  %v869_v49 = vadd.f32 1.0, %v3883_v29  ;;  %3904 = vtanh.f32 %v916_v20  ;;  %v919_v15 = vadd.f32 %v911_v45, %v4728_v42 }
 0x221   :  { %v3887_v54 = vpop.eup %3886  ;;  %v870_v53 = vadd.f32 1.0, %v3885_v38  ;;  %3906 = vrcp.f32 %v868_v30 }
 0x222   :  { %v3889_v4 = vpop.eup %3888  ;;  %3908 = vrcp.f32 %v869_v49  ;;  %v959_v5 = vmul.f32 %v3887_v54, %v944_v41  ;;  %v928_v22 = vsub.f32 1.0, %v3887_v54 }
 0x223   :  { %v3891_v10 = vpop.eup %3890  ;;  %3910 = vrcp.f32 %v870_v53  ;;  %v929_v39 = vsub.f32 1.0, %v3889_v4  ;;  %v960_v41 = vmul.f32 %v3889_v4, %v578_v12  ;;  %v950_v4 = vrot.slane %v4757_v46, 7 }
 0x224   :  { %v3893_v31 = vpop.eup %3892  ;;  %3912 = vtanh.f32 %v917_v61  ;;  %v961_v35 = vmul.f32 %v3891_v10, %v945_v63  ;;  %v930_v45 = vsub.f32 1.0, %v3891_v10  ;;  %v949_v10 = vrot.slane %v4746_v33, 7 }
 0x225   :  { %v3895_v18 = vpop.eup %3894  ;;  %3914 = vtanh.f32 %v918_v50  ;;  %v962_v0 = vmul.f32 %v3893_v31, %v946_v60  ;;  %v931_v38 = vsub.f32 1.0, %v3893_v31  ;;  %v948_v50 = vrot.slane %v4740_v48, 7 }
 0x226   :  { %v3897_v14 = vpop.eup %3896  ;;  %3916 = vtanh.f32 %v919_v15  ;;  %v963_v20 = vmul.f32 %v3895_v18, %v947_v16  ;;  %v932_v49 = vsub.f32 1.0, %v3895_v18 }
 0x227   :  { %v3899_v36 = vpop.eup %3898  ;;  %v936_v29 = vmul.f32 %v3897_v14, %v928_v22 }
 0x228   :  { %v3901_v30 = vpop.eup %3900  ;;  %v937_v7 = vmul.f32 %v3899_v36, %v929_v39 }
 0x229   :  { %v3903_v32 = vpop.eup %3902  ;;  %v938_v61 = vmul.f32 %v3901_v30, %v930_v45  ;;  %v4824_v53 = vadd.f32 %v959_v5, %v936_v29 }
 0x22a   :  { %v3905_v54 = vpop.eup %3904  ;;  %v939_v63 = vmul.f32 %v3903_v32, %v931_v38  ;;  %v4827_v15 = vadd.f32 %v960_v41, %v937_v7 }
 0x22b   :  { %v3907_v60 = vpop.eup %3906  ;;  %v940_v16 = vmul.f32 %v3905_v54, %v932_v49  ;;  %v4830_v31 = vadd.f32 %v961_v35, %v938_v61  ;;  %v983_v3 = vrot.slane %v4824_v53, 1 }
 0x22c   :  { %v3909_v12 = vpop.eup %3908  ;;  %v964_v18 = vmul.f32 %v3907_v60, %v948_v50  ;;  %v4834_v5 = vadd.f32 %v962_v0, %v939_v63  ;;  %v933_v14 = vsub.f32 1.0, %v3907_v60 }
 0x22d   :  { %v3911_v22 = vpop.eup %3910  ;;  %v965_v48 = vmul.f32 %v3909_v12, %v949_v10  ;;  %v4836_v39 = vadd.f32 %v963_v20, %v940_v16  ;;  %v984_v36 = vsel %vm579_vm3, %v4827_v15, %v983_v3  ;;  %v934_v45 = vsub.f32 1.0, %v3909_v12 }
 0x22e   :  { %v3913_v33 = vpop.eup %3912  ;;  %v966_v35 = vmul.f32 %v3911_v22, %v950_v4  ;;  %v985_v29 = vrot.slane %v4830_v31, 7  ;;  %v935_v38 = vsub.f32 1.0, %v3911_v22  ;;  %v987_v46 = vrot.slane %v4834_v5, 6 }
 0x22f   :  { %v3915_v30 = vpop.eup %3914  ;;  %v941_v7 = vmul.f32 %v3913_v33, %v933_v14  ;;  %v989_v32 = vrot.slane %v4836_v39, 5 }
 0x230   :  { %v3917_v0 = vpop.eup %3916  ;;  %v942_v41 = vmul.f32 %v3915_v30, %v934_v45  ;;  %v986_v20 = vsel %vm582_vm4, %v985_v29, %v984_v36 }
 0x231   :  { %v943_v49 = vmul.f32 %v3917_v0, %v935_v38  ;;  %v4846_v61 = vadd.f32 %v964_v18, %v941_v7  ;;  %v988_v54 = vsel %vm585_vm5, %v987_v46, %v986_v20 }
 0x232   :  { %v4849_v50 = vadd.f32 %v965_v48, %v942_v41  ;;  %v990_v63 = vsel %vm588_vm6, %v989_v32, %v988_v54 }
 0x233   :  { %v4852_v60 = vadd.f32 %v966_v35, %v943_v49  ;;  %v991_v10 = vrot.slane %v4846_v61, 4 }
 0x234   :  { %v993_v16 = vrot.slane %v4849_v50, 3 }
 0x235   :  { %v992_v3 = vsel %vm591_vm7, %v991_v10, %v990_v63  ;;  %v995_v12 = vrot.slane %v4852_v60, 2 }
 0x236   :  { %v994_v4 = vsel %vm594_vm8, %v993_v16, %v992_v3 }
 0x237   :  { %v996_v18 = vsel %vm597_vm9, %v995_v12, %v994_v4 }
 0x238   :  { %3558 = vmatmul.mubr.msk.f32.vlgmr.msra.gmra.mrb[16].mxu1 %vm599_vm10, %v996_v18  ;;  %3715 = vmatmul.mubr.msk.f32.vlgmr.msra.gmra.mrb[14].mxu0 %vm599_vm10, %v996_v18 }
 0x239   :  { %1397 = vmatpush1.msra.mxu1 %v4554_v26  ;;  %1460 = vmatprep.mubr.f32.mxu1 %v4406_v1 }
 0x23a   :  { %3718 = vmatpush3.msra.mxu0 %v4767_v58  ;;  %3719 = vmatprep.mubr.msk.f32.mxu0 %vm4407_vm11, %v4406_v1 }
 0x23b   :  { %1793 = vmatprep.subr.mxu1 %v4549_v25  ;;  %3722 = vmatprep.subr.mxu0 %v4406_v1 }
 0x30b   :  { %v1065_v22 = vpop.f32.mrb[16].mxu1  ;;  %v4869_v14 = vpop.f32.mrb[14].mxu0 }
 0x30c   :  { %v1141_v48 = vrot.slane %v1065_v22, 6  ;;  %v1142_v36 = vrot.slane %v1065_v22, 7  ;;  %v1143_v33 = vrot.slane %v1065_v22, 1  ;;  %v1144_v45 = vrot.slane %v1065_v22, 2  ;;  %v4871_v35 = vpop.f32.mrb[17].mxu1  ;;  %v3716_v26 = vpop.f32.mrb[15].mxu0 }
 0x30d   :  { %v1145_v30 = vrot.slane %v1065_v22, 3  ;;  %v1146_v38 = vrot.slane %v1065_v22, 4  ;;  %v1147_v7 = vrot.slane %v1065_v22, 5  ;;  %v1158_v46 = vadd.f32 %v1065_v22, %v4596_v52 }
 0x30e   :  { %v1156_v0 = vadd.f32 %v1141_v48, %v4582_v37  ;;  %v1157_v25 = vadd.f32 %v1142_v36, %v4589_v44  ;;  %v1159_v41 = vadd.f32 %v1143_v33, %v4614_v62  ;;  %v1160_v20 = vadd.f32 %v1144_v45, %v4627_v9 }
 0x30f   :  { %v1161_v32 = vadd.f32 %v1145_v30, %v4642_v21  ;;  %v1162_v49 = vadd.f32 %v1146_v38, %v4655_v40  ;;  %v3562_v54 = vmul.f32 -1.442695, %v1158_v46  ;;  %v1163_v63 = vadd.f32 %v1147_v7, %v4669_v55 }
 0x310   :  { %v3560_v10 = vmul.f32 -1.442695, %v1156_v0  ;;  %v3561_v16 = vmul.f32 -1.442695, %v1157_v25  ;;  %v3563_v3 = vmul.f32 -1.442695, %v1159_v41  ;;  %v1230_v26 = vadd.f32 %v4871_v35, %v4619_v2 }
 0x311   :  { %3918 = vpow2.f32 %v3562_v54  ;;  %v3564_v12 = vmul.f32 -1.442695, %v1160_v20  ;;  %v3565_v4 = vmul.f32 -1.442695, %v1161_v32  ;;  %v3566_v18 = vmul.f32 -1.442695, %v1162_v49 }
 0x312   :  { %3920 = vpow2.f32 %v3560_v10  ;;  %v3567_v22 = vmul.f32 -1.442695, %v1163_v63  ;;  %v1213_v48 = vrot.slane %v4871_v35, 6  ;;  %v1214_v36 = vrot.slane %v4871_v35, 7 }
 0x313   :  { %3922 = vpow2.f32 %v3561_v16  ;;  %v3570_v7 = vmul.f32 -1.442695, %v1230_v26  ;;  %v1215_v46 = vrot.slane %v4871_v35, 1  ;;  %v1216_v25 = vrot.slane %v4871_v35, 2 }
 0x314   :  { %3924 = vpow2.f32 %v3563_v3  ;;  %v1228_v33 = vadd.f32 %v1213_v48, %v4601_v57  ;;  %v1229_v45 = vadd.f32 %v1214_v36, %v4609_v59  ;;  %v1217_v32 = vrot.slane %v4871_v35, 3 }
 0x315   :  { %3926 = vpow2.f32 %v3564_v12  ;;  %v1218_v63 = vrot.slane %v4871_v35, 4  ;;  %v1219_v3 = vrot.slane %v4871_v35, 5  ;;  %v1231_v12 = vadd.f32 %v1215_v46, %v4633_v13 }
 0x316   :  { %3928 = vpow2.f32 %v3565_v4  ;;  %v3568_v30 = vmul.f32 -1.442695, %v1228_v33  ;;  %v3569_v38 = vmul.f32 -1.442695, %v1229_v45  ;;  %v1233_v33 = vadd.f32 %v1217_v32, %v4649_v34 }
 0x317   :  { %3930 = vpow2.f32 %v3566_v18  ;;  %v1235_v35 = vadd.f32 %v1219_v3, %v4675_v6  ;;  %v3571_v46 = vmul.f32 -1.442695, %v1231_v12 }
 0x318   :  { %3932 = vpow2.f32 %v3567_v22  ;;  %v1232_v22 = vadd.f32 %v1216_v25, %v4637_v17  ;;  %v1284_v25 = vadd.f32 %v4869_v14, %v4678_v28 }
 0x319   :  { %3934 = vpow2.f32 %v3568_v30  ;;  %v1234_v30 = vadd.f32 %v1218_v63, %v4660_v43  ;;  %v3575_v63 = vmul.f32 -1.442695, %v1235_v35 }
 0x31a   :  { %3936 = vpow2.f32 %v3569_v38  ;;  %v1286_v3 = vrot.slane %v1284_v25, 6 }
 0x31b   :  { %v3919_v0 = vpop.eup %3918  ;;  %3938 = vpow2.f32 %v3570_v7 }
 0x31c   :  { %v3921_v41 = vpop.eup %3920  ;;  %v1190_v20 = vadd.f32 1.0, %v3919_v0 }
 0x31d   :  { %v3923_v49 = vpop.eup %3922  ;;  %v1188_v54 = vadd.f32 1.0, %v3921_v41  ;;  %v3572_v41 = vmul.f32 -1.442695, %v1232_v22  ;;  %v1287_v22 = vrot.slane %v1284_v25, 7 }
 0x31e   :  { %v3925_v10 = vpop.eup %3924  ;;  %v1189_v16 = vadd.f32 1.0, %v3923_v49  ;;  %3940 = vrcp.f32 %v1190_v20  ;;  %v3573_v20 = vmul.f32 -1.442695, %v1233_v33  ;;  %v3574_v49 = vmul.f32 -1.442695, %v1234_v30 }
 0x31f   :  { %v3927_v4 = vpop.eup %3926  ;;  %v1191_v18 = vadd.f32 1.0, %v3925_v10  ;;  %3942 = vrcp.f32 %v1188_v54  ;;  %v1288_v33 = vrot.slane %v1284_v25, 1  ;;  %v1289_v30 = vrot.slane %v1284_v25, 2 }
 0x320   :  { %v3929_v48 = vpop.eup %3928  ;;  %v1192_v36 = vadd.f32 1.0, %v3927_v4  ;;  %3944 = vrcp.f32 %v1189_v16 }
 0x321   :  { %v3931_v45 = vpop.eup %3930  ;;  %v1193_v26 = vadd.f32 1.0, %v3929_v48  ;;  %3946 = vrcp.f32 %v1191_v18 }
 0x322   :  { %v3933_v38 = vpop.eup %3932  ;;  %v1194_v7 = vadd.f32 1.0, %v3931_v45  ;;  %3948 = vrcp.f32 %v1192_v36 }
 0x323   :  { %v1195_v0 = vadd.f32 1.0, %v3933_v38  ;;  %3950 = vrcp.f32 %v1193_v26  ;;  %v3935_v32 = vpop.eup %3934  ;;  %v1290_v38 = vrot.slane %v1284_v25, 3 }
 0x324   :  { %3952 = vrcp.f32 %v1194_v7  ;;  %v3937_v54 = vpop.eup %3936  ;;  %v1260_v16 = vadd.f32 1.0, %v3935_v32 }
 0x325   :  { %3954 = vrcp.f32 %v1195_v0  ;;  %v3939_v10 = vpop.eup %3938  ;;  %v1261_v12 = vadd.f32 1.0, %v3937_v54 }
 0x326   :  { %3956 = vpow2.f32 %v3571_v46  ;;  %v1262_v36 = vadd.f32 1.0, %v3939_v10 }
 0x327   :  { %3958 = vpow2.f32 %v3572_v41 }
 0x328   :  { %v3941_v4 = vpop.eup %3940  ;;  %3960 = vpow2.f32 %v3573_v20 }
 0x329   :  { %v3943_v18 = vpop.eup %3942  ;;  %v1303_v48 = vmul.f32 %v3941_v4, %v1284_v25  ;;  %3962 = vpow2.f32 %v3574_v49  ;;  %v1291_v49 = vrot.slane %v1284_v25, 4 }
 0x32a   :  { %v3945_v14 = vpop.eup %3944  ;;  %v1301_v45 = vmul.f32 %v3943_v18, %v1286_v3  ;;  %3964 = vpow2.f32 %v3575_v63  ;;  %v1292_v63 = vrot.slane %v1284_v25, 5 }
 0x32b   :  { %v3947_v26 = vpop.eup %3946  ;;  %v1302_v7 = vmul.f32 %v3945_v14, %v1287_v22  ;;  %3966 = vrcp.f32 %v1260_v16  ;;  %v1311_v41 = vadd.f32 %v1303_v48, %v4692_v47 }
 0x32c   :  { %v3949_v35 = vpop.eup %3948  ;;  %v1304_v46 = vmul.f32 %v3947_v26, %v1288_v33  ;;  %v1309_v0 = vadd.f32 %v1301_v45, %v4708_v8  ;;  %3968 = vrcp.f32 %v1261_v12 }
 0x32d   :  { %v3951_v20 = vpop.eup %3950  ;;  %v1310_v32 = vadd.f32 %v1302_v7, %v4686_v24  ;;  %3970 = vrcp.f32 %v1262_v36  ;;  %v1305_v54 = vmul.f32 %v3949_v35, %v1289_v30  ;;  %v1341_v35 = vrot.slane %v4824_v53, 7 }
 0x32e   :  { %v3953_v10 = vpop.eup %3952  ;;  %3972 = vtanh.f32 %v1309_v0  ;;  %v1306_v4 = vmul.f32 %v3951_v20, %v1290_v38  ;;  %v1312_v3 = vadd.f32 %v1304_v46, %v4697_v51  ;;  %v1342_v0 = vrot.slane %v4827_v15, 7 }
 0x32f   :  { %v3955_v16 = vpop.eup %3954  ;;  %3974 = vtanh.f32 %v1310_v32  ;;  %v1307_v18 = vmul.f32 %v3953_v10, %v1291_v49  ;;  %v1313_v22 = vadd.f32 %v1305_v54, %v4702_v11 }
 0x330   :  { %v3957_v14 = vpop.eup %3956  ;;  %v1308_v48 = vmul.f32 %v3955_v16, %v1292_v63  ;;  %3976 = vtanh.f32 %v1311_v41  ;;  %v1314_v7 = vadd.f32 %v1306_v4, %v4714_v23 }
 0x331   :  { %v3959_v12 = vpop.eup %3958  ;;  %v1263_v33 = vadd.f32 1.0, %v3957_v14  ;;  %3978 = vtanh.f32 %v1312_v3  ;;  %v1315_v20 = vadd.f32 %v1307_v18, %v4721_v19 }
 0x332   :  { %v3961_v36 = vpop.eup %3960  ;;  %v1264_v45 = vadd.f32 1.0, %v3959_v12  ;;  %3980 = vtanh.f32 %v1313_v22  ;;  %v1316_v49 = vadd.f32 %v1308_v48, %v4728_v42 }
 0x333   :  { %v3963_v26 = vpop.eup %3962  ;;  %v1265_v30 = vadd.f32 1.0, %v3961_v36  ;;  %3982 = vrcp.f32 %v1263_v33 }
 0x334   :  { %v3965_v25 = vpop.eup %3964  ;;  %v1266_v38 = vadd.f32 1.0, %v3963_v26  ;;  %3984 = vrcp.f32 %v1264_v45  ;;  %v1343_v26 = vrot.slane %v4834_v5, 7  ;;  %v1346_v5 = vrot.slane %v4849_v50, 7 }
 0x335   :  { %v3967_v46 = vpop.eup %3966  ;;  %v1267_v41 = vadd.f32 1.0, %v3965_v25  ;;  %3986 = vrcp.f32 %v1265_v30 }
 0x336   :  { %v3969_v32 = vpop.eup %3968  ;;  %3988 = vrcp.f32 %v1266_v38  ;;  %v1356_v54 = vmul.f32 %v3967_v46, %v1341_v35  ;;  %v1325_v63 = vsub.f32 1.0, %v3967_v46  ;;  %v1344_v38 = vrot.slane %v4836_v39, 7 }
 0x337   :  { %v3971_v10 = vpop.eup %3970  ;;  %3990 = vrcp.f32 %v1267_v41  ;;  %v1357_v3 = vmul.f32 %v3969_v32, %v1342_v0  ;;  %v1326_v4 = vsub.f32 1.0, %v3969_v32  ;;  %v1345_v41 = vrot.slane %v4846_v61, 7 }
 0x338   :  { %v3973_v16 = vpop.eup %3972  ;;  %3992 = vtanh.f32 %v1314_v7  ;;  %v1327_v22 = vsub.f32 1.0, %v3971_v10  ;;  %v1358_v48 = vmul.f32 %v3971_v10, %v985_v29  ;;  %v1347_v39 = vrot.slane %v4852_v60, 7 }
 0x339   :  { %v3975_v53 = vpop.eup %3974  ;;  %3994 = vtanh.f32 %v1315_v20  ;;  %v1333_v15 = vmul.f32 %v3973_v16, %v1325_v63 }
 0x33a   :  { %v3977_v14 = vpop.eup %3976  ;;  %3996 = vtanh.f32 %v1316_v49  ;;  %v1334_v12 = vmul.f32 %v3975_v53, %v1326_v4 }
 0x33b   :  { %v3979_v18 = vpop.eup %3978  ;;  %v1335_v33 = vmul.f32 %v3977_v14, %v1327_v22  ;;  %v4911_v36 = vadd.f32 %v1356_v54, %v1333_v15 }
 0x33c   :  { %v3981_v45 = vpop.eup %3980  ;;  %v4914_v30 = vadd.f32 %v1357_v3, %v1334_v12 }
 0x33d   :  { %v3983_v25 = vpop.eup %3982  ;;  %v4917_v7 = vadd.f32 %v1358_v48, %v1335_v33  ;;  %v1380_v35 = vrot.slane %v4911_v36, 2 }
 0x33e   :  { %v3985_v46 = vpop.eup %3984  ;;  %v1328_v0 = vsub.f32 1.0, %v3983_v25  ;;  %v1359_v31 = vmul.f32 %v3983_v25, %v1343_v26  ;;  %v1381_v29 = vrot.slane %v4914_v30, 1 }
 0x33f   :  { %v3987_v20 = vpop.eup %3986  ;;  %v1329_v32 = vsub.f32 1.0, %v3985_v46  ;;  %v1360_v49 = vmul.f32 %v3985_v46, %v1344_v38 }
 0x340   :  { %v3989_v54 = vpop.eup %3988  ;;  %v1336_v10 = vmul.f32 %v3979_v18, %v1328_v0  ;;  %v1361_v63 = vmul.f32 %v3987_v20, %v1345_v41  ;;  %v1382_v3 = vsel %vm579_vm3, %v1381_v29, %v1380_v35  ;;  %v1330_v4 = vsub.f32 1.0, %v3987_v20 }
 0x341   :  { %v3991_v16 = vpop.eup %3990  ;;  %v1337_v53 = vmul.f32 %v3981_v45, %v1329_v32  ;;  %v1362_v22 = vmul.f32 %v3989_v54, %v1346_v5  ;;  %v1383_v61 = vsel %vm582_vm4, %v4917_v7, %v1382_v3  ;;  %v1331_v14 = vsub.f32 1.0, %v3989_v54 }
 0x342   :  { %v3993_v15 = vpop.eup %3992  ;;  %v1363_v12 = vmul.f32 %v3991_v16, %v1347_v39  ;;  %v4927_v33 = vadd.f32 %v1359_v31, %v1336_v10  ;;  %v1332_v48 = vsub.f32 1.0, %v3991_v16  ;;  %v4954_v39 = vld [vmem:[%s5405_s5] sm:$0xff] }
 0x343   :  { %v3995_v50 = vpop.eup %3994  ;;  %v1338_v18 = vmul.f32 %v3993_v15, %v1330_v4  ;;  %v4929_v26 = vadd.f32 %v1360_v49, %v1337_v53 }
 0x344   :  { %v3997_v60 = vpop.eup %3996  ;;  %v1339_v25 = vmul.f32 %v3995_v50, %v1331_v14  ;;  %v1384_v38 = vrot.slane %v4927_v33, 7 }
 0x345   :  { %v1340_v35 = vmul.f32 %v3997_v60, %v1332_v48  ;;  %v4932_v45 = vadd.f32 %v1361_v63, %v1338_v18  ;;  %v1386_v46 = vrot.slane %v4929_v26, 6  ;;  %v4964_v63 = vld [vmem:[%s5405_s5 + $0x8] sm:$0xff] }
 0x346   :  { %v4935_v0 = vadd.f32 %v1362_v22, %v1339_v25  ;;  %v1385_v41 = vsel %vm585_vm5, %v1384_v38, %v1383_v61 }
 0x347   :  { %v4940_v31 = vadd.f32 %v1363_v12, %v1340_v35  ;;  %v1387_v29 = vsel %vm588_vm6, %v1386_v46, %v1385_v41  ;;  %v1388_v20 = vrot.slane %v4932_v45, 5 }
 0x348   :  { %v1390_v32 = vrot.slane %v4935_v0, 4 }
 0x349   :  { %v1389_v5 = vsel %vm591_vm7, %v1388_v20, %v1387_v29  ;;  %v1392_v49 = vrot.slane %v4940_v31, 3 }
 0x34a   :  { %v1391_v54 = vsel %vm594_vm8, %v1390_v32, %v1389_v5 }
 0x34b   :  { %v1393_v10 = vsel %vm597_vm9, %v1392_v49, %v1391_v54 }
 0x34c   :  { %3576 = vmatmul.mubr.msk.f32.vlgmr.msra.gmra.mrb[18].mxu1 %vm599_vm10, %v1393_v10  ;;  %3720 = vmatmul.mubr.msk.f32.vlgmr.msra.gmra.mrb[16].mxu0 %vm599_vm10, %v1393_v10 }
 0x34d   :  { %1794 = vmatpush1.msra.mxu1 %v4954_v39  ;;  %1857 = vmatprep.mubr.f32.mxu1 %v4406_v1 }
 0x34e   :  { %3723 = vmatpush3.msra.mxu0 %v4767_v58  ;;  %3724 = vmatprep.mubr.msk.f32.mxu0 %vm4407_vm11, %v4406_v1 }
 0x34f   :  { %2190 = vmatprep.subr.mxu1 %v4964_v63  ;;  %3727 = vmatprep.subr.mxu0 %v4406_v1 }
 0x41f   :  { %v1462_v3 = vpop.f32.mrb[18].mxu1  ;;  %v4968_v16 = vpop.f32.mrb[16].mxu0 }
 0x420   :  { %v1538_v4 = vrot.slane %v1462_v3, 5  ;;  %v1539_v53 = vrot.slane %v1462_v3, 6  ;;  %v1540_v22 = vrot.slane %v1462_v3, 7  ;;  %v1541_v61 = vrot.slane %v1462_v3, 1  ;;  %v4970_v58 = vpop.f32.mrb[19].mxu1  ;;  %v3721_v15 = vpop.f32.mrb[17].mxu0 }
 0x421   :  { %v1542_v14 = vrot.slane %v1462_v3, 2  ;;  %v1543_v12 = vrot.slane %v1462_v3, 3  ;;  %v1544_v50 = vrot.slane %v1462_v3, 4  ;;  %v1556_v48 = vadd.f32 %v1462_v3, %v4614_v62 }
 0x422   :  { %v1553_v18 = vadd.f32 %v1538_v4, %v4582_v37  ;;  %v1554_v60 = vadd.f32 %v1539_v53, %v4589_v44  ;;  %v1555_v25 = vadd.f32 %v1540_v22, %v4596_v52  ;;  %v1557_v35 = vadd.f32 %v1541_v61, %v4627_v9 }
 0x423   :  { %v1558_v46 = vadd.f32 %v1542_v14, %v4642_v21  ;;  %v1559_v41 = vadd.f32 %v1543_v12, %v4655_v40  ;;  %v1560_v29 = vadd.f32 %v1544_v50, %v4669_v55  ;;  %v3581_v20 = vmul.f32 -1.442695, %v1556_v48 }
 0x424   :  { %v3578_v32 = vmul.f32 -1.442695, %v1553_v18  ;;  %v3579_v5 = vmul.f32 -1.442695, %v1554_v60  ;;  %v3580_v49 = vmul.f32 -1.442695, %v1555_v25 }
 0x425   :  { %3998 = vpow2.f32 %v3581_v20  ;;  %v3582_v54 = vmul.f32 -1.442695, %v1557_v35  ;;  %v3583_v10 = vmul.f32 -1.442695, %v1558_v46  ;;  %v3584_v3 = vmul.f32 -1.442695, %v1559_v41 }
 0x426   :  { %4000 = vpow2.f32 %v3578_v32  ;;  %v3585_v4 = vmul.f32 -1.442695, %v1560_v29  ;;  %v1610_v53 = vrot.slane %v4970_v58, 5  ;;  %v1611_v22 = vrot.slane %v4970_v58, 6 }
 0x427   :  { %4002 = vpow2.f32 %v3579_v5  ;;  %v1612_v61 = vrot.slane %v4970_v58, 7  ;;  %v1613_v25 = vrot.slane %v4970_v58, 1  ;;  %v1614_v41 = vrot.slane %v4970_v58, 2 }
 0x428   :  { %4004 = vpow2.f32 %v3580_v49  ;;  %v1625_v15 = vadd.f32 %v1610_v53, %v4601_v57  ;;  %v1626_v14 = vadd.f32 %v1611_v22, %v4609_v59  ;;  %v1615_v32 = vrot.slane %v4970_v58, 3 }
 0x429   :  { %4006 = vpow2.f32 %v3582_v54  ;;  %v1627_v12 = vadd.f32 %v1612_v61, %v4619_v2  ;;  %v1616_v54 = vrot.slane %v4970_v58, 4  ;;  %v1629_v53 = vadd.f32 %v1613_v25, %v4637_v17 }
 0x42a   :  { %4008 = vpow2.f32 %v3583_v10  ;;  %v3586_v50 = vmul.f32 -1.442695, %v1625_v15  ;;  %v3587_v48 = vmul.f32 -1.442695, %v1626_v14  ;;  %v1628_v10 = vadd.f32 %v4970_v58, %v4633_v13 }
 0x42b   :  { %4010 = vpow2.f32 %v3584_v3  ;;  %v3588_v18 = vmul.f32 -1.442695, %v1627_v12  ;;  %v1630_v15 = vadd.f32 %v1614_v41, %v4649_v34  ;;  %v1632_v58 = vadd.f32 %v1616_v54, %v4675_v6 }
 0x42c   :  { %4012 = vpow2.f32 %v3585_v4  ;;  %v1681_v25 = vadd.f32 %v4968_v16, %v4678_v28 }
 0x42d   :  { %4014 = vpow2.f32 %v3586_v50  ;;  %v1631_v50 = vadd.f32 %v1615_v32, %v4660_v43  ;;  %v3593_v32 = vmul.f32 -1.442695, %v1632_v58 }
 0x42e   :  { %4016 = vpow2.f32 %v3587_v48  ;;  %v1683_v54 = vrot.slane %v1681_v25, 5 }
 0x42f   :  { %v3999_v60 = vpop.eup %3998  ;;  %4018 = vpow2.f32 %v3588_v18 }
 0x430   :  { %v4001_v35 = vpop.eup %4000  ;;  %v1588_v46 = vadd.f32 1.0, %v3999_v60  ;;  %v3589_v60 = vmul.f32 -1.442695, %v1628_v10 }
 0x431   :  { %v4003_v29 = vpop.eup %4002  ;;  %v1585_v20 = vadd.f32 1.0, %v4001_v35 }
 0x432   :  { %v4005_v5 = vpop.eup %4004  ;;  %v1586_v49 = vadd.f32 1.0, %v4003_v29  ;;  %4020 = vrcp.f32 %v1588_v46  ;;  %v3590_v46 = vmul.f32 -1.442695, %v1629_v53  ;;  %v3591_v29 = vmul.f32 -1.442695, %v1630_v15 }
 0x433   :  { %v4007_v3 = vpop.eup %4006  ;;  %v1587_v4 = vadd.f32 1.0, %v4005_v5  ;;  %4022 = vrcp.f32 %v1585_v20  ;;  %v3592_v20 = vmul.f32 -1.442695, %v1631_v50  ;;  %v1684_v53 = vrot.slane %v1681_v25, 6 }
 0x434   :  { %v4009_v22 = vpop.eup %4008  ;;  %v1589_v61 = vadd.f32 1.0, %v4007_v3  ;;  %4024 = vrcp.f32 %v1586_v49  ;;  %v1685_v15 = vrot.slane %v1681_v25, 7 }
 0x435   :  { %v4011_v14 = vpop.eup %4010  ;;  %v1590_v12 = vadd.f32 1.0, %v4009_v22  ;;  %4026 = vrcp.f32 %v1587_v4 }
 0x436   :  { %v4013_v48 = vpop.eup %4012  ;;  %v1591_v18 = vadd.f32 1.0, %v4011_v14  ;;  %4028 = vrcp.f32 %v1589_v61 }
 0x437   :  { %v1592_v35 = vadd.f32 1.0, %v4013_v48  ;;  %4030 = vrcp.f32 %v1590_v12  ;;  %v4015_v41 = vpop.eup %4014  ;;  %v1686_v48 = vrot.slane %v1681_v25, 1 }
 0x438   :  { %4032 = vrcp.f32 %v1591_v18  ;;  %v4017_v5 = vpop.eup %4016  ;;  %v1657_v3 = vadd.f32 1.0, %v4015_v41  ;;  %v1687_v18 = vrot.slane %v1681_v25, 2 }
 0x439   :  { %4034 = vrcp.f32 %v1592_v35  ;;  %v4019_v49 = vpop.eup %4018  ;;  %v1658_v10 = vadd.f32 1.0, %v4017_v5 }
 0x43a   :  { %4036 = vpow2.f32 %v3589_v60  ;;  %v1659_v14 = vadd.f32 1.0, %v4019_v49 }
 0x43b   :  { %4038 = vpow2.f32 %v3590_v46 }
 0x43c   :  { %v4021_v4 = vpop.eup %4020  ;;  %4040 = vpow2.f32 %v3591_v29  ;;  %v1688_v29 = vrot.slane %v1681_v25, 3 }
 0x43d   :  { %v4023_v22 = vpop.eup %4022  ;;  %v1701_v61 = vmul.f32 %v4021_v4, %v1681_v25  ;;  %4042 = vpow2.f32 %v3592_v20 }
 0x43e   :  { %v4025_v16 = vpop.eup %4024  ;;  %v1698_v12 = vmul.f32 %v4023_v22, %v1683_v54  ;;  %4044 = vpow2.f32 %v3593_v32  ;;  %v1689_v54 = vrot.slane %v1681_v25, 4  ;;  %v1738_v25 = vrot.slane %v4911_v36, 7 }
 0x43f   :  { %v4027_v50 = vpop.eup %4026  ;;  %v1699_v58 = vmul.f32 %v4025_v16, %v1684_v53  ;;  %4046 = vrcp.f32 %v1657_v3  ;;  %v1709_v49 = vadd.f32 %v1701_v61, %v4697_v51 }
 0x440   :  { %v4029_v60 = vpop.eup %4028  ;;  %v1700_v35 = vmul.f32 %v4027_v50, %v1685_v15  ;;  %v1706_v46 = vadd.f32 %v1698_v12, %v4708_v8  ;;  %4048 = vrcp.f32 %v1658_v10 }
 0x441   :  { %v4031_v41 = vpop.eup %4030  ;;  %v1707_v5 = vadd.f32 %v1699_v58, %v4686_v24  ;;  %4050 = vrcp.f32 %v1659_v14  ;;  %v1702_v20 = vmul.f32 %v4029_v60, %v1686_v48 }
 0x442   :  { %v4033_v4 = vpop.eup %4032  ;;  %v1708_v32 = vadd.f32 %v1700_v35, %v4692_v47  ;;  %4052 = vtanh.f32 %v1706_v46  ;;  %v1703_v22 = vmul.f32 %v4031_v41, %v1687_v18 }
 0x443   :  { %v4035_v3 = vpop.eup %4034  ;;  %4054 = vtanh.f32 %v1707_v5  ;;  %v1704_v53 = vmul.f32 %v4033_v4, %v1688_v29  ;;  %v1710_v16 = vadd.f32 %v1702_v20, %v4702_v11  ;;  %v1739_v29 = vrot.slane %v4914_v30, 7 }
 0x444   :  { %v4037_v10 = vpop.eup %4036  ;;  %v1705_v15 = vmul.f32 %v4035_v3, %v1689_v54  ;;  %4056 = vtanh.f32 %v1708_v32  ;;  %v1711_v35 = vadd.f32 %v1703_v22, %v4714_v23 }
 0x445   :  { %v4039_v12 = vpop.eup %4038  ;;  %v1660_v50 = vadd.f32 1.0, %v4037_v10  ;;  %4058 = vtanh.f32 %v1709_v49  ;;  %v1712_v5 = vadd.f32 %v1704_v53, %v4721_v19  ;;  %v1740_v49 = vrot.slane %v4917_v7, 7 }
 0x446   :  { %v4041_v14 = vpop.eup %4040  ;;  %v1661_v48 = vadd.f32 1.0, %v4039_v12  ;;  %4060 = vtanh.f32 %v1710_v16  ;;  %v1713_v4 = vadd.f32 %v1705_v15, %v4728_v42 }
 0x447   :  { %v4043_v61 = vpop.eup %4042  ;;  %v1662_v58 = vadd.f32 1.0, %v4041_v14  ;;  %4062 = vrcp.f32 %v1660_v50 }
 0x448   :  { %v4045_v60 = vpop.eup %4044  ;;  %v1663_v18 = vadd.f32 1.0, %v4043_v61  ;;  %4064 = vrcp.f32 %v1661_v48 }
 0x449   :  { %v4047_v46 = vpop.eup %4046  ;;  %v1664_v41 = vadd.f32 1.0, %v4045_v60  ;;  %4066 = vrcp.f32 %v1662_v58 }
 0x44a   :  { %v4049_v20 = vpop.eup %4048  ;;  %4068 = vrcp.f32 %v1663_v18  ;;  %v1753_v32 = vmul.f32 %v4047_v46, %v1738_v25  ;;  %v1722_v36 = vsub.f32 1.0, %v4047_v46  ;;  %v1741_v25 = vrot.slane %v4929_v26, 7 }
 0x44b   :  { %v4051_v54 = vpop.eup %4050  ;;  %4070 = vrcp.f32 %v1664_v41  ;;  %v1754_v3 = vmul.f32 %v4049_v20, %v1739_v29  ;;  %v1723_v22 = vsub.f32 1.0, %v4049_v20  ;;  %v1742_v29 = vrot.slane %v4932_v45, 7 }
 0x44c   :  { %v4053_v16 = vpop.eup %4052  ;;  %4072 = vtanh.f32 %v1711_v35  ;;  %v1755_v10 = vmul.f32 %v4051_v54, %v1740_v49  ;;  %v1724_v12 = vsub.f32 1.0, %v4051_v54  ;;  %v1743_v41 = vrot.slane %v4935_v0, 7 }
 0x44d   :  { %v4055_v30 = vpop.eup %4054  ;;  %4074 = vtanh.f32 %v1712_v5  ;;  %v1730_v50 = vmul.f32 %v4053_v16, %v1722_v36 }
 0x44e   :  { %v4057_v53 = vpop.eup %4056  ;;  %4076 = vtanh.f32 %v1713_v4  ;;  %v1731_v14 = vmul.f32 %v4055_v30, %v1723_v22  ;;  %v1744_v4 = vrot.slane %v4940_v31, 7 }
 0x44f   :  { %v4059_v7 = vpop.eup %4058  ;;  %v1732_v48 = vmul.f32 %v4057_v53, %v1724_v12  ;;  %v5009_v61 = vadd.f32 %v1753_v32, %v1730_v50 }
 0x450   :  { %v4061_v15 = vpop.eup %4060  ;;  %v5011_v58 = vadd.f32 %v1754_v3, %v1731_v14 }
 0x451   :  { %v4063_v60 = vpop.eup %4062  ;;  %v5014_v18 = vadd.f32 %v1755_v10, %v1732_v48  ;;  %v1777_v35 = vrot.slane %v5009_v61, 3 }
 0x452   :  { %v4065_v46 = vpop.eup %4064  ;;  %v1725_v5 = vsub.f32 1.0, %v4063_v60  ;;  %v1778_v20 = vrot.slane %v5011_v58, 2  ;;  %v1756_v16 = vmul.f32 %v4063_v60, %v1384_v38 }
 0x453   :  { %v4067_v49 = vpop.eup %4066  ;;  %v1726_v32 = vsub.f32 1.0, %v4065_v46  ;;  %v1757_v54 = vmul.f32 %v4065_v46, %v1741_v25  ;;  %v1780_v36 = vrot.slane %v5014_v18, 1 }
 0x454   :  { %v4069_v26 = vpop.eup %4068  ;;  %v1733_v3 = vmul.f32 %v4059_v7, %v1725_v5  ;;  %v1758_v22 = vmul.f32 %v4067_v49, %v1742_v29  ;;  %v1779_v45 = vsel %vm579_vm3, %v1778_v20, %v1777_v35  ;;  %v1727_v0 = vsub.f32 1.0, %v4067_v49 }
 0x455   :  { %v4071_v10 = vpop.eup %4070  ;;  %v1734_v30 = vmul.f32 %v4061_v15, %v1726_v32  ;;  %v1759_v12 = vmul.f32 %v4069_v26, %v1743_v41  ;;  %v1781_v50 = vsel %vm582_vm4, %v1780_v36, %v1779_v45  ;;  %v1728_v31 = vsub.f32 1.0, %v4069_v26 }
 0x456   :  { %v4073_v53 = vpop.eup %4072  ;;  %v1760_v14 = vmul.f32 %v4071_v10, %v1744_v4  ;;  %v5026_v48 = vadd.f32 %v1756_v16, %v1733_v3  ;;  %v1729_v46 = vsub.f32 1.0, %v4071_v10  ;;  %v5055_v16 = vld [vmem:[%s5405_s5 + $0x10] sm:$0xff] }
 0x457   :  { %v4075_v25 = vpop.eup %4074  ;;  %v1735_v7 = vmul.f32 %v4073_v53, %v1727_v0  ;;  %v5028_v5 = vadd.f32 %v1757_v54, %v1734_v30 }
 0x458   :  { %v4077_v33 = vpop.eup %4076  ;;  %v1736_v38 = vmul.f32 %v4075_v25, %v1728_v31  ;;  %v1782_v60 = vsel %vm585_vm5, %v5026_v48, %v1781_v50 }
 0x459   :  { %v1737_v35 = vmul.f32 %v4077_v33, %v1729_v46  ;;  %v5032_v15 = vadd.f32 %v1758_v22, %v1735_v7  ;;  %v1783_v29 = vrot.slane %v5028_v5, 7 }
 0x45a   :  { %v5035_v41 = vadd.f32 %v1759_v12, %v1736_v38 }
 0x45b   :  { %v5037_v20 = vadd.f32 %v1760_v14, %v1737_v35  ;;  %v1784_v49 = vsel %vm588_vm6, %v1783_v29, %v1782_v60  ;;  %v1785_v4 = vrot.slane %v5032_v15, 6 }
 0x45c   :  { %v1787_v32 = vrot.slane %v5035_v41, 5 }
 0x45d   :  { %v1786_v54 = vsel %vm591_vm7, %v1785_v4, %v1784_v49  ;;  %v1789_v36 = vrot.slane %v5037_v20, 4 }
 0x45e   :  { %v1788_v26 = vsel %vm594_vm8, %v1787_v32, %v1786_v54 }
 0x45f   :  { %v1790_v3 = vsel %vm597_vm9, %v1789_v36, %v1788_v26 }
 0x460   :  { %3594 = vmatmul.mubr.msk.f32.vlgmr.msra.gmra.mrb[20].mxu1 %vm599_vm10, %v1790_v3  ;;  %3725 = vmatmul.mubr.msk.f32.vlgmr.msra.gmra.mrb[18].mxu0 %vm599_vm10, %v1790_v3 }
 0x461   :  { %2191 = vmatpush1.msra.mxu1 %v4954_v39  ;;  %2254 = vmatprep.mubr.f32.mxu1 %v4406_v1 }
 0x462   :  { %3728 = vmatpush3.msra.mxu0 %v5055_v16  ;;  %3729 = vmatprep.mubr.msk.f32.mxu0 %vm4407_vm11, %v4406_v1 }
 0x463   :  { %2587 = vmatprep.subr.mxu1 %v4964_v63  ;;  %3732 = vmatprep.subr.mxu0 %v4406_v1 }
 0x533   :  { %v1859_v22 = vpop.f32.mrb[20].mxu1  ;;  %v5062_v45 = vpop.f32.mrb[18].mxu0 }
 0x534   :  { %v1935_v10 = vrot.slane %v1859_v22, 4  ;;  %v1936_v0 = vrot.slane %v1859_v22, 5  ;;  %v1937_v30 = vrot.slane %v1859_v22, 6  ;;  %v1938_v12 = vrot.slane %v1859_v22, 7  ;;  %v5064_v50 = vpop.f32.mrb[21].mxu1  ;;  %v3726_v53 = vpop.f32.mrb[19].mxu0 }
 0x535   :  { %v1939_v31 = vrot.slane %v1859_v22, 1  ;;  %v1940_v14 = vrot.slane %v1859_v22, 2  ;;  %v1941_v25 = vrot.slane %v1859_v22, 3  ;;  %v1954_v46 = vadd.f32 %v1859_v22, %v4627_v9 }
 0x536   :  { %v1950_v7 = vadd.f32 %v1935_v10, %v4582_v37  ;;  %v1951_v33 = vadd.f32 %v1936_v0, %v4589_v44  ;;  %v1952_v38 = vadd.f32 %v1937_v30, %v4596_v52  ;;  %v1953_v60 = vadd.f32 %v1938_v12, %v4614_v62 }
 0x537   :  { %v1955_v35 = vadd.f32 %v1939_v31, %v4642_v21  ;;  %v1956_v49 = vadd.f32 %v1940_v14, %v4655_v40  ;;  %v1957_v4 = vadd.f32 %v1941_v25, %v4669_v55  ;;  %v3600_v32 = vmul.f32 -1.442695, %v1954_v46 }
 0x538   :  { %v3596_v54 = vmul.f32 -1.442695, %v1950_v7  ;;  %v3597_v36 = vmul.f32 -1.442695, %v1951_v33  ;;  %v3598_v26 = vmul.f32 -1.442695, %v1952_v38 }
 0x539   :  { %v3599_v3 = vmul.f32 -1.442695, %v1953_v60  ;;  %4078 = vpow2.f32 %v3600_v32  ;;  %v3601_v22 = vmul.f32 -1.442695, %v1955_v35  ;;  %v3602_v10 = vmul.f32 -1.442695, %v1956_v49 }
 0x53a   :  { %4080 = vpow2.f32 %v3596_v54  ;;  %v3603_v0 = vmul.f32 -1.442695, %v1957_v4  ;;  %v2007_v30 = vrot.slane %v5064_v50, 4  ;;  %v2008_v12 = vrot.slane %v5064_v50, 5 }
 0x53b   :  { %4082 = vpow2.f32 %v3597_v36  ;;  %v2009_v53 = vrot.slane %v5064_v50, 6  ;;  %v2010_v38 = vrot.slane %v5064_v50, 7  ;;  %v2011_v4 = vrot.slane %v5064_v50, 1 }
 0x53c   :  { %4084 = vpow2.f32 %v3598_v26  ;;  %v2022_v31 = vadd.f32 %v2007_v30, %v4601_v57  ;;  %v2023_v14 = vadd.f32 %v2008_v12, %v4609_v59  ;;  %v2012_v36 = vrot.slane %v5064_v50, 2 }
 0x53d   :  { %4086 = vpow2.f32 %v3599_v3  ;;  %v2024_v25 = vadd.f32 %v2009_v53, %v4619_v2  ;;  %v2026_v12 = vadd.f32 %v5064_v50, %v4637_v17 }
 0x53e   :  { %4088 = vpow2.f32 %v3601_v22  ;;  %v3604_v46 = vmul.f32 -1.442695, %v2022_v31  ;;  %v3605_v7 = vmul.f32 -1.442695, %v2023_v14  ;;  %v2013_v22 = vrot.slane %v5064_v50, 3 }
 0x53f   :  { %4090 = vpow2.f32 %v3602_v10  ;;  %v3606_v33 = vmul.f32 -1.442695, %v2024_v25  ;;  %v2025_v10 = vadd.f32 %v2010_v38, %v4633_v13  ;;  %v2027_v14 = vadd.f32 %v2011_v4, %v4649_v34 }
 0x540   :  { %4092 = vpow2.f32 %v3603_v0  ;;  %v2029_v38 = vadd.f32 %v2013_v22, %v4675_v6  ;;  %v2078_v50 = vadd.f32 %v5062_v45, %v4678_v28 }
 0x541   :  { %4094 = vpow2.f32 %v3604_v46 }
 0x542   :  { %4096 = vpow2.f32 %v3605_v7  ;;  %v2028_v7 = vadd.f32 %v2012_v36, %v4660_v43  ;;  %v3611_v36 = vmul.f32 -1.442695, %v2029_v38  ;;  %v2080_v22 = vrot.slane %v2078_v50, 4 }
 0x543   :  { %v4079_v60 = vpop.eup %4078  ;;  %4098 = vpow2.f32 %v3606_v33 }
 0x544   :  { %v4081_v35 = vpop.eup %4080  ;;  %v1986_v49 = vadd.f32 1.0, %v4079_v60 }
 0x545   :  { %v4083_v32 = vpop.eup %4082  ;;  %v1982_v54 = vadd.f32 1.0, %v4081_v35  ;;  %v3607_v35 = vmul.f32 -1.442695, %v2025_v10 }
 0x546   :  { %v4085_v26 = vpop.eup %4084  ;;  %v1983_v3 = vadd.f32 1.0, %v4083_v32  ;;  %4100 = vrcp.f32 %v1986_v49  ;;  %v3608_v32 = vmul.f32 -1.442695, %v2026_v12  ;;  %v2081_v12 = vrot.slane %v2078_v50, 5 }
 0x547   :  { %v4087_v0 = vpop.eup %4086  ;;  %v1984_v30 = vadd.f32 1.0, %v4085_v26  ;;  %4102 = vrcp.f32 %v1982_v54  ;;  %v3609_v54 = vmul.f32 -1.442695, %v2027_v14  ;;  %v3610_v26 = vmul.f32 -1.442695, %v2028_v7 }
 0x548   :  { %v4089_v53 = vpop.eup %4088  ;;  %v1985_v31 = vadd.f32 1.0, %v4087_v0  ;;  %4104 = vrcp.f32 %v1983_v3  ;;  %v2082_v14 = vrot.slane %v2078_v50, 6 }
 0x549   :  { %v4091_v25 = vpop.eup %4090  ;;  %v1987_v46 = vadd.f32 1.0, %v4089_v53  ;;  %4106 = vrcp.f32 %v1984_v30 }
 0x54a   :  { %v4093_v33 = vpop.eup %4092  ;;  %v1988_v60 = vadd.f32 1.0, %v4091_v25  ;;  %4108 = vrcp.f32 %v1985_v31 }
 0x54b   :  { %v1989_v49 = vadd.f32 1.0, %v4093_v33  ;;  %4110 = vrcp.f32 %v1987_v46  ;;  %v4095_v4 = vpop.eup %4094 }
 0x54c   :  { %4112 = vrcp.f32 %v1988_v60  ;;  %v4097_v3 = vpop.eup %4096  ;;  %v2054_v30 = vadd.f32 1.0, %v4095_v4  ;;  %v2083_v60 = vrot.slane %v2078_v50, 7 }
 0x54d   :  { %4114 = vrcp.f32 %v1989_v49  ;;  %v4099_v0 = vpop.eup %4098  ;;  %v2055_v10 = vadd.f32 1.0, %v4097_v3 }
 0x54e   :  { %4116 = vpow2.f32 %v3607_v35  ;;  %v2056_v25 = vadd.f32 1.0, %v4099_v0  ;;  %v2084_v35 = vrot.slane %v2078_v50, 1  ;;  %v2086_v0 = vrot.slane %v2078_v50, 3 }
 0x54f   :  { %4118 = vpow2.f32 %v3608_v32 }
 0x550   :  { %v4101_v53 = vpop.eup %4100  ;;  %4120 = vpow2.f32 %v3609_v54  ;;  %v2085_v54 = vrot.slane %v2078_v50, 2 }
 0x551   :  { %v4103_v31 = vpop.eup %4102  ;;  %4122 = vpow2.f32 %v3610_v26  ;;  %v2099_v46 = vmul.f32 %v4101_v53, %v2078_v50 }
 0x552   :  { %v4105_v45 = vpop.eup %4104  ;;  %v2095_v33 = vmul.f32 %v4103_v31, %v2080_v22  ;;  %4124 = vpow2.f32 %v3611_v36 }
 0x553   :  { %v4107_v7 = vpop.eup %4106  ;;  %v2096_v38 = vmul.f32 %v4105_v45, %v2081_v12  ;;  %4126 = vrcp.f32 %v2054_v30  ;;  %v2107_v31 = vadd.f32 %v2099_v46, %v4702_v11  ;;  %v2135_v46 = vrot.slane %v5009_v61, 7 }
 0x554   :  { %v4109_v49 = vpop.eup %4108  ;;  %v2097_v32 = vmul.f32 %v4107_v7, %v2082_v14  ;;  %v2103_v4 = vadd.f32 %v2095_v33, %v4708_v8  ;;  %4128 = vrcp.f32 %v2055_v10 }
 0x555   :  { %v4111_v3 = vpop.eup %4110  ;;  %v2098_v27 = vmul.f32 %v4109_v49, %v2083_v60  ;;  %v2104_v26 = vadd.f32 %v2096_v38, %v4686_v24  ;;  %4130 = vrcp.f32 %v2056_v25 }
 0x556   :  { %v4113_v53 = vpop.eup %4112  ;;  %v2105_v36 = vadd.f32 %v2097_v32, %v4692_v47  ;;  %4132 = vtanh.f32 %v2103_v4  ;;  %v2100_v22 = vmul.f32 %v4111_v3, %v2084_v35  ;;  %v2136_v4 = vrot.slane %v5011_v58, 7 }
 0x557   :  { %v4115_v30 = vpop.eup %4114  ;;  %4134 = vtanh.f32 %v2104_v26  ;;  %v2101_v12 = vmul.f32 %v4113_v53, %v2085_v54  ;;  %v2106_v45 = vadd.f32 %v2098_v27, %v4697_v51 }
 0x558   :  { %v4117_v10 = vpop.eup %4116  ;;  %v2102_v14 = vmul.f32 %v4115_v30, %v2086_v0  ;;  %4136 = vtanh.f32 %v2105_v36  ;;  %v2108_v32 = vadd.f32 %v2100_v22, %v4714_v23  ;;  %v2137_v0 = vrot.slane %v5014_v18, 7 }
 0x559   :  { %v4119_v33 = vpop.eup %4118  ;;  %v2057_v7 = vadd.f32 1.0, %v4117_v10  ;;  %4138 = vtanh.f32 %v2106_v45  ;;  %v2109_v3 = vadd.f32 %v2101_v12, %v4721_v19 }
 0x55a   :  { %v4121_v25 = vpop.eup %4120  ;;  %v2058_v50 = vadd.f32 1.0, %v4119_v33  ;;  %4140 = vtanh.f32 %v2107_v31  ;;  %v2110_v53 = vadd.f32 %v2102_v14, %v4728_v42 }
 0x55b   :  { %v4123_v60 = vpop.eup %4122  ;;  %v2059_v38 = vadd.f32 1.0, %v4121_v25  ;;  %4142 = vrcp.f32 %v2057_v7 }
 0x55c   :  { %v4125_v35 = vpop.eup %4124  ;;  %v2060_v49 = vadd.f32 1.0, %v4123_v60  ;;  %4144 = vrcp.f32 %v2058_v50 }
 0x55d   :  { %v4127_v27 = vpop.eup %4126  ;;  %v2061_v54 = vadd.f32 1.0, %v4125_v35  ;;  %4146 = vrcp.f32 %v2059_v38  ;;  %v2138_v38 = vrot.slane %v5026_v48, 7 }
 0x55e   :  { %v4129_v26 = vpop.eup %4128  ;;  %4148 = vrcp.f32 %v2060_v49  ;;  %v2150_v36 = vmul.f32 %v4127_v27, %v2135_v46  ;;  %v2119_v61 = vsub.f32 1.0, %v4127_v27 }
 0x55f   :  { %v4131_v31 = vpop.eup %4130  ;;  %4150 = vrcp.f32 %v2061_v54  ;;  %v2151_v30 = vmul.f32 %v4129_v26, %v2136_v4  ;;  %v2120_v22 = vsub.f32 1.0, %v4129_v26  ;;  %v2139_v4 = vrot.slane %v5032_v15, 7 }
 0x560   :  { %v4133_v45 = vpop.eup %4132  ;;  %4152 = vtanh.f32 %v2108_v32  ;;  %v2152_v10 = vmul.f32 %v4131_v31, %v2137_v0  ;;  %v2121_v33 = vsub.f32 1.0, %v4131_v31 }
 0x561   :  { %v4135_v58 = vpop.eup %4134  ;;  %4154 = vtanh.f32 %v2109_v3  ;;  %v2127_v7 = vmul.f32 %v4133_v45, %v2119_v61 }
 0x562   :  { %v4137_v12 = vpop.eup %4136  ;;  %4156 = vtanh.f32 %v2110_v53  ;;  %v2128_v25 = vmul.f32 %v4135_v58, %v2120_v22  ;;  %v2140_v53 = vrot.slane %v5035_v41, 7 }
 0x563   :  { %v4139_v18 = vpop.eup %4138  ;;  %v2129_v50 = vmul.f32 %v4137_v12, %v2121_v33  ;;  %v5103_v60 = vadd.f32 %v2150_v36, %v2127_v7  ;;  %v2141_v36 = vrot.slane %v5037_v20, 7 }
 0x564   :  { %v4141_v14 = vpop.eup %4140  ;;  %v5106_v35 = vadd.f32 %v2151_v30, %v2128_v25 }
 0x565   :  { %v4143_v46 = vpop.eup %4142  ;;  %v5108_v49 = vadd.f32 %v2152_v10, %v2129_v50  ;;  %v2174_v32 = vrot.slane %v5103_v60, 4 }
 0x566   :  { %v4145_v27 = vpop.eup %4144  ;;  %v2122_v54 = vsub.f32 1.0, %v4143_v46  ;;  %v2153_v3 = vmul.f32 %v4143_v46, %v2138_v38  ;;  %v2175_v26 = vrot.slane %v5106_v35, 3 }
 0x567   :  { %v4147_v0 = vpop.eup %4146  ;;  %v2123_v48 = vsub.f32 1.0, %v4145_v27  ;;  %v2177_v31 = vrot.slane %v5108_v49, 2  ;;  %v2154_v45 = vmul.f32 %v4145_v27, %v1783_v29 }
 0x568   :  { %v4149_v61 = vpop.eup %4148  ;;  %v2130_v30 = vmul.f32 %v4139_v18, %v2122_v54  ;;  %v2155_v22 = vmul.f32 %v4147_v0, %v2139_v4  ;;  %v2176_v15 = vsel %vm579_vm3, %v2175_v26, %v2174_v32  ;;  %v2124_v58 = vsub.f32 1.0, %v4147_v0 }
 0x569   :  { %v4151_v10 = vpop.eup %4150  ;;  %v2131_v33 = vmul.f32 %v4141_v14, %v2123_v48  ;;  %v2156_v7 = vmul.f32 %v4149_v61, %v2140_v53  ;;  %v2178_v12 = vsel %vm582_vm4, %v2177_v31, %v2176_v15  ;;  %v2125_v25 = vsub.f32 1.0, %v4149_v61 }
 0x56a   :  { %v4153_v41 = vpop.eup %4152  ;;  %v2157_v20 = vmul.f32 %v4151_v10, %v2141_v36  ;;  %v5120_v50 = vadd.f32 %v2153_v3, %v2130_v30  ;;  %v2126_v46 = vsub.f32 1.0, %v4151_v10 }
 0x56b   :  { %v4155_v38 = vpop.eup %4154  ;;  %v2132_v18 = vmul.f32 %v4153_v41, %v2124_v58  ;;  %v5122_v54 = vadd.f32 %v2154_v45, %v2131_v33 }
 0x56c   :  { %v4157_v5 = vpop.eup %4156  ;;  %v2133_v29 = vmul.f32 %v4155_v38, %v2125_v25  ;;  %v2179_v32 = vrot.slane %v5120_v50, 1 }
 0x56d   :  { %v2134_v27 = vmul.f32 %v4157_v5, %v2126_v46  ;;  %v5125_v4 = vadd.f32 %v2155_v22, %v2132_v18 }
 0x56e   :  { %v5127_v14 = vadd.f32 %v2156_v7, %v2133_v29  ;;  %v2180_v26 = vsel %vm585_vm5, %v2179_v32, %v2178_v12 }
 0x56f   :  { %v5130_v0 = vadd.f32 %v2157_v20, %v2134_v27  ;;  %v2181_v3 = vsel %vm588_vm6, %v5122_v54, %v2180_v26  ;;  %v2182_v53 = vrot.slane %v5125_v4, 7 }
 0x570   :  { %v2184_v36 = vrot.slane %v5127_v14, 6 }
 0x571   :  { %v2183_v48 = vsel %vm591_vm7, %v2182_v53, %v2181_v3  ;;  %v2186_v31 = vrot.slane %v5130_v0, 5 }
 0x572   :  { %v2185_v61 = vsel %vm594_vm8, %v2184_v36, %v2183_v48 }
 0x573   :  { %v2187_v30 = vsel %vm597_vm9, %v2186_v31, %v2185_v61 }
 0x574   :  { %3612 = vmatmul.mubr.msk.f32.vlgmr.msra.gmra.mrb[22].mxu1 %vm599_vm10, %v2187_v30  ;;  %3730 = vmatmul.mubr.msk.f32.vlgmr.msra.gmra.mrb[20].mxu0 %vm599_vm10, %v2187_v30 }
 0x575   :  { %2588 = vmatpush1.msra.mxu1 %v4954_v39  ;;  %2651 = vmatprep.mubr.f32.mxu1 %v4406_v1 }
 0x576   :  { %3733 = vmatpush3.msra.mxu0 %v5055_v16  ;;  %3734 = vmatprep.mubr.msk.f32.mxu0 %vm4407_vm11, %v4406_v1 }
 0x577   :  { %2984 = vmatprep.subr.mxu1 %v4964_v63  ;;  %3737 = vmatprep.subr.mxu0 %v4406_v1 }
 0x647   :  { %v2256_v45 = vpop.f32.mrb[22].mxu1  ;;  %v5151_v22 = vpop.f32.mrb[20].mxu0 }
 0x648   :  { %v2332_v15 = vrot.slane %v2256_v45, 3  ;;  %v2333_v10 = vrot.slane %v2256_v45, 4  ;;  %v2334_v58 = vrot.slane %v2256_v45, 5  ;;  %v2335_v33 = vrot.slane %v2256_v45, 6  ;;  %v5153_v7 = vpop.f32.mrb[23].mxu1  ;;  %v3731_v39 = vpop.f32.mrb[21].mxu0 }
 0x649   :  { %v2336_v12 = vrot.slane %v2256_v45, 7  ;;  %v2337_v41 = vrot.slane %v2256_v45, 1  ;;  %v2338_v25 = vrot.slane %v2256_v45, 2  ;;  %v2352_v20 = vadd.f32 %v2256_v45, %v4642_v21 }
 0x64a   :  { %v2347_v38 = vadd.f32 %v2332_v15, %v4582_v37  ;;  %v2348_v63 = vadd.f32 %v2333_v10, %v4589_v44  ;;  %v2349_v46 = vadd.f32 %v2334_v58, %v4596_v52  ;;  %v2350_v18 = vadd.f32 %v2335_v33, %v4614_v62 }
 0x64b   :  { %v2351_v5 = vadd.f32 %v2336_v12, %v4627_v9  ;;  %v2353_v29 = vadd.f32 %v2337_v41, %v4655_v40  ;;  %v2354_v32 = vadd.f32 %v2338_v25, %v4669_v55  ;;  %v3619_v27 = vmul.f32 -1.442695, %v2352_v20 }
 0x64c   :  { %v3614_v26 = vmul.f32 -1.442695, %v2347_v38  ;;  %v3615_v3 = vmul.f32 -1.442695, %v2348_v63  ;;  %v3616_v36 = vmul.f32 -1.442695, %v2349_v46 }
 0x64d   :  { %v3617_v48 = vmul.f32 -1.442695, %v2350_v18  ;;  %4158 = vpow2.f32 %v3619_v27  ;;  %v3618_v31 = vmul.f32 -1.442695, %v2351_v5  ;;  %v3620_v61 = vmul.f32 -1.442695, %v2353_v29 }
 0x64e   :  { %4160 = vpow2.f32 %v3614_v26  ;;  %v3621_v30 = vmul.f32 -1.442695, %v2354_v32  ;;  %v2404_v45 = vrot.slane %v5153_v7, 3  ;;  %v2405_v15 = vrot.slane %v5153_v7, 4 }
 0x64f   :  { %4162 = vpow2.f32 %v3615_v3  ;;  %v2406_v10 = vrot.slane %v5153_v7, 5  ;;  %v2407_v20 = vrot.slane %v5153_v7, 6  ;;  %v2408_v63 = vrot.slane %v5153_v7, 7 }
 0x650   :  { %4164 = vpow2.f32 %v3616_v36  ;;  %v2419_v58 = vadd.f32 %v2404_v45, %v4601_v57  ;;  %v2420_v33 = vadd.f32 %v2405_v15, %v4609_v59  ;;  %v2409_v32 = vrot.slane %v5153_v7, 1 }
 0x651   :  { %4166 = vpow2.f32 %v3617_v48  ;;  %v2421_v39 = vadd.f32 %v2406_v10, %v4619_v2  ;;  %v2410_v3 = vrot.slane %v5153_v7, 2  ;;  %v2422_v36 = vadd.f32 %v2407_v20, %v4633_v13 }
 0x652   :  { %4168 = vpow2.f32 %v3618_v31  ;;  %v3622_v12 = vmul.f32 -1.442695, %v2419_v58  ;;  %v3623_v41 = vmul.f32 -1.442695, %v2420_v33  ;;  %v2424_v15 = vadd.f32 %v5153_v7, %v4649_v34 }
 0x653   :  { %4170 = vpow2.f32 %v3620_v61  ;;  %v3624_v25 = vmul.f32 -1.442695, %v2421_v39  ;;  %v2423_v61 = vadd.f32 %v2408_v63, %v4637_v17  ;;  %v2425_v33 = vadd.f32 %v2409_v32, %v4660_v43 }
 0x654   :  { %4172 = vpow2.f32 %v3621_v30  ;;  %v2475_v63 = vadd.f32 %v5151_v22, %v4678_v28 }
 0x655   :  { %4174 = vpow2.f32 %v3622_v12 }
 0x656   :  { %4176 = vpow2.f32 %v3623_v41  ;;  %v2426_v41 = vadd.f32 %v2410_v3, %v4675_v6  ;;  %v2477_v3 = vrot.slane %v2475_v63, 3 }
 0x657   :  { %v4159_v38 = vpop.eup %4158  ;;  %4178 = vpow2.f32 %v3624_v25  ;;  %v3625_v25 = vmul.f32 -1.442695, %v2422_v36 }
 0x658   :  { %v4161_v46 = vpop.eup %4160  ;;  %v2384_v18 = vadd.f32 1.0, %v4159_v38  ;;  %v3626_v38 = vmul.f32 -1.442695, %v2423_v61 }
 0x659   :  { %v4163_v5 = vpop.eup %4162  ;;  %v2379_v29 = vadd.f32 1.0, %v4161_v46  ;;  %v3627_v46 = vmul.f32 -1.442695, %v2424_v15 }
 0x65a   :  { %v4165_v27 = vpop.eup %4164  ;;  %v2380_v26 = vadd.f32 1.0, %v4163_v5  ;;  %4180 = vrcp.f32 %v2384_v18  ;;  %v3628_v18 = vmul.f32 -1.442695, %v2425_v33 }
 0x65b   :  { %v4167_v48 = vpop.eup %4166  ;;  %v2381_v31 = vadd.f32 1.0, %v4165_v27  ;;  %4182 = vrcp.f32 %v2379_v29  ;;  %v3629_v29 = vmul.f32 -1.442695, %v2426_v41 }
 0x65c   :  { %v4169_v30 = vpop.eup %4168  ;;  %v2382_v45 = vadd.f32 1.0, %v4167_v48  ;;  %4184 = vrcp.f32 %v2380_v26 }
 0x65d   :  { %v4171_v10 = vpop.eup %4170  ;;  %v2383_v58 = vadd.f32 1.0, %v4169_v30  ;;  %4186 = vrcp.f32 %v2381_v31  ;;  %v2478_v31 = vrot.slane %v2475_v63, 4 }
 0x65e   :  { %v4173_v39 = vpop.eup %4172  ;;  %v2385_v12 = vadd.f32 1.0, %v4171_v10  ;;  %4188 = vrcp.f32 %v2382_v45  ;;  %v2479_v45 = vrot.slane %v2475_v63, 5 }
 0x65f   :  { %v2386_v20 = vadd.f32 1.0, %v4173_v39  ;;  %4190 = vrcp.f32 %v2383_v58  ;;  %v4175_v7 = vpop.eup %4174  ;;  %v2480_v58 = vrot.slane %v2475_v63, 6 }
 0x660   :  { %4192 = vrcp.f32 %v2385_v12  ;;  %v4177_v5 = vpop.eup %4176  ;;  %v2451_v27 = vadd.f32 1.0, %v4175_v7  ;;  %v2481_v12 = vrot.slane %v2475_v63, 7  ;;  %v2482_v7 = vrot.slane %v2475_v63, 1 }
 0x661   :  { %4194 = vrcp.f32 %v2386_v20  ;;  %v4179_v32 = vpop.eup %4178  ;;  %v2452_v36 = vadd.f32 1.0, %v4177_v5 }
 0x662   :  { %4196 = vpow2.f32 %v3625_v25  ;;  %v2453_v61 = vadd.f32 1.0, %v4179_v32 }
 0x663   :  { %4198 = vpow2.f32 %v3626_v38 }
 0x664   :  { %v4181_v26 = vpop.eup %4180  ;;  %4200 = vpow2.f32 %v3627_v46 }
 0x665   :  { %v4183_v48 = vpop.eup %4182  ;;  %4202 = vpow2.f32 %v3628_v18  ;;  %v2497_v30 = vmul.f32 %v4181_v26, %v2475_v63 }
 0x666   :  { %v4185_v22 = vpop.eup %4184  ;;  %v2492_v15 = vmul.f32 %v4183_v48, %v2477_v3  ;;  %4204 = vpow2.f32 %v3629_v29  ;;  %v2483_v29 = vrot.slane %v2475_v63, 2 }
 0x667   :  { %v4187_v10 = vpop.eup %4186  ;;  %v2493_v33 = vmul.f32 %v4185_v22, %v2478_v31  ;;  %4206 = vrcp.f32 %v2451_v27 }
 0x668   :  { %v4189_v39 = vpop.eup %4188  ;;  %v2494_v41 = vmul.f32 %v4187_v10, %v2479_v45  ;;  %v2500_v25 = vadd.f32 %v2492_v15, %v4708_v8  ;;  %4208 = vrcp.f32 %v2452_v36 }
 0x669   :  { %v4191_v20 = vpop.eup %4190  ;;  %v2495_v38 = vmul.f32 %v4189_v39, %v2480_v58  ;;  %v2501_v46 = vadd.f32 %v2493_v33, %v4686_v24  ;;  %4210 = vrcp.f32 %v2453_v61  ;;  %v2532_v33 = vrot.slane %v5103_v60, 7 }
 0x66a   :  { %v4193_v18 = vpop.eup %4192  ;;  %v2502_v5 = vadd.f32 %v2494_v41, %v4692_v47  ;;  %4212 = vtanh.f32 %v2500_v25  ;;  %v2496_v32 = vmul.f32 %v4191_v20, %v2481_v12  ;;  %v2505_v12 = vadd.f32 %v2497_v30, %v4714_v23 }
 0x66b   :  { %v4195_v26 = vpop.eup %4194  ;;  %4214 = vtanh.f32 %v2501_v46  ;;  %v2498_v27 = vmul.f32 %v4193_v18, %v2482_v7  ;;  %v2503_v3 = vadd.f32 %v2495_v38, %v4697_v51  ;;  %v2533_v25 = vrot.slane %v5106_v35, 7 }
 0x66c   :  { %v4197_v48 = vpop.eup %4196  ;;  %v2499_v31 = vmul.f32 %v4195_v26, %v2483_v29  ;;  %v2504_v36 = vadd.f32 %v2496_v32, %v4702_v11  ;;  %4216 = vtanh.f32 %v2502_v5  ;;  %v2534_v7 = vrot.slane %v5108_v49, 7 }
 0x66d   :  { %v4199_v22 = vpop.eup %4198  ;;  %v2454_v45 = vadd.f32 1.0, %v4197_v48  ;;  %4218 = vtanh.f32 %v2503_v3  ;;  %v2506_v38 = vadd.f32 %v2498_v27, %v4721_v19 }
 0x66e   :  { %v4201_v61 = vpop.eup %4200  ;;  %v2455_v15 = vadd.f32 1.0, %v4199_v22  ;;  %4220 = vtanh.f32 %v2504_v36  ;;  %v2507_v18 = vadd.f32 %v2499_v31, %v4728_v42 }
 0x66f   :  { %v4203_v10 = vpop.eup %4202  ;;  %v2456_v58 = vadd.f32 1.0, %v4201_v61  ;;  %4222 = vrcp.f32 %v2454_v45 }
 0x670   :  { %v4205_v63 = vpop.eup %4204  ;;  %v2457_v39 = vadd.f32 1.0, %v4203_v10  ;;  %4224 = vrcp.f32 %v2455_v15  ;;  %v2535_v15 = vrot.slane %v5120_v50, 7 }
 0x671   :  { %v4207_v41 = vpop.eup %4206  ;;  %v2458_v20 = vadd.f32 1.0, %v4205_v63  ;;  %4226 = vrcp.f32 %v2456_v58  ;;  %v2536_v63 = vrot.slane %v5122_v54, 7 }
 0x672   :  { %v4209_v46 = vpop.eup %4208  ;;  %4228 = vrcp.f32 %v2457_v39  ;;  %v2547_v5 = vmul.f32 %v4207_v41, %v2532_v33  ;;  %v2516_v60 = vsub.f32 1.0, %v4207_v41 }
 0x673   :  { %v4211_v29 = vpop.eup %4210  ;;  %4230 = vrcp.f32 %v2458_v20  ;;  %v2548_v32 = vmul.f32 %v4209_v46, %v2533_v25  ;;  %v2517_v30 = vsub.f32 1.0, %v4209_v46  ;;  %v2537_v46 = vrot.slane %v5127_v14, 7 }
 0x674   :  { %v4213_v26 = vpop.eup %4212  ;;  %4232 = vtanh.f32 %v2505_v12  ;;  %v2549_v3 = vmul.f32 %v4211_v29, %v2534_v7  ;;  %v2518_v48 = vsub.f32 1.0, %v4211_v29  ;;  %v2538_v29 = vrot.slane %v5130_v0, 7 }
 0x675   :  { %v4215_v35 = vpop.eup %4214  ;;  %4234 = vtanh.f32 %v2506_v38  ;;  %v2524_v36 = vmul.f32 %v4213_v26, %v2516_v60 }
 0x676   :  { %v4217_v27 = vpop.eup %4216  ;;  %4236 = vtanh.f32 %v2507_v18  ;;  %v2525_v22 = vmul.f32 %v4215_v35, %v2517_v30 }
 0x677   :  { %v4219_v49 = vpop.eup %4218  ;;  %v2526_v45 = vmul.f32 %v4217_v27, %v2518_v48  ;;  %v5192_v61 = vadd.f32 %v2547_v5, %v2524_v36 }
 0x678   :  { %v4221_v31 = vpop.eup %4220  ;;  %v5195_v10 = vadd.f32 %v2548_v32, %v2525_v22 }
 0x679   :  { %v4223_v58 = vpop.eup %4222  ;;  %v5198_v33 = vadd.f32 %v2549_v3, %v2526_v45  ;;  %v2571_v39 = vrot.slane %v5192_v61, 5 }
 0x67a   :  { %v4225_v12 = vpop.eup %4224  ;;  %v2519_v41 = vsub.f32 1.0, %v4223_v58  ;;  %v2550_v25 = vmul.f32 %v4223_v58, %v2535_v15  ;;  %v2572_v20 = vrot.slane %v5195_v10, 4 }
 0x67b   :  { %v4227_v38 = vpop.eup %4226  ;;  %v2520_v7 = vsub.f32 1.0, %v4225_v12  ;;  %v2551_v18 = vmul.f32 %v4225_v12, %v2536_v63  ;;  %v2574_v50 = vrot.slane %v5198_v33, 3 }
 0x67c   :  { %v4229_v5 = vpop.eup %4228  ;;  %v2527_v54 = vmul.f32 %v4219_v49, %v2519_v41  ;;  %v2573_v60 = vsel %vm579_vm3, %v2572_v20, %v2571_v39  ;;  %v2521_v26 = vsub.f32 1.0, %v4227_v38  ;;  %v2552_v0 = vmul.f32 %v4227_v38, %v2182_v53 }
 0x67d   :  { %v4231_v32 = vpop.eup %4230  ;;  %v2528_v30 = vmul.f32 %v4221_v31, %v2520_v7  ;;  %v2553_v3 = vmul.f32 %v4229_v5, %v2537_v46  ;;  %v2575_v35 = vsel %vm582_vm4, %v2574_v50, %v2573_v60  ;;  %v2522_v36 = vsub.f32 1.0, %v4229_v5  ;;  %v4405_v5 = vld [vmem:[%s5405_s5] sm:$0xff] }
 0x67e   :  { %v4233_v48 = vpop.eup %4232  ;;  %v2554_v27 = vmul.f32 %v4231_v32, %v2538_v29  ;;  %v5207_v14 = vadd.f32 %v2550_v25, %v2527_v54  ;;  %v2523_v45 = vsub.f32 1.0, %v4231_v32 }
 0x67f   :  { %v4235_v22 = vpop.eup %4234  ;;  %v2529_v15 = vmul.f32 %v4233_v48, %v2521_v26  ;;  %v5211_v49 = vadd.f32 %v2551_v18, %v2528_v30 }
 0x680   :  { %v4237_v58 = vpop.eup %4236  ;;  %v2530_v63 = vmul.f32 %v4235_v22, %v2522_v36  ;;  %v2576_v31 = vrot.slane %v5207_v14, 2 }
 0x681   :  { %v2531_v39 = vmul.f32 %v4237_v58, %v2523_v45  ;;  %v5214_v12 = vadd.f32 %v2552_v0, %v2529_v15  ;;  %v2578_v41 = vrot.slane %v5211_v49, 1 }
 0x682   :  { %v5217_v20 = vadd.f32 %v2553_v3, %v2530_v63  ;;  %v2577_v25 = vsel %vm585_vm5, %v2576_v31, %v2575_v35 }
 0x683   :  { %v5220_v46 = vadd.f32 %v2554_v27, %v2531_v39  ;;  %v2579_v4 = vsel %vm588_vm6, %v2578_v41, %v2577_v25 }
 0x684   :  { %v2580_v53 = vsel %vm591_vm7, %v5214_v12, %v2579_v4  ;;  %v2581_v38 = vrot.slane %v5217_v20, 7 }
 0x685   :  { %v2583_v7 = vrot.slane %v5220_v46, 6 }
 0x686   :  { %v2582_v18 = vsel %vm594_vm8, %v2581_v38, %v2580_v53 }
 0x687   :  { %v2584_v50 = vsel %vm597_vm9, %v2583_v7, %v2582_v18 }
 0x688   :  { %3630 = vmatmul.mubr.msk.f32.vlgmr.msra.gmra.mrb[24].mxu1 %vm599_vm10, %v2584_v50  ;;  %3735 = vmatmul.mubr.msk.f32.vlgmr.msra.gmra.mrb[22].mxu0 %vm599_vm10, %v2584_v50 }
 0x689   :  { %2985 = vmatpush1.msra.mxu1 %v4405_v5  ;;  %3048 = vmatprep.mubr.f32.mxu1 %v4406_v1 }
 0x68a   :  { %3738 = vmatpush3.msra.mxu0 %v5055_v16  ;;  %3739 = vmatprep.mubr.msk.f32.mxu0 %vm4407_vm11, %v4406_v1 }
 0x68b   :  { %3742 = vmatprep.subr.mxu1 %v4406_v1 }
 0x75b   :  { %v2653_v29 = vpop.f32.mrb[24].mxu1  ;;  %v5241_v54 = vpop.f32.mrb[22].mxu0 }
 0x75c   :  { %v2729_v60 = vrot.slane %v2653_v29, 2  ;;  %v2730_v32 = vrot.slane %v2653_v29, 3  ;;  %v2731_v26 = vrot.slane %v2653_v29, 4  ;;  %v2732_v30 = vrot.slane %v2653_v29, 5  ;;  %v5243_v3 = vpop.f32.mrb[25].mxu1  ;;  %v3736_v35 = vpop.f32.mrb[23].mxu0 }
 0x75d   :  { %v2733_v48 = vrot.slane %v2653_v29, 6  ;;  %v2734_v36 = vrot.slane %v2653_v29, 7  ;;  %v2735_v27 = vrot.slane %v2653_v29, 1  ;;  %v2750_v16 = vadd.f32 %v2653_v29, %v4655_v40 }
 0x75e   :  { %v2744_v22 = vadd.f32 %v2729_v60, %v4582_v37  ;;  %v2745_v45 = vadd.f32 %v2730_v32, %v4589_v44  ;;  %v2746_v15 = vadd.f32 %v2731_v26, %v4596_v52  ;;  %v2747_v0 = vadd.f32 %v2732_v30, %v4614_v62 }
 0x75f   :  { %v2748_v58 = vadd.f32 %v2733_v48, %v4627_v9  ;;  %v2749_v63 = vadd.f32 %v2734_v36, %v4642_v21  ;;  %v3638_v31 = vmul.f32 -1.442695, %v2750_v16  ;;  %v2751_v39 = vadd.f32 %v2735_v27, %v4669_v55 }
 0x760   :  { %v3632_v41 = vmul.f32 -1.442695, %v2744_v22  ;;  %v3633_v25 = vmul.f32 -1.442695, %v2745_v45  ;;  %v3634_v4 = vmul.f32 -1.442695, %v2746_v15 }
 0x761   :  { %v3635_v53 = vmul.f32 -1.442695, %v2747_v0  ;;  %4238 = vpow2.f32 %v3638_v31  ;;  %v3636_v7 = vmul.f32 -1.442695, %v2748_v58  ;;  %v3637_v18 = vmul.f32 -1.442695, %v2749_v63 }
 0x762   :  { %4240 = vpow2.f32 %v3632_v41  ;;  %v3639_v50 = vmul.f32 -1.442695, %v2751_v39  ;;  %v2801_v5 = vrot.slane %v5243_v3, 2  ;;  %v2802_v29 = vrot.slane %v5243_v3, 3 }
 0x763   :  { %4242 = vpow2.f32 %v3633_v25  ;;  %v2803_v60 = vrot.slane %v5243_v3, 4  ;;  %v2804_v27 = vrot.slane %v5243_v3, 5  ;;  %v2805_v22 = vrot.slane %v5243_v3, 6 }
 0x764   :  { %4244 = vpow2.f32 %v3634_v4  ;;  %v2816_v32 = vadd.f32 %v2801_v5, %v4601_v57  ;;  %v2817_v26 = vadd.f32 %v2802_v29, %v4609_v59  ;;  %v2806_v0 = vrot.slane %v5243_v3, 7 }
 0x765   :  { %4246 = vpow2.f32 %v3635_v53  ;;  %v2818_v30 = vadd.f32 %v2803_v60, %v4619_v2  ;;  %v2807_v41 = vrot.slane %v5243_v3, 1  ;;  %v2819_v25 = vadd.f32 %v2804_v27, %v4633_v13 }
 0x766   :  { %4248 = vpow2.f32 %v3636_v7  ;;  %v3640_v35 = vmul.f32 -1.442695, %v2816_v32  ;;  %v3641_v48 = vmul.f32 -1.442695, %v2817_v26  ;;  %v2820_v7 = vadd.f32 %v2805_v22, %v4637_v17 }
 0x767   :  { %4250 = vpow2.f32 %v3637_v18  ;;  %v3642_v36 = vmul.f32 -1.442695, %v2818_v30  ;;  %v2821_v5 = vadd.f32 %v2806_v0, %v4649_v34  ;;  %v2822_v32 = vadd.f32 %v5243_v3, %v4660_v43 }
 0x768   :  { %4252 = vpow2.f32 %v3639_v50  ;;  %v3644_v27 = vmul.f32 -1.442695, %v2820_v7 }
 0x769   :  { %4254 = vpow2.f32 %v3640_v35  ;;  %v2823_v35 = vadd.f32 %v2807_v41, %v4675_v6  ;;  %v3645_v22 = vmul.f32 -1.442695, %v2821_v5 }
 0x76a   :  { %4256 = vpow2.f32 %v3641_v48  ;;  %v3643_v48 = vmul.f32 -1.442695, %v2819_v25 }
 0x76b   :  { %v4239_v16 = vpop.eup %4238  ;;  %4258 = vpow2.f32 %v3642_v36  ;;  %v3647_v3 = vmul.f32 -1.442695, %v2823_v35 }
 0x76c   :  { %v4241_v45 = vpop.eup %4240  ;;  %v2782_v15 = vadd.f32 1.0, %v4239_v16  ;;  %v2872_v16 = vadd.f32 %v5241_v54, %v4678_v28 }
 0x76d   :  { %v4243_v58 = vpop.eup %4242  ;;  %v2776_v63 = vadd.f32 1.0, %v4241_v45 }
 0x76e   :  { %v4245_v31 = vpop.eup %4244  ;;  %v2777_v39 = vadd.f32 1.0, %v4243_v58  ;;  %4260 = vrcp.f32 %v2782_v15  ;;  %v3646_v15 = vmul.f32 -1.442695, %v2822_v32 }
 0x76f   :  { %v4247_v4 = vpop.eup %4246  ;;  %v2778_v53 = vadd.f32 1.0, %v4245_v31  ;;  %4262 = vrcp.f32 %v2776_v63 }
 0x770   :  { %v4249_v18 = vpop.eup %4248  ;;  %v2779_v50 = vadd.f32 1.0, %v4247_v4  ;;  %4264 = vrcp.f32 %v2777_v39  ;;  %v2874_v39 = vrot.slane %v2872_v16, 2  ;;  %v2875_v4 = vrot.slane %v2872_v16, 3 }
 0x771   :  { %v4251_v29 = vpop.eup %4250  ;;  %v2780_v60 = vadd.f32 1.0, %v4249_v18  ;;  %4266 = vrcp.f32 %v2778_v53  ;;  %v2876_v18 = vrot.slane %v2872_v16, 4 }
 0x772   :  { %v4253_v26 = vpop.eup %4252  ;;  %v2781_v30 = vadd.f32 1.0, %v4251_v29  ;;  %4268 = vrcp.f32 %v2779_v50  ;;  %v2877_v29 = vrot.slane %v2872_v16, 5 }
 0x773   :  { %v2783_v36 = vadd.f32 1.0, %v4253_v26  ;;  %4270 = vrcp.f32 %v2780_v60  ;;  %v4255_v45 = vpop.eup %4254  ;;  %v2878_v26 = vrot.slane %v2872_v16, 6 }
 0x774   :  { %4272 = vrcp.f32 %v2781_v30  ;;  %v4257_v0 = vpop.eup %4256  ;;  %v2848_v63 = vadd.f32 1.0, %v4255_v45 }
 0x775   :  { %4274 = vrcp.f32 %v2783_v36  ;;  %v4259_v58 = vpop.eup %4258  ;;  %v2849_v41 = vadd.f32 1.0, %v4257_v0  ;;  %v2879_v36 = vrot.slane %v2872_v16, 7  ;;  %v2880_v0 = vrot.slane %v2872_v16, 1 }
 0x776   :  { %4276 = vpow2.f32 %v3643_v48  ;;  %v2850_v53 = vadd.f32 1.0, %v4259_v58 }
 0x777   :  { %4278 = vpow2.f32 %v3644_v27 }
 0x778   :  { %v4261_v31 = vpop.eup %4260  ;;  %4280 = vpow2.f32 %v3645_v22 }
 0x779   :  { %v4263_v25 = vpop.eup %4262  ;;  %4282 = vpow2.f32 %v3646_v15  ;;  %v2895_v7 = vmul.f32 %v4261_v31, %v2872_v16 }
 0x77a   :  { %v4265_v54 = vpop.eup %4264  ;;  %v2889_v50 = vmul.f32 %v4263_v25, %v2874_v39  ;;  %4284 = vpow2.f32 %v3647_v3 }
 0x77b   :  { %v4267_v5 = vpop.eup %4266  ;;  %v2890_v60 = vmul.f32 %v4265_v54, %v2875_v4  ;;  %4286 = vrcp.f32 %v2848_v63 }
 0x77c   :  { %v4269_v32 = vpop.eup %4268  ;;  %v2891_v30 = vmul.f32 %v4267_v5, %v2876_v18  ;;  %v2897_v35 = vadd.f32 %v2889_v50, %v4708_v8  ;;  %4288 = vrcp.f32 %v2849_v41 }
 0x77d   :  { %v4271_v48 = vpop.eup %4270  ;;  %v2892_v27 = vmul.f32 %v4269_v32, %v2877_v29  ;;  %v2898_v22 = vadd.f32 %v2890_v60, %v4686_v24  ;;  %4290 = vrcp.f32 %v2850_v53  ;;  %v2929_v29 = vrot.slane %v5192_v61, 7 }
 0x77e   :  { %v4273_v45 = vpop.eup %4272  ;;  %v2899_v15 = vadd.f32 %v2891_v30, %v4692_v47  ;;  %4292 = vtanh.f32 %v2897_v35  ;;  %v2893_v3 = vmul.f32 %v4271_v48, %v2878_v26  ;;  %v2930_v30 = vrot.slane %v5195_v10, 7 }
 0x77f   :  { %v4275_v58 = vpop.eup %4274  ;;  %4294 = vtanh.f32 %v2898_v22  ;;  %v2894_v63 = vmul.f32 %v4273_v45, %v2879_v36  ;;  %v2900_v31 = vadd.f32 %v2892_v27, %v4697_v51  ;;  %v2903_v48 = vadd.f32 %v2895_v7, %v4721_v19 }
 0x780   :  { %v4277_v39 = vpop.eup %4276  ;;  %v2896_v25 = vmul.f32 %v4275_v58, %v2880_v0  ;;  %v2901_v41 = vadd.f32 %v2893_v3, %v4702_v11  ;;  %4296 = vtanh.f32 %v2899_v15  ;;  %v2931_v27 = vrot.slane %v5198_v33, 7 }
 0x781   :  { %v4279_v4 = vpop.eup %4278  ;;  %v2851_v54 = vadd.f32 1.0, %v4277_v39  ;;  %4298 = vtanh.f32 %v2900_v31  ;;  %v2902_v32 = vadd.f32 %v2894_v63, %v4714_v23 }
 0x782   :  { %v4281_v53 = vpop.eup %4280  ;;  %v2852_v18 = vadd.f32 1.0, %v4279_v4  ;;  %4300 = vtanh.f32 %v2901_v41  ;;  %v2904_v22 = vadd.f32 %v2896_v25, %v4728_v42 }
 0x783   :  { %v4283_v50 = vpop.eup %4282  ;;  %v2853_v5 = vadd.f32 1.0, %v4281_v53  ;;  %4302 = vrcp.f32 %v2851_v54  ;;  %v2932_v53 = vrot.slane %v5207_v14, 7 }
 0x784   :  { %v4285_v16 = vpop.eup %4284  ;;  %v2854_v60 = vadd.f32 1.0, %v4283_v50  ;;  %4304 = vrcp.f32 %v2852_v18 }
 0x785   :  { %v4287_v26 = vpop.eup %4286  ;;  %4306 = vrcp.f32 %v2853_v5  ;;  %v2855_v35 = vadd.f32 1.0, %v4285_v16  ;;  %v2933_v5 = vrot.slane %v5211_v49, 7 }
 0x786   :  { %v4289_v36 = vpop.eup %4288  ;;  %4308 = vrcp.f32 %v2854_v60  ;;  %v2944_v45 = vmul.f32 %v4287_v26, %v2929_v29  ;;  %v2913_v61 = vsub.f32 1.0, %v4287_v26 }
 0x787   :  { %v4291_v15 = vpop.eup %4290  ;;  %4310 = vrcp.f32 %v2855_v35  ;;  %v2945_v0 = vmul.f32 %v4289_v36, %v2930_v30  ;;  %v2914_v58 = vsub.f32 1.0, %v4289_v36 }
 0x788   :  { %v4293_v3 = vpop.eup %4292  ;;  %4312 = vtanh.f32 %v2902_v32  ;;  %v2946_v63 = vmul.f32 %v4291_v15, %v2931_v27  ;;  %v2915_v31 = vsub.f32 1.0, %v4291_v15  ;;  %v2934_v32 = vrot.slane %v5214_v12, 7 }
 0x789   :  { %v4295_v10 = vpop.eup %4294  ;;  %4314 = vtanh.f32 %v2903_v48  ;;  %v2921_v39 = vmul.f32 %v4293_v3, %v2913_v61 }
 0x78a   :  { %v4297_v7 = vpop.eup %4296  ;;  %4316 = vtanh.f32 %v2904_v22  ;;  %v2922_v41 = vmul.f32 %v4295_v10, %v2914_v58 }
 0x78b   :  { %v4299_v33 = vpop.eup %4298  ;;  %v2923_v4 = vmul.f32 %v4297_v7, %v2915_v31  ;;  %v5282_v54 = vadd.f32 %v2944_v45, %v2921_v39  ;;  %v2935_v45 = vrot.slane %v5220_v46, 7 }
 0x78c   :  { %v4301_v25 = vpop.eup %4300  ;;  %v5285_v18 = vadd.f32 %v2945_v0, %v2922_v41 }
 0x78d   :  { %v4303_v50 = vpop.eup %4302  ;;  %v5288_v16 = vadd.f32 %v2946_v63, %v2923_v4  ;;  %v2968_v29 = vrot.slane %v5282_v54, 6 }
 0x78e   :  { %v4305_v60 = vpop.eup %4304  ;;  %v2916_v26 = vsub.f32 1.0, %v4303_v50  ;;  %v2947_v30 = vmul.f32 %v4303_v50, %v2932_v53  ;;  %v2969_v35 = vrot.slane %v5285_v18, 5 }
 0x78f   :  { %v4307_v48 = vpop.eup %4306  ;;  %v2917_v36 = vsub.f32 1.0, %v4305_v60  ;;  %v2948_v27 = vmul.f32 %v4305_v60, %v2933_v5  ;;  %v2971_v14 = vrot.slane %v5288_v16, 4 }
 0x790   :  { %v4309_v22 = vpop.eup %4308  ;;  %v2924_v49 = vmul.f32 %v4299_v33, %v2916_v26  ;;  %v2949_v15 = vmul.f32 %v4307_v48, %v2934_v32  ;;  %v2970_v61 = vsel %vm579_vm3, %v2969_v35, %v2968_v29  ;;  %v2918_v3 = vsub.f32 1.0, %v4307_v48 }
 0x791   :  { %v4311_v0 = vpop.eup %4310  ;;  %v2925_v58 = vmul.f32 %v4301_v25, %v2917_v36  ;;  %v2972_v12 = vsel %vm582_vm4, %v2971_v14, %v2970_v61  ;;  %v2919_v10 = vsub.f32 1.0, %v4309_v22  ;;  %v2950_v50 = vmul.f32 %v4309_v22, %v2581_v38  ;;  %v429_v14 = vld [vmem:[%s5405_s5 + $0x18] sm:$0xff] }
 0x792   :  { %v4313_v63 = vpop.eup %4312  ;;  %v2951_v31 = vmul.f32 %v4311_v0, %v2935_v45  ;;  %v5297_v39 = vadd.f32 %v2947_v30, %v2924_v49  ;;  %v2920_v41 = vsub.f32 1.0, %v4311_v0 }
 0x793   :  { %v4315_v7 = vpop.eup %4314  ;;  %v2926_v4 = vmul.f32 %v4313_v63, %v2918_v3  ;;  %v5299_v53 = vadd.f32 %v2948_v27, %v2925_v58 }
 0x794   :  { %v4317_v46 = vpop.eup %4316  ;;  %v2927_v33 = vmul.f32 %v4315_v7, %v2919_v10  ;;  %v2973_v5 = vrot.slane %v5297_v39, 3 }
 0x795   :  { %v2928_v25 = vmul.f32 %v4317_v46, %v2920_v41  ;;  %v5304_v29 = vadd.f32 %v2949_v15, %v2926_v4  ;;  %v2975_v60 = vrot.slane %v5299_v53, 2 }
 0x796   :  { %v5307_v32 = vadd.f32 %v2950_v50, %v2927_v33  ;;  %v2974_v26 = vsel %vm585_vm5, %v2973_v5, %v2972_v12 }
 0x797   :  { %v5310_v30 = vadd.f32 %v2951_v31, %v2928_v25  ;;  %v2976_v35 = vsel %vm588_vm6, %v2975_v60, %v2974_v26  ;;  %v2977_v48 = vrot.slane %v5304_v29, 1 }
 0x799   :  { %v2978_v20 = vsel %vm591_vm7, %v2977_v48, %v2976_v35  ;;  %v2980_v38 = vrot.slane %v5310_v30, 7 }
 0x79a   :  { %v2979_v36 = vsel %vm594_vm8, %v5307_v32, %v2978_v20 }
 0x79b   :  { %v2981_v27 = vsel %vm597_vm9, %v2980_v38, %v2979_v36 }
 0x79c   :  { %3648 = vmatmul.mubr.msk.f32.vlgmr.msra.gmra.mrb[26].mxu1 %vm599_vm10, %v2981_v27  ;;  %3740 = vmatmul.mubr.msk.f32.vlgmr.msra.gmra.mrb[24].mxu0 %vm599_vm10, %v2981_v27 }
 0x79d   :  { %3744 = vmatprep.mubr.msk.f32.mxu1 %vm4407_vm11, %v4406_v1  ;;  %3743 = vmatpush3.msra.mxu1 %v429_v14 }
 0x86f   :  { %v3050_v22 = vpop.f32.mrb[26].mxu1  ;;  %v5328_v45 = vpop.f32.mrb[24].mxu0 }
 0x870   :  { %v3126_v49 = vrot.slane %v3050_v22, 1  ;;  %v3127_v15 = vrot.slane %v3050_v22, 2  ;;  %v3128_v61 = vrot.slane %v3050_v22, 3  ;;  %v3129_v0 = vrot.slane %v3050_v22, 4  ;;  %v5330_v3 = vpop.f32.mrb[27].mxu1  ;;  %v3741_v58 = vpop.f32.mrb[25].mxu0 }
 0x871   :  { %v3130_v12 = vrot.slane %v3050_v22, 5  ;;  %v3131_v63 = vrot.slane %v3050_v22, 6  ;;  %v3132_v10 = vrot.slane %v3050_v22, 7  ;;  %v3148_v31 = vadd.f32 %v3050_v22, %v4669_v55 }
 0x872   :  { %v3141_v7 = vadd.f32 %v3126_v49, %v4582_v37  ;;  %v3142_v41 = vadd.f32 %v3127_v15, %v4589_v44  ;;  %v3143_v4 = vadd.f32 %v3128_v61, %v4596_v52  ;;  %v3144_v46 = vadd.f32 %v3129_v0, %v4614_v62 }
 0x873   :  { %v3145_v33 = vadd.f32 %v3130_v12, %v4627_v9  ;;  %v3146_v50 = vadd.f32 %v3131_v63, %v4642_v21  ;;  %v3657_v5 = vmul.f32 -1.442695, %v3148_v31  ;;  %v3147_v25 = vadd.f32 %v3132_v10, %v4655_v40 }
 0x874   :  { %v3650_v60 = vmul.f32 -1.442695, %v3141_v7  ;;  %v3651_v26 = vmul.f32 -1.442695, %v3142_v41  ;;  %v3652_v35 = vmul.f32 -1.442695, %v3143_v4 }
 0x875   :  { %v3653_v48 = vmul.f32 -1.442695, %v3144_v46  ;;  %4318 = vpow2.f32 %v3657_v5  ;;  %v3654_v37 = vmul.f32 -1.442695, %v3145_v33  ;;  %v3655_v44 = vmul.f32 -1.442695, %v3146_v50 }
 0x876   :  { %4320 = vpow2.f32 %v3650_v60  ;;  %v3656_v52 = vmul.f32 -1.442695, %v3147_v25  ;;  %v3198_v62 = vrot.slane %v5330_v3, 1  ;;  %v3199_v9 = vrot.slane %v5330_v3, 2 }
 0x877   :  { %4322 = vpow2.f32 %v3651_v26  ;;  %v3200_v21 = vrot.slane %v5330_v3, 3  ;;  %v3201_v22 = vrot.slane %v5330_v3, 4  ;;  %v3202_v15 = vrot.slane %v5330_v3, 5 }
 0x878   :  { %4324 = vpow2.f32 %v3652_v35  ;;  %v3213_v40 = vadd.f32 %v3198_v62, %v4601_v57  ;;  %v3214_v55 = vadd.f32 %v3199_v9, %v4609_v59  ;;  %v3203_v58 = vrot.slane %v5330_v3, 6 }
 0x879   :  { %4326 = vpow2.f32 %v3653_v48  ;;  %v3215_v20 = vadd.f32 %v3200_v21, %v4619_v2  ;;  %v3204_v59 = vrot.slane %v5330_v3, 7  ;;  %v3216_v10 = vadd.f32 %v3201_v22, %v4633_v13 }
 0x87a   :  { %4328 = vpow2.f32 %v3654_v37  ;;  %v3658_v36 = vmul.f32 -1.442695, %v3213_v40  ;;  %v3659_v27 = vmul.f32 -1.442695, %v3214_v55  ;;  %v3217_v41 = vadd.f32 %v3202_v15, %v4637_v17 }
 0x87b   :  { %4330 = vpow2.f32 %v3655_v44  ;;  %v3660_v14 = vmul.f32 -1.442695, %v3215_v20  ;;  %v3218_v33 = vadd.f32 %v3203_v58, %v4649_v34  ;;  %v3219_v25 = vadd.f32 %v3204_v59, %v4660_v43 }
 0x87c   :  { %4332 = vpow2.f32 %v3656_v52  ;;  %v3220_v13 = vadd.f32 %v5330_v3, %v4675_v6  ;;  %v3661_v35 = vmul.f32 -1.442695, %v3216_v10  ;;  %v3662_v17 = vmul.f32 -1.442695, %v3217_v41 }
 0x87d   :  { %4334 = vpow2.f32 %v3658_v36  ;;  %v3269_v37 = vadd.f32 %v5328_v45, %v4678_v28  ;;  %v3663_v34 = vmul.f32 -1.442695, %v3218_v33  ;;  %v3664_v52 = vmul.f32 -1.442695, %v3219_v25 }
 0x87e   :  { %4336 = vpow2.f32 %v3659_v27  ;;  %v3665_v43 = vmul.f32 -1.442695, %v3220_v13 }
 0x87f   :  { %v4319_v49 = vpop.eup %4318  ;;  %4338 = vpow2.f32 %v3660_v14  ;;  %v3271_v6 = vrot.slane %v3269_v37, 1  ;;  %v3272_v20 = vrot.slane %v3269_v37, 2  ;;  %v3273_v45 = vrot.slane %v3269_v37, 3 }
 0x880   :  { %v4321_v61 = vpop.eup %4320  ;;  %v3180_v0 = vadd.f32 1.0, %v4319_v49  ;;  %v3274_v49 = vrot.slane %v3269_v37, 4  ;;  %v3276_v59 = vrot.slane %v3269_v37, 6 }
 0x881   :  { %v4323_v57 = vpop.eup %4322  ;;  %v3173_v12 = vadd.f32 1.0, %v4321_v61 }
 0x882   :  { %v4325_v2 = vpop.eup %4324  ;;  %v3174_v63 = vadd.f32 1.0, %v4323_v57  ;;  %4340 = vrcp.f32 %v3180_v0  ;;  %v3275_v0 = vrot.slane %v3269_v37, 5 }
 0x883   :  { %v4327_v31 = vpop.eup %4326  ;;  %v3175_v7 = vadd.f32 1.0, %v4325_v2  ;;  %4342 = vrcp.f32 %v3173_v12 }
 0x884   :  { %v4329_v4 = vpop.eup %4328  ;;  %v3176_v46 = vadd.f32 1.0, %v4327_v31  ;;  %4344 = vrcp.f32 %v3174_v63  ;;  %v3277_v31 = vrot.slane %v3269_v37, 7 }
 0x885   :  { %v4331_v50 = vpop.eup %4330  ;;  %v3177_v5 = vadd.f32 1.0, %v4329_v4  ;;  %4346 = vrcp.f32 %v3175_v7 }
 0x886   :  { %v4333_v60 = vpop.eup %4332  ;;  %v3178_v26 = vadd.f32 1.0, %v4331_v50  ;;  %4348 = vrcp.f32 %v3176_v46 }
 0x887   :  { %v3179_v48 = vadd.f32 1.0, %v4333_v60  ;;  %4350 = vrcp.f32 %v3177_v5  ;;  %v4335_v44 = vpop.eup %4334 }
 0x888   :  { %4352 = vrcp.f32 %v3178_v26  ;;  %v4337_v62 = vpop.eup %4336  ;;  %v3245_v21 = vadd.f32 1.0, %v4335_v44 }
 0x889   :  { %4354 = vrcp.f32 %v3179_v48  ;;  %v4339_v9 = vpop.eup %4338  ;;  %v3246_v3 = vadd.f32 1.0, %v4337_v62  ;;  %v3326_v48 = vrot.slane %v5282_v54, 7  ;;  %v3328_v62 = vrot.slane %v5288_v16, 7 }
 0x88a   :  { %4356 = vpow2.f32 %v3661_v35  ;;  %v3247_v36 = vadd.f32 1.0, %v4339_v9 }
 0x88b   :  { %4358 = vpow2.f32 %v3662_v17 }
 0x88c   :  { %v4341_v40 = vpop.eup %4340  ;;  %4360 = vpow2.f32 %v3663_v34 }
 0x88d   :  { %v4343_v55 = vpop.eup %4342  ;;  %4362 = vpow2.f32 %v3664_v52  ;;  %v3293_v27 = vmul.f32 %v4341_v40, %v3269_v37 }
 0x88e   :  { %v4345_v28 = vpop.eup %4344  ;;  %v3286_v14 = vmul.f32 %v4343_v55, %v3271_v6  ;;  %4364 = vpow2.f32 %v3665_v43 }
 0x88f   :  { %v4347_v22 = vpop.eup %4346  ;;  %v3287_v15 = vmul.f32 %v4345_v28, %v3272_v20  ;;  %4366 = vrcp.f32 %v3245_v21  ;;  %v3301_v43 = vadd.f32 %v3293_v27, %v4728_v42  ;;  %v3329_v27 = vrot.slane %v5297_v39, 7 }
 0x890   :  { %v4349_v61 = vpop.eup %4348  ;;  %v3288_v58 = vmul.f32 %v4347_v22, %v3273_v45  ;;  %v3294_v57 = vadd.f32 %v3286_v14, %v4708_v8  ;;  %4368 = vrcp.f32 %v3246_v3 }
 0x891   :  { %v4351_v12 = vpop.eup %4350  ;;  %v3289_v2 = vmul.f32 %v4349_v61, %v3274_v49  ;;  %v3295_v63 = vadd.f32 %v3287_v15, %v4686_v24  ;;  %4370 = vrcp.f32 %v3247_v36  ;;  %v3330_v49 = vrot.slane %v5299_v53, 7 }
 0x892   :  { %v4353_v10 = vpop.eup %4352  ;;  %4372 = vtanh.f32 %v3294_v57  ;;  %v3290_v7 = vmul.f32 %v4351_v12, %v3275_v0  ;;  %v3296_v41 = vadd.f32 %v3288_v58, %v4692_v47  ;;  %v3331_v58 = vrot.slane %v5304_v29, 7 }
 0x893   :  { %v4355_v4 = vpop.eup %4354  ;;  %4374 = vtanh.f32 %v3295_v63  ;;  %v3291_v46 = vmul.f32 %v4353_v10, %v3276_v59  ;;  %v3297_v33 = vadd.f32 %v3289_v2, %v4697_v51  ;;  %v3332_v63 = vrot.slane %v5307_v32, 7 }
 0x894   :  { %v4357_v50 = vpop.eup %4356  ;;  %v3292_v8 = vmul.f32 %v4355_v4, %v3277_v31  ;;  %v3298_v5 = vadd.f32 %v3290_v7, %v4702_v11  ;;  %4376 = vtanh.f32 %v3296_v41  ;;  %v3327_v11 = vrot.slane %v5285_v18, 7 }
 0x895   :  { %v4359_v25 = vpop.eup %4358  ;;  %v3248_v60 = vadd.f32 1.0, %v4357_v50  ;;  %4378 = vtanh.f32 %v3297_v33  ;;  %v3299_v51 = vadd.f32 %v3291_v46, %v4714_v23 }
 0x896   :  { %v4361_v24 = vpop.eup %4360  ;;  %v3249_v26 = vadd.f32 1.0, %v4359_v25  ;;  %4380 = vtanh.f32 %v3298_v5  ;;  %v3300_v44 = vadd.f32 %v3292_v8, %v4721_v19 }
 0x897   :  { %v4363_v13 = vpop.eup %4362  ;;  %v3250_v35 = vadd.f32 1.0, %v4361_v24  ;;  %4382 = vrcp.f32 %v3248_v60 }
 0x898   :  { %v4365_v47 = vpop.eup %4364  ;;  %v3251_v17 = vadd.f32 1.0, %v4363_v13  ;;  %4384 = vrcp.f32 %v3249_v26 }
 0x899   :  { %v4367_v37 = vpop.eup %4366  ;;  %v3252_v34 = vadd.f32 1.0, %v4365_v47  ;;  %4386 = vrcp.f32 %v3250_v35 }
 0x89a   :  { %v4369_v52 = vpop.eup %4368  ;;  %4388 = vrcp.f32 %v3251_v17  ;;  %v3341_v9 = vmul.f32 %v4367_v37, %v3326_v48  ;;  %v3310_v54 = vsub.f32 1.0, %v4367_v37 }
 0x89b   :  { %v4371_v21 = vpop.eup %4370  ;;  %4390 = vrcp.f32 %v3252_v34  ;;  %v3342_v40 = vmul.f32 %v4369_v52, %v3327_v11  ;;  %v3311_v23 = vsub.f32 1.0, %v4369_v52 }
 0x89c   :  { %v4373_v6 = vpop.eup %4372  ;;  %4392 = vtanh.f32 %v3299_v51  ;;  %v3343_v3 = vmul.f32 %v4371_v21, %v3328_v62  ;;  %v3312_v55 = vsub.f32 1.0, %v4371_v21 }
 0x89d   :  { %v4375_v18 = vpop.eup %4374  ;;  %4394 = vtanh.f32 %v3300_v44  ;;  %v3318_v20 = vmul.f32 %v4373_v6, %v3310_v54 }
 0x89e   :  { %v4377_v19 = vpop.eup %4376  ;;  %4396 = vtanh.f32 %v3301_v43  ;;  %v3319_v36 = vmul.f32 %v4375_v18, %v3311_v23 }
 0x89f   :  { %v4379_v16 = vpop.eup %4378  ;;  %v3320_v28 = vmul.f32 %v4377_v19, %v3312_v55  ;;  %v3349_v45 = vadd.f32 %v3341_v9, %v3318_v20  ;;  %v5412_v20 = vlaneseq }
 0x8a0   :  { %v4381_v42 = vpop.eup %4380  ;;  %v3350_v14 = vadd.f32 %v3342_v40, %v3319_v36 }
 0x8a1   :  { %v4383_v22 = vpop.eup %4382  ;;  %v3351_v15 = vadd.f32 %v3343_v3, %v3320_v28  ;;  %v3365_v61 = vrot.slane %v3349_v45, 7  ;;  %v3454_v19 = vand.u32 127, %v5412_v20 }
 0x8a2   :  { %v4385_v0 = vpop.eup %4384  ;;  %v3313_v57 = vsub.f32 1.0, %v4383_v22  ;;  %v3344_v12 = vmul.f32 %v4383_v22, %v3329_v27  ;;  %v3366_v59 = vrot.slane %v3350_v14, 6 }
 0x8a3   :  { %v4387_v2 = vpop.eup %4386  ;;  %v3314_v10 = vsub.f32 1.0, %v4385_v0  ;;  %v3345_v31 = vmul.f32 %v4385_v0, %v3330_v49  ;;  %v3368_v7 = vrot.slane %v3351_v15, 5 }
 0x8a4   :  { %v4389_v41 = vpop.eup %4388  ;;  %v3321_v39 = vmul.f32 %v4379_v16, %v3313_v57  ;;  %v3346_v4 = vmul.f32 %v4387_v2, %v3331_v58  ;;  %v3367_v46 = vsel %vm579_vm3, %v3366_v59, %v3365_v61  ;;  %v3315_v33 = vsub.f32 1.0, %v4387_v2 }
 0x8a5   :  { %v4391_v53 = vpop.eup %4390  ;;  %v3322_v50 = vmul.f32 %v4381_v42, %v3314_v10  ;;  %v3347_v8 = vmul.f32 %v4389_v41, %v3332_v63  ;;  %v3369_v29 = vsel %vm582_vm4, %v3368_v7, %v3367_v46  ;;  %v3316_v25 = vsub.f32 1.0, %v4389_v41 }
 0x8a6   :  { %v4393_v5 = vpop.eup %4392  ;;  %v3352_v60 = vadd.f32 %v3344_v12, %v3321_v39  ;;  %v3317_v26 = vsub.f32 1.0, %v4391_v53  ;;  %v3348_v51 = vmul.f32 %v4391_v53, %v2980_v38  ;;  %v38_v38 = vld [vmem:[%s5408_s2] sm:$0xff] }
 0x8a7   :  { %v4395_v24 = vpop.eup %4394  ;;  %v3323_v32 = vmul.f32 %v4393_v5, %v3315_v33  ;;  %v3353_v13 = vadd.f32 %v3345_v31, %v3322_v50 }
 0x8a8   :  { %v4397_v35 = vpop.eup %4396  ;;  %v3324_v47 = vmul.f32 %v4395_v24, %v3316_v25  ;;  %v3370_v48 = vrot.slane %v3352_v60, 4 }
 0x8a9   :  { %v3325_v17 = vmul.f32 %v4397_v35, %v3317_v26  ;;  %v3354_v37 = vadd.f32 %v3346_v4, %v3323_v32  ;;  %v3372_v11 = vrot.slane %v3353_v13, 3 }
 0x8aa   :  { %v3355_v34 = vadd.f32 %v3347_v8, %v3324_v47  ;;  %v3371_v44 = vsel %vm585_vm5, %v3370_v48, %v3369_v29 }
 0x8ab   :  { %v3356_v52 = vadd.f32 %v3348_v51, %v3325_v17  ;;  %v3373_v62 = vsel %vm588_vm6, %v3372_v11, %v3371_v44  ;;  %v3374_v43 = vrot.slane %v3354_v37, 2 }
 0x8ac   :  { %v3376_v9 = vrot.slane %v3355_v34, 1 }
 0x8ad   :  { %v3375_v21 = vsel %vm591_vm7, %v3374_v43, %v3373_v62 }
 0x8ae   :  { %v3377_v54 = vsel %vm594_vm8, %v3376_v9, %v3375_v21 }
 0x8af   :  { %v3378_v40 = vsel %vm597_vm9, %v3356_v52, %v3377_v54 }
 0x8b0   :  { %3745 = vmatmul.mubr.msk.f32.vlgmr.msra.gmra.mrb[28].mxu1 %vm599_vm10, %v3378_v40 }
 0x983   :  { %v3447_v30 = vpop.f32.mrb[28].mxu1 }
 0x984   :  { %v3451_v6 = vadd.f32 %v3447_v30, %v4598_v56  ;;  %v3746_v23 = vpop.f32.mrb[29].mxu1 }
 0x986   :  { %v3452_v3 = vadd.f32 %v3451_v6, %v38_v38  ;;  %v3478_v55 = vsel %vm176_vm1, %v3451_v6, -inf }
 0x988   :  { %v3455_v18 = vsel %vm176_vm1, %v3452_v3, -inf }
 0x989   :  { %3456 = vmax.xlane.f32.xlu0 %v3455_v18 }
 0x98d   :  { %3479 = vmax.xlane.f32.xlu0 %v3478_v55 }
 0xa16   :  { %v3457_v36 = vpop.xlane.xlu0 %3456 }
 0xa17   :  { %vm3458_vm12 = vcmp.eq.f32.partialorder %v3452_v3, %v3457_v36 }
 0xa18   :  { %v3459_v16 = vsel %vm3458_vm12, %v3454_v19, 4 }
 0xa19   :  { %v3460_v28 = vsel %vm176_vm1, %v3459_v16, 2147483647 }
 0xa1a   :  { %v3480_v45 = vpop.xlane.xlu0 %3479  ;;  %v3462_v42 = vshra.s32 %v3460_v28, 16  ;;  %v3461_v15 = vand.u32 65535, %v3460_v28 }
 0xa1b   :  { %v3481_v27 = vsub.f32 %v3451_v6, %v3480_v45 }
 0xa1c   :  { %v3464_v14 = vcvt.s32.f32 %v3462_v42  ;;  %v3463_v0 = vcvt.s32.f32 %v3461_v15 }
 0xa1d   :  { %v3482_v56 = vmul.f32 1.442695, %v3481_v27 }
 0xa1e   :  { %3465 = vmin.xlane.f32.xlu1 %v3464_v14 }
 0xa1f   :  { %4398 = vpow2.f32 %v3482_v56 }
 0xa29   :  { %v4399_v22 = vpop.eup %4398 }
 0xa2a   :  { %v3484_v49 = vsel %vm176_vm1, %v4399_v22, 0.0 }
 0xa2b   :  { %3485 = vadd.xlane.f32.xlu1 %v3484_v49 }
 0xaab   :  { %v3466_v61 = vpop.xlane.xlu1 %3465 }
 0xaac   :  { %vm3467_vm13 = vcmp.eq.f32.partialorder %v3464_v14, %v3466_v61  ;;  %v3472_v2 = vcvt.f32.s32 %v3466_v61 }
 0xaad   :  { %v3468_v58 = vsel %vm3467_vm13, %v3463_v0, inf }
 0xaae   :  { %3469 = vmin.xlane.f32.xlu0 %v3468_v58  ;;  %v3473_v10 = vshll.u32 %v3472_v2, 16 }
 0xab8   :  { %v3486_v57 = vpop.xlane.xlu1 %3485 }
 0xab9   :  { %4400 = vrcp.f32 %v3486_v57 }
 0xac3   :  { %v4401_v12 = vpop.eup %4400 }
 0xac4   :  { %v3488_v59 = vmul.f32 %v4401_v12, %v4399_v22 }
 0xac6   :  { %3491 = vst.msk [vmem:[%s5409_s9] sm:$0xff] %vm176_vm1, %v3488_v59 }
 0xb3b   :  { %v3470_v63 = vpop.xlane.xlu0 %3469 }
 0xb3c   :  { %v3471_v31 = vcvt.f32.s32 %v3470_v63 }
 0xb3e   :  { %v3474_v7 = vadd.s32 %v3473_v10, %v3471_v31 }
 0xb40   :  { %vm3475_vm14 = vcmp.eq.s32.totalorder %v3454_v19, %v3474_v7 }
 0xb41   :  { %v3667_v41 = vsel %vm3475_vm14, 1.0, %v4406_v1 }
 0xb42   :  { %3490 = vst.msk [vmem:[%s5410_s8] sm:$0xff] %vm176_vm1, %v3667_v41 }

</bundles_post_ra>
